<compile_context>
chip_gen: v6e
topology: v6e:2x2x1
jax: 0.10.0
libtpu: 0.0.40
codegen_flags: <defaults>
</compile_context>

<pallas_src>
import jax
import jax.numpy as jnp
from jax.experimental import pallas as pl
from jax.experimental.pallas import tpu as pltpu

BN_EPS = 1e-5


# ---------------------------------------------------------------------------
# Fused Pallas kernel: conv1..conv4 (+BN fold +ReLU) + folded head + sigmoid
# ---------------------------------------------------------------------------
def _fused_forward_kernel(p1_ref, w1_ref, b1_ref,
                          w2_ref, b2_ref,
                          w3_ref, b3_ref,
                          w4_ref, b4_ref,
                          wh_ref, bh_ref,
                          o_ref,
                          pad2_ref, pad3_ref):
    n = o_ref.shape[0]

    # ---- layer 1: one MXU matmul [144*N, 9] @ [9, 32] (was 9 VPU broadcast-FMAs). ----
    a = jnp.dot(p1_ref[...], w1_ref[...], preferred_element_type=jnp.float32)
    a = jnp.maximum(a + b1_ref[...], 0.0)            # [12*12*N, 32], rows ordered (h, w, n)

    # ---- layers 2 & 3 (stride 2, pad 1): zero-pad into a 4-D (h, w, n, c) scratch, gather the
    #      9 taps with strided slices on the two untiled leading dims, concat along lanes, and
    #      run ONE [Ho*Wo*N, 9*Cin] @ [9*Cin, Cout] matmul per layer (gather matrices removed).
    for pad_ref, w_ref, b_ref, hi, ho in ((pad2_ref, w2_ref, b2_ref, 12, 6),
                                          (pad3_ref, w3_ref, b3_ref, 6, 3)):
        cin = pad_ref.shape[-1]
        pad_ref[...] = jnp.zeros_like(pad_ref)                          # zero border (pad=1)
        pad_ref[pl.ds(1, hi), pl.ds(1, hi), :, :] = a.reshape(hi, hi, n, cin)
        taps = [pad_ref[pl.ds(kh, ho, 2), pl.ds(kw, ho, 2), :, :]       # [Ho, Wo, N, Cin] each
                for kh in range(3) for kw in range(3)]
        patch = jnp.concatenate(taps, axis=-1).reshape(ho * ho * n, 9 * cin)
        a = jnp.dot(patch, w_ref[...], preferred_element_type=jnp.float32)
        a = jnp.maximum(a + b_ref[...], 0.0)          # [Ho*Wo*N, Cout], rows ordered (h, w, n)

    # ---- layer 4: pad=0, stride=3 on a 3x3 map is a full contraction ->
    #      one [N, 1152] @ [1152, 256] matmul, no gather / padding needed. ----
    a3 = a.reshape(3, 3, n, 128)
    patch4 = jnp.concatenate([a3[kh, kw] for kh in range(3) for kw in range(3)], axis=-1)
    a4 = jnp.dot(patch4, w4_ref[...], preferred_element_type=jnp.float32)
    a4 = jnp.maximum(a4 + b4_ref[...], 0.0)           # [N, 256] flattened conv4 features

    # ---- folded head (mu_fc ∘ class_fc), lane-padded to 128 -> lane-dense store. ----
    logits = jnp.dot(a4, wh_ref[...], preferred_element_type=jnp.float32) + bh_ref[...]
    z = jnp.exp(-jnp.abs(logits))                     # numerically stable sigmoid
    o_ref[...] = jnp.where(logits >= 0.0, 1.0 / (1.0 + z), z / (1.0 + z))


# ---------------------------------------------------------------------------
# Wrapper-side, batch-size-independent constant transforms.
# ---------------------------------------------------------------------------
def im2col_l1(x, stride, pad):
    """[N,1,H,W] -> [Ho*Wo*N, 9]; rows ordered (ho, wo, n), columns k = kh*3 + kw."""
    n, c, h, w = x.shape
    assert c == 1
    xp = jnp.pad(x[:, 0], ((0, 0), (pad, pad), (pad, pad)))
    ho = (h + 2 * pad - 3) // stride + 1
    wo = (w + 2 * pad - 3) // stride + 1
    cols = [xp[:, i:i + stride * ho:stride, j:j + stride * wo:stride]
            for i in range(3) for j in range(3)]
    cols = jnp.stack(cols, axis=-1)                   # [N, Ho, Wo, 9]
    return jnp.transpose(cols, (1, 2, 0, 3)).reshape(ho * wo * n, 9)


def fold_conv(w, b, gamma, beta, mean, var):
    """Fold eval-mode BN into the conv and stack the 9 taps along the contraction axis.
    Returns W_stacked [9*Cin, Cout] (rows ordered (kh, kw, cin)) and bias [1, Cout]."""
    cout, cin = w.shape[0], w.shape[1]
    scale = gamma / jnp.sqrt(var + BN_EPS)
    w_s = jnp.transpose(w, (2, 3, 1, 0)).reshape(9 * cin, cout) * scale[None, :]
    bias = ((b - mean) * scale + beta)[None, :]
    return w_s, bias


def fold_params(params):
    """One-time constant transform (independent of batch size) of the PyTorch-style params."""
    folded = {}
    for idx, (w, b, gamma, beta, mean, var, stride, pad) in enumerate(params["convs"], start=1):
        folded[f"w{idx}"], folded[f"b{idx}"] = fold_conv(w, b, gamma, beta, mean, var)
        if idx == 1:
            folded["l1_stride_pad"] = (stride, pad)
    # Exact algebraic fold of mu_fc followed by class_fc (no nonlinearity between them),
    # zero-padded to 128 lanes so the kernel's head matmul and output store are lane-dense.
    w_mu, b_mu, w_cls, b_cls = params["head"]
    wh = w_mu.T @ w_cls.T                                      # [256, 1]
    bh = (b_mu @ w_cls.T + b_cls).reshape(1, 1)                # [1, 1]
    folded["wh"] = jnp.pad(wh, ((0, 0), (0, 127)))             # [256, 128]
    folded["bh"] = jnp.pad(bh, ((0, 0), (0, 127)))             # [1, 128]
    return folded


def eye_classifier_forward(x, folded):
    n = x.shape[0]
    assert x.shape[1:] == (1, 24, 24), "EyeClassifier needs 1x24x24 input (conv4 output = 1x1)"
    stride1, pad1 = folded["l1_stride_pad"]
    p1 = im2col_l1(x, stride1, pad1)                  # [144*N, 9]; tiny gather on the raw input
    # TODO(synk): for large N, add a "parallel" row-tile grid (constants are batch-free now) and
    # cast matmul operands to bf16 on v6e/v7x.
    args = (p1,
            folded["w1"], folded["b1"], folded["w2"], folded["b2"],
            folded["w3"], folded["b3"], folded["w4"], folded["b4"],
            folded["wh"], folded["bh"])
    probs = pl.pallas_call(
        _fused_forward_kernel,
        out_shape=jax.ShapeDtypeStruct((n, 128), jnp.float32),          # lane-dense output slab
        in_specs=[pl.BlockSpec(memory_space=pltpu.MemorySpace.VMEM) for _ in args],
        out_specs=pl.BlockSpec(memory_space=pltpu.MemorySpace.VMEM),
        scratch_shapes=[pltpu.VMEM((14, 14, n, 32), jnp.float32),       # conv2 zero-padded input
                        pltpu.VMEM((8, 8, n, 64), jnp.float32)],        # conv3 zero-padded input
        compiler_params=pltpu.CompilerParams(vmem_limit_bytes=32 * 1024 * 1024),
    )(*args)
    return probs[:, 0]                                # sigmoid(logits).squeeze(-1)


# ---------------------------------------------------------------------------
# Parameter init (fresh EyeClassifier, eval-mode BN) and pure-JAX reference
# ---------------------------------------------------------------------------
def init_params(key, latent_dim):
    cfg = [(1, 32, 2, 1), (32, 64, 2, 1), (64, 128, 2, 1), (128, 256, 3, 0)]
    convs = []
    for (cin, cout, stride, pad) in cfg:
        key, kw_, kb_ = jax.random.split(key, 3)
        bound = 1.0 / (cin * 9) ** 0.5
        w = jax.random.uniform(kw_, (cout, cin, 3, 3), jnp.float32, -bound, bound)
        b = jax.random.uniform(kb_, (cout,), jnp.float32, -bound, bound)
        gamma = jnp.ones((cout,), jnp.float32)
        beta = jnp.zeros((cout,), jnp.float32)
        mean = jnp.zeros((cout,), jnp.float32)
        var = jnp.ones((cout,), jnp.float32)
        convs.append((w, b, gamma, beta, mean, var, stride, pad))
    key, k1, k2, k3, k4 = jax.random.split(key, 5)
    b_mu_bound = 1.0 / 256 ** 0.5
    w_mu = jax.random.uniform(k1, (latent_dim, 256), jnp.float32, -b_mu_bound, b_mu_bound)
    b_mu = jax.random.uniform(k2, (latent_dim,), jnp.float32, -b_mu_bound, b_mu_bound)
    b_c_bound = 1.0 / latent_dim ** 0.5
    w_cls = jax.random.uniform(k3, (1, latent_dim), jnp.float32, -b_c_bound, b_c_bound)
    b_cls = jax.random.uniform(k4, (1,), jnp.float32, -b_c_bound, b_c_bound)
    # log_var_fc is computed in Encoder.forward but never used by EyeClassifier -> omitted.
    return {"convs": convs, "head": (w_mu, b_mu, w_cls, b_cls)}


def reference_forward(x, params):
    """Pure-JAX reference (XLA conv) for the correctness check."""
    h = x
    for (w, b, gamma, beta, mean, var, stride, pad) in params["convs"]:
        out = jax.lax.conv_general_dilated(
            h, w, (stride, stride), [(pad, pad), (pad, pad)],
            dimension_numbers=("NCHW", "OIHW", "NCHW"))
        out = out + b[None, :, None, None]
        out = ((out - mean[None, :, None, None])
               / jnp.sqrt(var + BN_EPS)[None, :, None, None]
               * gamma[None, :, None, None] + beta[None, :, None, None])
        h = jnp.maximum(out, 0.0)
    feat = h.reshape(h.shape[0], -1)
    w_mu, b_mu, w_cls, b_cls = params["head"]
    mu = feat @ w_mu.T + b_mu
    logits = mu @ w_cls.T + b_cls
    return jax.nn.sigmoid(logits)[:, 0]


if __name__ == "__main__":
    key = jax.random.PRNGKey(0)
    kx, kp = jax.random.split(key)
    latent_dim = 16
    # 24x24 input: spatial 24 -> 12 -> 6 -> 3 -> 1 through the conv stack, so the flattened
    # feature size is exactly 256, matching mu_fc's in_features.
    x = jax.random.normal(kx, (2, 1, 24, 24), jnp.float32)
    params = init_params(kp, latent_dim)
    folded = fold_params(params)                       # one-time, batch-size-free transform

    out = jax.block_until_ready(eye_classifier_forward(x, folded))
    ref = jax.block_until_ready(reference_forward(x, params))

    assert out.shape == (2,), out.shape
    assert jnp.allclose(out, ref, rtol=1e-4, atol=1e-5), (out, ref)
    print("KERNEL_OK")
</pallas_src>

<mosaic_0001>
module attributes {stable_mosaic.version = 11 : i64} {
  func.func @_fused_forward_kernel(%arg0: memref<288x9xf32, #tpu.memory_space<vmem>>, %arg1: memref<9x32xf32, #tpu.memory_space<vmem>>, %arg2: memref<1x32xf32, #tpu.memory_space<vmem>>, %arg3: memref<288x64xf32, #tpu.memory_space<vmem>>, %arg4: memref<1x64xf32, #tpu.memory_space<vmem>>, %arg5: memref<576x128xf32, #tpu.memory_space<vmem>>, %arg6: memref<1x128xf32, #tpu.memory_space<vmem>>, %arg7: memref<1152x256xf32, #tpu.memory_space<vmem>>, %arg8: memref<1x256xf32, #tpu.memory_space<vmem>>, %arg9: memref<256x128xf32, #tpu.memory_space<vmem>>, %arg10: memref<1x128xf32, #tpu.memory_space<vmem>>, %arg11: memref<2x128xf32, #tpu.memory_space<vmem>>, %arg12: memref<14x14x2x32xf32, #tpu.memory_space<vmem>>, %arg13: memref<8x8x2x64xf32, #tpu.memory_space<vmem>>) attributes {dimension_semantics = [], scalar_prefetch = 0 : i64, scratch_operands = 2 : i64, tpu.core_type = #tpu.core_type<tc>} {
    %c0 = arith.constant 0 : index
    %c0_0 = arith.constant 0 : index
    %0 = vector.load %arg0[%c0, %c0_0] : memref<288x9xf32, #tpu.memory_space<vmem>>, vector<288x9xf32>
    %c0_1 = arith.constant 0 : index
    %c0_2 = arith.constant 0 : index
    %1 = vector.load %arg1[%c0_1, %c0_2] : memref<9x32xf32, #tpu.memory_space<vmem>>, vector<9x32xf32>
    %cst = arith.constant dense<0.000000e+00> : vector<288x32xf32>
    %2 = tpu.matmul %0, %1, %cst {dimension_numbers = #tpu.dot_dimension_numbers<[1], [0], [0], [1], [0, 0, 1, 1], [], []>} : vector<288x9xf32>, vector<9x32xf32>, vector<288x32xf32> -> vector<288x32xf32>
    %c0_3 = arith.constant 0 : index
    %c0_4 = arith.constant 0 : index
    %3 = vector.load %arg2[%c0_3, %c0_4] : memref<1x32xf32, #tpu.memory_space<vmem>>, vector<1x32xf32>
    %4 = vector.broadcast %3 : vector<1x32xf32> to vector<288x32xf32>
    %5 = arith.addf %2, %4 : vector<288x32xf32>
    %cst_5 = arith.constant 0.000000e+00 : f32
    %6 = vector.broadcast %cst_5 : f32 to vector<288x32xf32>
    %7 = arith.maximumf %5, %6 : vector<288x32xf32>
    %cst_6 = arith.constant 0.000000e+00 : f32
    %8 = vector.broadcast %cst_6 : f32 to vector<14x14x2x32xf32>
    %c0_7 = arith.constant 0 : index
    %c0_8 = arith.constant 0 : index
    %c0_9 = arith.constant 0 : index
    %c0_10 = arith.constant 0 : index
    %9 = vector.load %arg12[%c0_7, %c0_8, %c0_9, %c0_10] : memref<14x14x2x32xf32, #tpu.memory_space<vmem>>, vector<14x14x2x32xf32>
    tpu.vector_store %arg12[%c0_7, %c0_8, %c0_9, %c0_10], %8 {strides = array<i32>} : memref<14x14x2x32xf32, #tpu.memory_space<vmem>>, vector<14x14x2x32xf32>,
    %10 = vector.shape_cast %7 : vector<288x32xf32> to vector<12x12x2x32xf32>
    %c1 = arith.constant 1 : index
    %c1_11 = arith.constant 1 : index
    %c0_12 = arith.constant 0 : index
    %c0_13 = arith.constant 0 : index
    %11 = vector.load %arg12[%c1, %c1_11, %c0_12, %c0_13] : memref<14x14x2x32xf32, #tpu.memory_space<vmem>>, vector<12x12x2x32xf32>
    tpu.vector_store %arg12[%c1, %c1_11, %c0_12, %c0_13], %10 {strides = array<i32>} : memref<14x14x2x32xf32, #tpu.memory_space<vmem>>, vector<12x12x2x32xf32>,
    %c0_14 = arith.constant 0 : index
    %c0_15 = arith.constant 0 : index
    %c0_16 = arith.constant 0 : index
    %c0_17 = arith.constant 0 : index
    %12 = tpu.strided_load %arg12[%c0_14, %c0_15, %c0_16, %c0_17] {strides = array<i32: 2, 2, 1, 1>} : memref<14x14x2x32xf32, #tpu.memory_space<vmem>>, vector<6x6x2x32xf32>
    %c0_18 = arith.constant 0 : index
    %c1_19 = arith.constant 1 : index
    %c0_20 = arith.constant 0 : index
    %c0_21 = arith.constant 0 : index
    %13 = tpu.strided_load %arg12[%c0_18, %c1_19, %c0_20, %c0_21] {strides = array<i32: 2, 2, 1, 1>} : memref<14x14x2x32xf32, #tpu.memory_space<vmem>>, vector<6x6x2x32xf32>
    %c0_22 = arith.constant 0 : index
    %c2 = arith.constant 2 : index
    %c0_23 = arith.constant 0 : index
    %c0_24 = arith.constant 0 : index
    %14 = tpu.strided_load %arg12[%c0_22, %c2, %c0_23, %c0_24] {strides = array<i32: 2, 2, 1, 1>} : memref<14x14x2x32xf32, #tpu.memory_space<vmem>>, vector<6x6x2x32xf32>
    %c1_25 = arith.constant 1 : index
    %c0_26 = arith.constant 0 : index
    %c0_27 = arith.constant 0 : index
    %c0_28 = arith.constant 0 : index
    %15 = tpu.strided_load %arg12[%c1_25, %c0_26, %c0_27, %c0_28] {strides = array<i32: 2, 2, 1, 1>} : memref<14x14x2x32xf32, #tpu.memory_space<vmem>>, vector<6x6x2x32xf32>
    %c1_29 = arith.constant 1 : index
    %c1_30 = arith.constant 1 : index
    %c0_31 = arith.constant 0 : index
    %c0_32 = arith.constant 0 : index
    %16 = tpu.strided_load %arg12[%c1_29, %c1_30, %c0_31, %c0_32] {strides = array<i32: 2, 2, 1, 1>} : memref<14x14x2x32xf32, #tpu.memory_space<vmem>>, vector<6x6x2x32xf32>
    %c1_33 = arith.constant 1 : index
    %c2_34 = arith.constant 2 : index
    %c0_35 = arith.constant 0 : index
    %c0_36 = arith.constant 0 : index
    %17 = tpu.strided_load %arg12[%c1_33, %c2_34, %c0_35, %c0_36] {strides = array<i32: 2, 2, 1, 1>} : memref<14x14x2x32xf32, #tpu.memory_space<vmem>>, vector<6x6x2x32xf32>
    %c2_37 = arith.constant 2 : index
    %c0_38 = arith.constant 0 : index
    %c0_39 = arith.constant 0 : index
    %c0_40 = arith.constant 0 : index
    %18 = tpu.strided_load %arg12[%c2_37, %c0_38, %c0_39, %c0_40] {strides = array<i32: 2, 2, 1, 1>} : memref<14x14x2x32xf32, #tpu.memory_space<vmem>>, vector<6x6x2x32xf32>
    %c2_41 = arith.constant 2 : index
    %c1_42 = arith.constant 1 : index
    %c0_43 = arith.constant 0 : index
    %c0_44 = arith.constant 0 : index
    %19 = tpu.strided_load %arg12[%c2_41, %c1_42, %c0_43, %c0_44] {strides = array<i32: 2, 2, 1, 1>} : memref<14x14x2x32xf32, #tpu.memory_space<vmem>>, vector<6x6x2x32xf32>
    %c2_45 = arith.constant 2 : index
    %c2_46 = arith.constant 2 : index
    %c0_47 = arith.constant 0 : index
    %c0_48 = arith.constant 0 : index
    %20 = tpu.strided_load %arg12[%c2_45, %c2_46, %c0_47, %c0_48] {strides = array<i32: 2, 2, 1, 1>} : memref<14x14x2x32xf32, #tpu.memory_space<vmem>>, vector<6x6x2x32xf32>
    %21 = tpu.concatenate %12, %13, %14, %15, %16, %17, %18, %19, %20 in 3 : vector<6x6x2x32xf32>, vector<6x6x2x32xf32>, vector<6x6x2x32xf32>, vector<6x6x2x32xf32>, vector<6x6x2x32xf32>, vector<6x6x2x32xf32>, vector<6x6x2x32xf32>, vector<6x6x2x32xf32>, vector<6x6x2x32xf32> -> vector<6x6x2x288xf32>
    %22 = vector.shape_cast %21 : vector<6x6x2x288xf32> to vector<72x288xf32>
    %c0_49 = arith.constant 0 : index
    %c0_50 = arith.constant 0 : index
    %23 = vector.load %arg3[%c0_49, %c0_50] : memref<288x64xf32, #tpu.memory_space<vmem>>, vector<288x64xf32>
    %cst_51 = arith.constant dense<0.000000e+00> : vector<72x64xf32>
    %24 = tpu.matmul %22, %23, %cst_51 {dimension_numbers = #tpu.dot_dimension_numbers<[1], [0], [0], [1], [0, 0, 1, 1], [], []>} : vector<72x288xf32>, vector<288x64xf32>, vector<72x64xf32> -> vector<72x64xf32>
    %c0_52 = arith.constant 0 : index
    %c0_53 = arith.constant 0 : index
    %25 = vector.load %arg4[%c0_52, %c0_53] : memref<1x64xf32, #tpu.memory_space<vmem>>, vector<1x64xf32>
    %26 = vector.broadcast %25 : vector<1x64xf32> to vector<72x64xf32>
    %27 = arith.addf %24, %26 : vector<72x64xf32>
    %cst_54 = arith.constant 0.000000e+00 : f32
    %28 = vector.broadcast %cst_54 : f32 to vector<72x64xf32>
    %29 = arith.maximumf %27, %28 : vector<72x64xf32>
    %cst_55 = arith.constant 0.000000e+00 : f32
    %30 = vector.broadcast %cst_55 : f32 to vector<8x8x2x64xf32>
    %c0_56 = arith.constant 0 : index
    %c0_57 = arith.constant 0 : index
    %c0_58 = arith.constant 0 : index
    %c0_59 = arith.constant 0 : index
    %31 = vector.load %arg13[%c0_56, %c0_57, %c0_58, %c0_59] : memref<8x8x2x64xf32, #tpu.memory_space<vmem>>, vector<8x8x2x64xf32>
    tpu.vector_store %arg13[%c0_56, %c0_57, %c0_58, %c0_59], %30 {strides = array<i32>} : memref<8x8x2x64xf32, #tpu.memory_space<vmem>>, vector<8x8x2x64xf32>,
    %32 = vector.shape_cast %29 : vector<72x64xf32> to vector<6x6x2x64xf32>
    %c1_60 = arith.constant 1 : index
    %c1_61 = arith.constant 1 : index
    %c0_62 = arith.constant 0 : index
    %c0_63 = arith.constant 0 : index
    %33 = vector.load %arg13[%c1_60, %c1_61, %c0_62, %c0_63] : memref<8x8x2x64xf32, #tpu.memory_space<vmem>>, vector<6x6x2x64xf32>
    tpu.vector_store %arg13[%c1_60, %c1_61, %c0_62, %c0_63], %32 {strides = array<i32>} : memref<8x8x2x64xf32, #tpu.memory_space<vmem>>, vector<6x6x2x64xf32>,
    %c0_64 = arith.constant 0 : index
    %c0_65 = arith.constant 0 : index
    %c0_66 = arith.constant 0 : index
    %c0_67 = arith.constant 0 : index
    %34 = tpu.strided_load %arg13[%c0_64, %c0_65, %c0_66, %c0_67] {strides = array<i32: 2, 2, 1, 1>} : memref<8x8x2x64xf32, #tpu.memory_space<vmem>>, vector<3x3x2x64xf32>
    %c0_68 = arith.constant 0 : index
    %c1_69 = arith.constant 1 : index
    %c0_70 = arith.constant 0 : index
    %c0_71 = arith.constant 0 : index
    %35 = tpu.strided_load %arg13[%c0_68, %c1_69, %c0_70, %c0_71] {strides = array<i32: 2, 2, 1, 1>} : memref<8x8x2x64xf32, #tpu.memory_space<vmem>>, vector<3x3x2x64xf32>
    %c0_72 = arith.constant 0 : index
    %c2_73 = arith.constant 2 : index
    %c0_74 = arith.constant 0 : index
    %c0_75 = arith.constant 0 : index
    %36 = tpu.strided_load %arg13[%c0_72, %c2_73, %c0_74, %c0_75] {strides = array<i32: 2, 2, 1, 1>} : memref<8x8x2x64xf32, #tpu.memory_space<vmem>>, vector<3x3x2x64xf32>
    %c1_76 = arith.constant 1 : index
    %c0_77 = arith.constant 0 : index
    %c0_78 = arith.constant 0 : index
    %c0_79 = arith.constant 0 : index
    %37 = tpu.strided_load %arg13[%c1_76, %c0_77, %c0_78, %c0_79] {strides = array<i32: 2, 2, 1, 1>} : memref<8x8x2x64xf32, #tpu.memory_space<vmem>>, vector<3x3x2x64xf32>
    %c1_80 = arith.constant 1 : index
    %c1_81 = arith.constant 1 : index
    %c0_82 = arith.constant 0 : index
    %c0_83 = arith.constant 0 : index
    %38 = tpu.strided_load %arg13[%c1_80, %c1_81, %c0_82, %c0_83] {strides = array<i32: 2, 2, 1, 1>} : memref<8x8x2x64xf32, #tpu.memory_space<vmem>>, vector<3x3x2x64xf32>
    %c1_84 = arith.constant 1 : index
    %c2_85 = arith.constant 2 : index
    %c0_86 = arith.constant 0 : index
    %c0_87 = arith.constant 0 : index
    %39 = tpu.strided_load %arg13[%c1_84, %c2_85, %c0_86, %c0_87] {strides = array<i32: 2, 2, 1, 1>} : memref<8x8x2x64xf32, #tpu.memory_space<vmem>>, vector<3x3x2x64xf32>
    %c2_88 = arith.constant 2 : index
    %c0_89 = arith.constant 0 : index
    %c0_90 = arith.constant 0 : index
    %c0_91 = arith.constant 0 : index
    %40 = tpu.strided_load %arg13[%c2_88, %c0_89, %c0_90, %c0_91] {strides = array<i32: 2, 2, 1, 1>} : memref<8x8x2x64xf32, #tpu.memory_space<vmem>>, vector<3x3x2x64xf32>
    %c2_92 = arith.constant 2 : index
    %c1_93 = arith.constant 1 : index
    %c0_94 = arith.constant 0 : index
    %c0_95 = arith.constant 0 : index
    %41 = tpu.strided_load %arg13[%c2_92, %c1_93, %c0_94, %c0_95] {strides = array<i32: 2, 2, 1, 1>} : memref<8x8x2x64xf32, #tpu.memory_space<vmem>>, vector<3x3x2x64xf32>
    %c2_96 = arith.constant 2 : index
    %c2_97 = arith.constant 2 : index
    %c0_98 = arith.constant 0 : index
    %c0_99 = arith.constant 0 : index
    %42 = tpu.strided_load %arg13[%c2_96, %c2_97, %c0_98, %c0_99] {strides = array<i32: 2, 2, 1, 1>} : memref<8x8x2x64xf32, #tpu.memory_space<vmem>>, vector<3x3x2x64xf32>
    %43 = tpu.concatenate %34, %35, %36, %37, %38, %39, %40, %41, %42 in 3 : vector<3x3x2x64xf32>, vector<3x3x2x64xf32>, vector<3x3x2x64xf32>, vector<3x3x2x64xf32>, vector<3x3x2x64xf32>, vector<3x3x2x64xf32>, vector<3x3x2x64xf32>, vector<3x3x2x64xf32>, vector<3x3x2x64xf32> -> vector<3x3x2x576xf32>
    %44 = vector.shape_cast %43 : vector<3x3x2x576xf32> to vector<18x576xf32>
    %c0_100 = arith.constant 0 : index
    %c0_101 = arith.constant 0 : index
    %45 = vector.load %arg5[%c0_100, %c0_101] : memref<576x128xf32, #tpu.memory_space<vmem>>, vector<576x128xf32>
    %cst_102 = arith.constant dense<0.000000e+00> : vector<18x128xf32>
    %46 = tpu.matmul %44, %45, %cst_102 {dimension_numbers = #tpu.dot_dimension_numbers<[1], [0], [0], [1], [0, 0, 1, 1], [], []>} : vector<18x576xf32>, vector<576x128xf32>, vector<18x128xf32> -> vector<18x128xf32>
    %c0_103 = arith.constant 0 : index
    %c0_104 = arith.constant 0 : index
    %47 = vector.load %arg6[%c0_103, %c0_104] : memref<1x128xf32, #tpu.memory_space<vmem>>, vector<1x128xf32>
    %48 = vector.broadcast %47 : vector<1x128xf32> to vector<18x128xf32>
    %49 = arith.addf %46, %48 : vector<18x128xf32>
    %cst_105 = arith.constant 0.000000e+00 : f32
    %50 = vector.broadcast %cst_105 : f32 to vector<18x128xf32>
    %51 = arith.maximumf %49, %50 : vector<18x128xf32>
    %52 = vector.shape_cast %51 : vector<18x128xf32> to vector<3x3x2x128xf32>
    %53 = vector.extract_strided_slice %52 {offsets = [0, 0, 0, 0], sizes = [1, 1, 2, 128], strides = [1, 1, 1, 1]} : vector<3x3x2x128xf32> to vector<1x1x2x128xf32>
    %54 = vector.shape_cast %53 : vector<1x1x2x128xf32> to vector<2x128xf32>
    %55 = vector.extract_strided_slice %52 {offsets = [0, 1, 0, 0], sizes = [1, 1, 2, 128], strides = [1, 1, 1, 1]} : vector<3x3x2x128xf32> to vector<1x1x2x128xf32>
    %56 = vector.shape_cast %55 : vector<1x1x2x128xf32> to vector<2x128xf32>
    %57 = vector.extract_strided_slice %52 {offsets = [0, 2, 0, 0], sizes = [1, 1, 2, 128], strides = [1, 1, 1, 1]} : vector<3x3x2x128xf32> to vector<1x1x2x128xf32>
    %58 = vector.shape_cast %57 : vector<1x1x2x128xf32> to vector<2x128xf32>
    %59 = vector.extract_strided_slice %52 {offsets = [1, 0, 0, 0], sizes = [1, 1, 2, 128], strides = [1, 1, 1, 1]} : vector<3x3x2x128xf32> to vector<1x1x2x128xf32>
    %60 = vector.shape_cast %59 : vector<1x1x2x128xf32> to vector<2x128xf32>
    %61 = vector.extract_strided_slice %52 {offsets = [1, 1, 0, 0], sizes = [1, 1, 2, 128], strides = [1, 1, 1, 1]} : vector<3x3x2x128xf32> to vector<1x1x2x128xf32>
    %62 = vector.shape_cast %61 : vector<1x1x2x128xf32> to vector<2x128xf32>
    %63 = vector.extract_strided_slice %52 {offsets = [1, 2, 0, 0], sizes = [1, 1, 2, 128], strides = [1, 1, 1, 1]} : vector<3x3x2x128xf32> to vector<1x1x2x128xf32>
    %64 = vector.shape_cast %63 : vector<1x1x2x128xf32> to vector<2x128xf32>
    %65 = vector.extract_strided_slice %52 {offsets = [2, 0, 0, 0], sizes = [1, 1, 2, 128], strides = [1, 1, 1, 1]} : vector<3x3x2x128xf32> to vector<1x1x2x128xf32>
    %66 = vector.shape_cast %65 : vector<1x1x2x128xf32> to vector<2x128xf32>
    %67 = vector.extract_strided_slice %52 {offsets = [2, 1, 0, 0], sizes = [1, 1, 2, 128], strides = [1, 1, 1, 1]} : vector<3x3x2x128xf32> to vector<1x1x2x128xf32>
    %68 = vector.shape_cast %67 : vector<1x1x2x128xf32> to vector<2x128xf32>
    %69 = vector.extract_strided_slice %52 {offsets = [2, 2, 0, 0], sizes = [1, 1, 2, 128], strides = [1, 1, 1, 1]} : vector<3x3x2x128xf32> to vector<1x1x2x128xf32>
    %70 = vector.shape_cast %69 : vector<1x1x2x128xf32> to vector<2x128xf32>
    %71 = tpu.concatenate %54, %56, %58, %60, %62, %64, %66, %68, %70 in 1 : vector<2x128xf32>, vector<2x128xf32>, vector<2x128xf32>, vector<2x128xf32>, vector<2x128xf32>, vector<2x128xf32>, vector<2x128xf32>, vector<2x128xf32>, vector<2x128xf32> -> vector<2x1152xf32>
    %c0_106 = arith.constant 0 : index
    %c0_107 = arith.constant 0 : index
    %72 = vector.load %arg7[%c0_106, %c0_107] : memref<1152x256xf32, #tpu.memory_space<vmem>>, vector<1152x256xf32>
    %cst_108 = arith.constant dense<0.000000e+00> : vector<2x256xf32>
    %73 = tpu.matmul %71, %72, %cst_108 {dimension_numbers = #tpu.dot_dimension_numbers<[1], [0], [0], [1], [0, 0, 1, 1], [], []>} : vector<2x1152xf32>, vector<1152x256xf32>, vector<2x256xf32> -> vector<2x256xf32>
    %c0_109 = arith.constant 0 : index
    %c0_110 = arith.constant 0 : index
    %74 = vector.load %arg8[%c0_109, %c0_110] : memref<1x256xf32, #tpu.memory_space<vmem>>, vector<1x256xf32>
    %75 = vector.broadcast %74 : vector<1x256xf32> to vector<2x256xf32>
    %76 = arith.addf %73, %75 : vector<2x256xf32>
    %cst_111 = arith.constant 0.000000e+00 : f32
    %77 = vector.broadcast %cst_111 : f32 to vector<2x256xf32>
    %78 = arith.maximumf %76, %77 : vector<2x256xf32>
    %c0_112 = arith.constant 0 : index
    %c0_113 = arith.constant 0 : index
    %79 = vector.load %arg9[%c0_112, %c0_113] : memref<256x128xf32, #tpu.memory_space<vmem>>, vector<256x128xf32>
    %cst_114 = arith.constant dense<0.000000e+00> : vector<2x128xf32>
    %80 = tpu.matmul %78, %79, %cst_114 {dimension_numbers = #tpu.dot_dimension_numbers<[1], [0], [0], [1], [0, 0, 1, 1], [], []>} : vector<2x256xf32>, vector<256x128xf32>, vector<2x128xf32> -> vector<2x128xf32>
    %c0_115 = arith.constant 0 : index
    %c0_116 = arith.constant 0 : index
    %81 = vector.load %arg10[%c0_115, %c0_116] : memref<1x128xf32, #tpu.memory_space<vmem>>, vector<1x128xf32>
    %82 = vector.broadcast %81 : vector<1x128xf32> to vector<2x128xf32>
    %83 = arith.addf %80, %82 : vector<2x128xf32>
    %84 = math.absf %83 : vector<2x128xf32>
    %cst_117 = arith.constant 0.000000e+00 : f32
    %85 = vector.broadcast %cst_117 : f32 to vector<2x128xf32>
    %86 = arith.subf %85, %84 : vector<2x128xf32>
    %87 = math.exp %86 : vector<2x128xf32>
    %cst_118 = arith.constant 0.000000e+00 : f32
    %88 = vector.broadcast %cst_118 : f32 to vector<2x128xf32>
    %89 = arith.cmpf oge, %83, %88 : vector<2x128xf32>
    %cst_119 = arith.constant 1.000000e+00 : f32
    %90 = vector.broadcast %cst_119 : f32 to vector<2x128xf32>
    %91 = arith.addf %90, %87 : vector<2x128xf32>
    %cst_120 = arith.constant 1.000000e+00 : f32
    %92 = vector.broadcast %cst_120 : f32 to vector<2x128xf32>
    %93 = arith.divf %92, %91 : vector<2x128xf32>
    %cst_121 = arith.constant 1.000000e+00 : f32
    %94 = vector.broadcast %cst_121 : f32 to vector<2x128xf32>
    %95 = arith.addf %94, %87 : vector<2x128xf32>
    %96 = arith.divf %87, %95 : vector<2x128xf32>
    %97 = arith.select %89, %93, %96 : vector<2x128xi1>, vector<2x128xf32>
    %c0_122 = arith.constant 0 : index
    %c0_123 = arith.constant 0 : index
    %98 = vector.load %arg11[%c0_122, %c0_123] : memref<2x128xf32, #tpu.memory_space<vmem>>, vector<2x128xf32>
    tpu.vector_store %arg11[%c0_122, %c0_123], %97 {strides = array<i32>} : memref<2x128xf32, #tpu.memory_space<vmem>>, vector<2x128xf32>,
    return
  }
}

</mosaic_0001>

<bundles_post_ra>
// kernel: tpu_custom_call.1
= control target key start
LH: loop header
LB: loop body
LE: loop exit
PB: predicated region body
PF: predicated region fallthrough
CT: control target
= control target key end

     0   :  { %16 = vsyncpa [#allocation5], 0  ;;  %s9577_s0 = inlined_call_operand.vmem [shape: f32[288,9], index: 0, kind: input, shape index: {}]   ;;  %s9578_s1 = inlined_call_operand.hbm [shape: f32[9,32], index: 1, kind: input, shape index: {}]   ;;  %s9579_s2 = inlined_call_operand.hbm [shape: f32[1,32], index: 2, kind: input, shape index: {}]   ;;  %s9580_s3 = inlined_call_operand.vmem [shape: f32[288,64], index: 3, kind: input, shape index: {}]   ;;  %s9581_s4 = inlined_call_operand.hbm [shape: f32[1,64], index: 4, kind: input, shape index: {}]   ;;  %s9582_s5 = inlined_call_operand.hbm [shape: f32[576,128], index: 5, kind: input, shape index: {}]   ;;  %s9583_s6 = inlined_call_operand.hbm [shape: f32[1,128], index: 6, kind: input, shape index: {}]   ;;  %s9584_s7 = inlined_call_operand.hbm [shape: f32[1152,256], index: 7, kind: input, shape index: {}]   ;;  %s9585_s8 = inlined_call_operand.hbm [shape: f32[1,256], index: 8, kind: input, shape index: {}]   ;;  %s9586_s9 = inlined_call_operand.hbm [shape: f32[256,128], index: 9, kind: input, shape index: {}]   ;;  %s9587_s10 = inlined_call_operand.hbm [shape: f32[1,128], index: 10, kind: input, shape index: {}]   ;;  %s9588_s11 = inlined_call_operand.hbm [shape: f32[2,128], index: 11, kind: output, shape index: {}]  }
   0x1   :  { %17 = vsyncpa [#allocation8], 0 }
   0x2   :  { %18 = vsyncpa [#allocation11], 0 }
   0x3   :  { %19 = vsyncpa [#allocation14], 0 }
   0x4   :  { %20 = vsyncpa [#allocation17], 0 }
   0x5   :  { %21 = vsyncpa [#allocation6], 0  ;;  %s7329_s17 = smov [#allocation7]  }
   0x6   :  { %s42_s18 = sshll.u32 %s7329_s17, 4  ;;  %s43_s18 = int_to_ptr.vmem [resolvable:$true] %s42_s18 }
   0x7   :  { %s7125_s19 = scalar_lea.vmem %s43_s18, 16  ;;  %s7129_s20 = scalar_lea.vmem %s43_s18, 32 }
   0x8   :  { %p7126_p0 = scmp.ne.s32.totalorder %s43_s18, %s7125_s19  ;;  %p7130_p1 = scmp.lt.s32.totalorder %s43_s18, %s43_s18 }
   0x9   :  { %p7131_p2 = scmp.lt.s32.totalorder %s7129_s20, %s7125_s19 }
   0xb   :  { %p7132_p3 = por %p7131_p2, %p7130_p1 }
   0xd   :  { %p7133_p4 = pnand %p7132_p3, %p7126_p0 }
   0xf   :  { %7136 = shalt.err (!%p7133_p4)
}
  0x10   :  { %45 = dma.hbm_to_vmem [thread:$0]  %s9579_s2, 16, %s43_s18, [#allocation8]  }
  0x11   :  { %s7330_s23 = smov [#allocation10]   ;;  %s7331_s25 = smov [#allocation13]  }
  0x12   :  { %s63_s24 = sshll.u32 %s7330_s23, 4  ;;  %s85_s26 = sshll.u32 %s7331_s25, 4  ;;  %s64_s24 = int_to_ptr.vmem [resolvable:$true] %s63_s24  ;;  %s86_s26 = int_to_ptr.vmem [resolvable:$true] %s85_s26 }
  0x13   :  { %s7145_s27 = scalar_lea.vmem %s64_s24, 9216  ;;  %p7150_p6 = scmp.lt.s32.totalorder %s64_s24, %s64_s24 }
  0x14   :  { %p7146_p5 = scmp.ne.s32.totalorder %s64_s24, %s7145_s27  ;;  %p7151_p7 = scmp.lt.s32.totalorder %s7145_s27, %s7145_s27 }
  0x16   :  { %p7152_p8 = por %p7151_p7, %p7150_p6 }
  0x18   :  { %p7153_p9 = pnand %p7152_p8, %p7146_p5 }
  0x1a   :  { %7156 = shalt.err (!%p7153_p9)
}
  0x1b   :  { %s7332_s28 = smov 128   ;;  %s7333_s29 = smov 8  }
  0x1c   :  { %69 = dma.hbm_to_vmem [thread:$0]  %s9582_s5, 9216, %s64_s24, [#allocation11], %s7332_s28, %s7332_s28, %s7333_s29  }
  0x1d   :  { %s7165_s2 = scalar_lea.vmem %s86_s26, 36864  ;;  %p7170_p11 = scmp.lt.s32.totalorder %s86_s26, %s86_s26 }
  0x1e   :  { %p7166_p10 = scmp.ne.s32.totalorder %s86_s26, %s7165_s2  ;;  %p7171_p12 = scmp.lt.s32.totalorder %s7165_s2, %s7165_s2 }
  0x20   :  { %p7172_p13 = por %p7171_p12, %p7170_p11 }
  0x22   :  { %p7173_p0 = pnand %p7172_p13, %p7166_p10 }
  0x24   :  { %7176 = shalt.err (!%p7173_p0)
}
  0x25   :  { %s7334_s13 = smov 256   ;;  %s7335_s14 = smov 16  }
  0x26   :  { %91 = dma.hbm_to_vmem [thread:$0]  %s9584_s7, 36864, %s86_s26, [#allocation14], %s7334_s13, %s7334_s13, %s7335_s14  }
  0x27   :  { %s7336_s17 = smov [#allocation16]   ;;  %s7337_s19 = smov [#allocation4]  }
  0x28   :  { %s107_s18 = sshll.u32 %s7336_s17, 4  ;;  %s29_s20 = sshll.u32 %s7337_s19, 4  ;;  %s108_s18 = int_to_ptr.vmem [resolvable:$true] %s107_s18  ;;  %s30_s20 = int_to_ptr.vmem [resolvable:$true] %s29_s20 }
  0x29   :  { %s7185_s5 = scalar_lea.vmem %s108_s18, 4096  ;;  %p7190_p2 = scmp.lt.s32.totalorder %s108_s18, %s108_s18 }
  0x2a   :  { %p7186_p1 = scmp.ne.s32.totalorder %s108_s18, %s7185_s5  ;;  %p7191_p3 = scmp.lt.s32.totalorder %s7185_s5, %s7185_s5 }
  0x2c   :  { %p7192_p4 = por %p7191_p3, %p7190_p2 }
  0x2e   :  { %p7193_p5 = pnand %p7192_p4, %p7186_p1 }
  0x30   :  { %7196 = shalt.err (!%p7193_p5)
}
  0x31   :  { %113 = dma.hbm_to_vmem [thread:$0]  %s9586_s9, 4096, %s108_s18, [#allocation17], %s7332_s28, %s7332_s28, %s7333_s29  }
  0x32   :  { %s7205_s7 = scalar_lea.vmem %s30_s20, 256  ;;  %p7210_p7 = scmp.lt.s32.totalorder %s30_s20, %s30_s20 }
  0x33   :  { %p7206_p6 = scmp.ne.s32.totalorder %s30_s20, %s7205_s7  ;;  %p7211_p8 = scmp.lt.s32.totalorder %s7205_s7, %s7205_s7 }
  0x35   :  { %p7212_p9 = por %p7211_p8, %p7210_p7 }
  0x37   :  { %p7213_p10 = pnand %p7212_p9, %p7206_p6 }
  0x39   :  { %7216 = shalt.err (!%p7213_p10)
}
  0x3a   :  { %35 = dma.hbm_to_vmem [thread:$0]  %s9578_s1, 256, %s30_s20, [#allocation5], %s7332_s28, %s7332_s28, %s7333_s29  }
  0x3b   :  { %s7338_s25 = smov [#allocation9]   ;;  %s7339_s27 = smov [#allocation12]  }
  0x3c   :  { %s54_s26 = sshll.u32 %s7338_s25, 4  ;;  %s76_s9 = sshll.u32 %s7339_s27, 4  ;;  %s55_s26 = int_to_ptr.vmem [resolvable:$true] %s54_s26  ;;  %s77_s9 = int_to_ptr.vmem [resolvable:$true] %s76_s9 }
  0x3d   :  { %s7225_s30 = scalar_lea.vmem %s55_s26, 16  ;;  %s7229_s12 = scalar_lea.vmem %s55_s26, 32 }
  0x3e   :  { %p7226_p11 = scmp.ne.s32.totalorder %s55_s26, %s7225_s30  ;;  %p7230_p12 = scmp.lt.s32.totalorder %s55_s26, %s55_s26 }
  0x3f   :  { %p7231_p13 = scmp.lt.s32.totalorder %s7229_s12, %s7225_s30 }
  0x41   :  { %p7232_p0 = por %p7231_p13, %p7230_p12 }
  0x43   :  { %p7233_p1 = pnand %p7232_p0, %p7226_p11 }
  0x45   :  { %7236 = shalt.err (!%p7233_p1)
}
  0x46   :  { %57 = dma.hbm_to_vmem [thread:$0]  %s9581_s4, 16, %s55_s26, [#allocation8]  }
  0x47   :  { %s7245_s14 = scalar_lea.vmem %s77_s9, 16  ;;  %s7249_s1 = scalar_lea.vmem %s77_s9, 32 }
  0x48   :  { %p7246_p2 = scmp.ne.s32.totalorder %s77_s9, %s7245_s14  ;;  %p7250_p3 = scmp.lt.s32.totalorder %s77_s9, %s77_s9 }
  0x49   :  { %p7251_p4 = scmp.lt.s32.totalorder %s7249_s1, %s7245_s14 }
  0x4b   :  { %p7252_p5 = por %p7251_p4, %p7250_p3 }
  0x4d   :  { %p7253_p6 = pnand %p7252_p5, %p7246_p2 }
  0x4f   :  { %7256 = shalt.err (!%p7253_p6)
}
  0x50   :  { %79 = dma.hbm_to_vmem [thread:$0]  %s9583_s6, 16, %s77_s9, [#allocation11]  }
  0x51   :  { %s7340_s15 = smov [#allocation15]   ;;  %s7341_s17 = smov [#allocation18]  }
  0x52   :  { %s98_s16 = sshll.u32 %s7340_s15, 4  ;;  %s120_s18 = sshll.u32 %s7341_s17, 4  ;;  %s99_s16 = int_to_ptr.vmem [resolvable:$true] %s98_s16  ;;  %s121_s18 = int_to_ptr.vmem [resolvable:$true] %s120_s18 }
  0x53   :  { %s7265_s19 = scalar_lea.vmem %s99_s16, 32  ;;  %p7270_p8 = scmp.lt.s32.totalorder %s99_s16, %s99_s16 }
  0x54   :  { %p7266_p7 = scmp.ne.s32.totalorder %s99_s16, %s7265_s19  ;;  %p7271_p9 = scmp.lt.s32.totalorder %s7265_s19, %s7265_s19 }
  0x56   :  { %p7272_p10 = por %p7271_p9, %p7270_p8 }
  0x58   :  { %p7273_p11 = pnand %p7272_p10, %p7266_p7 }
  0x5a   :  { %7276 = shalt.err (!%p7273_p11)
}
  0x5b   :  { %101 = dma.hbm_to_vmem [thread:$0]  %s9585_s8, 32, %s99_s16, [#allocation14]  }
  0x5c   :  { %s7285_s5 = scalar_lea.vmem %s121_s18, 16  ;;  %s7289_s6 = scalar_lea.vmem %s121_s18, 32 }
  0x5d   :  { %p7286_p12 = scmp.ne.s32.totalorder %s121_s18, %s7285_s5  ;;  %p7290_p13 = scmp.lt.s32.totalorder %s121_s18, %s121_s18 }
  0x5e   :  { %p7291_p0 = scmp.lt.s32.totalorder %s7289_s6, %s7285_s5 }
  0x60   :  { %p7292_p1 = por %p7291_p0, %p7290_p13 }
  0x62   :  { %p7293_p2 = pnand %p7292_p1, %p7286_p12 }
  0x64   :  { %7296 = shalt.err (!%p7293_p2)
}
  0x65   :  { %123 = dma.hbm_to_vmem [thread:$0]  %s9587_s10, 16, %s121_s18, [#allocation17]  }
  0x66   :  { %7317 = dma.done.wait [#allocation5], 256  }
  0x67   :  { %7318 = vsyncadd [#allocation5], 4294967040 }
  0x68   :  { %7319 = dma.done.wait [#allocation8], 32  }
  0x69   :  { %7320 = vsyncadd [#allocation8], 4294967264 }
  0x6a   :  { %7321 = dma.done.wait [#allocation11], 9232  }
  0x6b   :  { %7322 = vsyncadd [#allocation11], 4294958064 }
  0x6c   :  { %7323 = dma.done.wait [#allocation14], 36896  }
  0x6d   :  { %7324 = vsyncadd [#allocation14], 4294930400 }
  0x6e   :  { %7325 = dma.done.wait [#allocation17], 4112  }
  0x6f   :  { %7326 = vsyncadd [#allocation17], 4294963184  ;;  %vm590_vm0 = vcmask 254976   ;;  %vm4445_vm1 = vcmask 517120   ;;  %v7342_v0 = vmov 0.0   ;;  %vm305_vm2 = vcmask 1040384  }
  0x70   :  { %591 = vst.msk [vmem:[#allocation2] sm:$0x3] %vm590_vm0, %v7342_v0  ;;  %592 = vst.msk [vmem:[#allocation2 + $0x2] sm:$0x3] %vm590_vm0, %v7342_v0  ;;  %vm196_vm3 = vcmask 72704   ;;  %v187_v2 = vld [vmem:[#allocation4] sm:$0xff]  ;;  %v827_v59 = vlaneseq }
  0x71   :  { %593 = vst.msk [vmem:[#allocation2 + $0x4] sm:$0x3] %vm590_vm0, %v7342_v0  ;;  %594 = vst.msk [vmem:[#allocation2 + $0x6] sm:$0x3] %vm590_vm0, %v7342_v0  ;;  %v188_v1 = vld [vmem:[#allocation4 + $0x8] sm:$0x1] }
  0x72   :  { %595 = vst.msk [vmem:[#allocation2 + $0x8] sm:$0x3] %vm590_vm0, %v7342_v0  ;;  %596 = vst.msk [vmem:[#allocation2 + $0xa] sm:$0x3] %vm590_vm0, %v7342_v0  ;;  %v151_v3 = vld [vmem:[%s9577_s0] sm:$0xff]  ;;  %6974 = vmatprep.subr.msk.mxu0 %vm305_vm2, %v188_v1  ;;  %v152_v4 = vld [vmem:[%s9577_s0 + $0x8] sm:$0xff] }
  0x73   :  { %597 = vst.msk [vmem:[#allocation2 + $0xc] sm:$0x3] %vm590_vm0, %v7342_v0  ;;  %598 = vst.msk [vmem:[#allocation2 + $0xe] sm:$0x3] %vm590_vm0, %v7342_v0  ;;  %6978 = vmatprep.mubr.msk.f32.mxu0 %vm196_vm3, %v151_v3  ;;  %6975 = vmatpush3.msk.msra.mxu0 %vm305_vm2, %v188_v1  ;;  %v153_v5 = vld [vmem:[%s9577_s0 + $0x10] sm:$0xff]  ;;  %v154_v6 = vld [vmem:[%s9577_s0 + $0x18] sm:$0xff] }
  0x74   :  { %599 = vst.msk [vmem:[#allocation2 + $0x10] sm:$0x3] %vm590_vm0, %v7342_v0  ;;  %600 = vst.msk [vmem:[#allocation2 + $0x12] sm:$0x3] %vm590_vm0, %v7342_v0  ;;  %6976 = vmatprep.subr.mxu0 %v187_v2  ;;  %v155_v8 = vld [vmem:[%s9577_s0 + $0x20] sm:$0xff]  ;;  %s7343_s12 = smov 32  }
  0x75   :  { %601 = vst.msk [vmem:[#allocation2 + $0x14] sm:$0x3] %vm590_vm0, %v7342_v0  ;;  %602 = vst.msk [vmem:[#allocation2 + $0x16] sm:$0x3] %vm590_vm0, %v7342_v0  ;;  %6977 = vmatpush3.msra.mxu0 %v187_v2  ;;  %v156_v11 = vld [vmem:[%s9577_s0 + $0x28] sm:$0xff]  ;;  %v157_v12 = vld [vmem:[%s9577_s0 + $0x30] sm:$0xff] }
  0x76   :  { %603 = vst.msk [vmem:[#allocation2 + $0x18] sm:$0x3] %vm590_vm0, %v7342_v0  ;;  %605 = vst.msk [vmem:[#allocation2 + $0x1c] sm:$0x3] %vm590_vm0, %v7342_v0  ;;  %6979 = vmatmul.mubr.msk.f32.vlgmr.msra.gmra.mxu0 %vm196_vm3, %v152_v4  ;;  %v158_v15 = vld [vmem:[%s9577_s0 + $0x38] sm:$0xff]  ;;  %v159_v16 = vld [vmem:[%s9577_s0 + $0x40] sm:$0xff] }
  0x77   :  { %606 = vst.msk [vmem:[#allocation2 + $0x1e] sm:$0x3] %vm590_vm0, %v7342_v0  ;;  %607 = vst.msk [vmem:[#allocation2 + $0x20] sm:$0x3] %vm590_vm0, %v7342_v0  ;;  %6981 = vmatprep.mubr.msk.f32.mxu0 %vm196_vm3, %v153_v5  ;;  %v1761_v7 = vld [vmem:[#allocation2 + $0x2] sm:$0x3] }
  0x78   :  { %608 = vst.msk [vmem:[#allocation2 + $0x22] sm:$0x3] %vm590_vm0, %v7342_v0  ;;  %609 = vst.msk [vmem:[#allocation2 + $0x24] sm:$0x3] %vm590_vm0, %v7342_v0  ;;  %2091 = vrot.lane.b32.xlu0 %v1761_v7, %s7343_s12  ;;  %v1762_v9 = vld [vmem:[#allocation2 + $0x6] sm:$0x3] }
  0x79   :  { %610 = vst.msk [vmem:[#allocation2 + $0x26] sm:$0x3] %vm590_vm0, %v7342_v0  ;;  %611 = vst.msk [vmem:[#allocation2 + $0x28] sm:$0x3] %vm590_vm0, %v7342_v0  ;;  %v1763_v10 = vld [vmem:[#allocation2 + $0xa] sm:$0x3] }
  0x7a   :  { %612 = vst.msk [vmem:[#allocation2 + $0x2a] sm:$0x3] %vm590_vm0, %v7342_v0  ;;  %613 = vst.msk [vmem:[#allocation2 + $0x2c] sm:$0x3] %vm590_vm0, %v7342_v0  ;;  %6982 = vmatmul.mubr.msk.f32.gmra.mxu0 %vm196_vm3, %v154_v6  ;;  %2095 = vrot.lane.b32.xlu1 %v1763_v10, %s7343_s12  ;;  %v1764_v13 = vld [vmem:[#allocation2 + $0xe] sm:$0x3] }
  0x7b   :  { %614 = vst.msk [vmem:[#allocation2 + $0x2e] sm:$0x3] %vm590_vm0, %v7342_v0  ;;  %615 = vst.msk [vmem:[#allocation2 + $0x30] sm:$0x3] %vm590_vm0, %v7342_v0  ;;  %6984 = vmatprep.mubr.msk.f32.mxu0 %vm196_vm3, %v155_v8  ;;  %v1798_v14 = vld [vmem:[#allocation2 + $0x4] sm:$0x3] }
  0x7c   :  { %616 = vst.msk [vmem:[#allocation2 + $0x32] sm:$0x3] %vm590_vm0, %v7342_v0  ;;  %617 = vst.msk [vmem:[#allocation2 + $0x34] sm:$0x3] %vm590_vm0, %v7342_v0  ;;  %2093 = vrot.lane.b32.xlu0 %v1762_v9, %s7343_s12  ;;  %s7344_s17 = smov 64   ;;  %v160_v19 = vld [vmem:[%s9577_s0 + $0x48] sm:$0xff] }
  0x7d   :  { %619 = vst.msk [vmem:[#allocation2 + $0x38] sm:$0x3] %vm590_vm0, %v7342_v0  ;;  %620 = vst.msk [vmem:[#allocation2 + $0x3a] sm:$0x3] %vm590_vm0, %v7342_v0  ;;  %v1799_v17 = vld [vmem:[#allocation2 + $0x8] sm:$0x3] }
  0x7e   :  { %621 = vst.msk [vmem:[#allocation2 + $0x3c] sm:$0x3] %vm590_vm0, %v7342_v0  ;;  %622 = vst.msk [vmem:[#allocation2 + $0x3e] sm:$0x3] %vm590_vm0, %v7342_v0  ;;  %6985 = vmatmul.mubr.msk.f32.gmra.mxu0 %vm196_vm3, %v156_v11  ;;  %2097 = vrot.lane.b32.xlu1 %v1764_v13, %s7343_s12  ;;  %v1800_v18 = vld [vmem:[#allocation2 + $0xc] sm:$0x3] }
  0x7f   :  { %623 = vst.msk [vmem:[#allocation2 + $0x40] sm:$0x3] %vm590_vm0, %v7342_v0  ;;  %624 = vst.msk [vmem:[#allocation2 + $0x42] sm:$0x3] %vm590_vm0, %v7342_v0  ;;  %6987 = vmatprep.mubr.msk.f32.mxu0 %vm196_vm3, %v157_v12  ;;  %v161_v20 = vld [vmem:[%s9577_s0 + $0x50] sm:$0xff]  ;;  %v162_v23 = vld [vmem:[%s9577_s0 + $0x58] sm:$0xff] }
  0x80   :  { %625 = vst.msk [vmem:[#allocation2 + $0x44] sm:$0x3] %vm590_vm0, %v7342_v0  ;;  %626 = vst.msk [vmem:[#allocation2 + $0x46] sm:$0x3] %vm590_vm0, %v7342_v0  ;;  %2235 = vrot.lane.b32.xlu0 %v1798_v14, %s7344_s17  ;;  %v1801_v21 = vld [vmem:[#allocation2 + $0x10] sm:$0x3] }
  0x81   :  { %627 = vst.msk [vmem:[#allocation2 + $0x48] sm:$0x3] %vm590_vm0, %v7342_v0  ;;  %628 = vst.msk [vmem:[#allocation2 + $0x4a] sm:$0x3] %vm590_vm0, %v7342_v0  ;;  %v163_v24 = vld [vmem:[%s9577_s0 + $0x60] sm:$0xff]  ;;  %v164_v26 = vld [vmem:[%s9577_s0 + $0x68] sm:$0xff] }
  0x82   :  { %629 = vst.msk [vmem:[#allocation2 + $0x4c] sm:$0x3] %vm590_vm0, %v7342_v0  ;;  %630 = vst.msk [vmem:[#allocation2 + $0x4e] sm:$0x3] %vm590_vm0, %v7342_v0  ;;  %6988 = vmatmul.mubr.msk.f32.gmra.mxu0 %vm196_vm3, %v158_v15  ;;  %2237 = vrot.lane.b32.xlu1 %v1799_v17, %s7344_s17  ;;  %v1835_v25 = vld [vmem:[#allocation2 + $0x1c] sm:$0x3] }
  0x83   :  { %631 = vst.msk [vmem:[#allocation2 + $0x50] sm:$0x3] %vm590_vm0, %v7342_v0  ;;  %633 = vst.msk [vmem:[#allocation2 + $0x54] sm:$0x3] %vm590_vm0, %v7342_v0  ;;  %6990 = vmatprep.mubr.msk.f32.mxu0 %vm196_vm3, %v159_v16  ;;  %v165_v27 = vld [vmem:[%s9577_s0 + $0x70] sm:$0xff]  ;;  %s7345_s24 = smov 96  }
  0x84   :  { %634 = vst.msk [vmem:[#allocation2 + $0x56] sm:$0x3] %vm590_vm0, %v7342_v0  ;;  %635 = vst.msk [vmem:[#allocation2 + $0x58] sm:$0x3] %vm590_vm0, %v7342_v0  ;;  %2239 = vrot.lane.b32.xlu0 %v1800_v18, %s7344_s17  ;;  %v1945_v22 = vld [vmem:[#allocation2 + $0x38] sm:$0x3] }
  0x85   :  { %636 = vst.msk [vmem:[#allocation2 + $0x5a] sm:$0x3] %vm590_vm0, %v7342_v0  ;;  %637 = vst.msk [vmem:[#allocation2 + $0x5c] sm:$0x3] %vm590_vm0, %v7342_v0  ;;  %v1765_v28 = vld [vmem:[#allocation2 + $0x12] sm:$0x3] }
  0x86   :  { %638 = vst.msk [vmem:[#allocation2 + $0x5e] sm:$0x3] %vm590_vm0, %v7342_v0  ;;  %639 = vst.msk [vmem:[#allocation2 + $0x60] sm:$0x3] %vm590_vm0, %v7342_v0  ;;  %6991 = vmatmul.mubr.msk.f32.gmra.mxu0 %vm196_vm3, %v160_v19  ;;  %2241 = vrot.lane.b32.xlu1 %v1801_v21, %s7344_s17  ;;  %v166_v29 = vld [vmem:[%s9577_s0 + $0x78] sm:$0xff]  ;;  %v167_v30 = vld [vmem:[%s9577_s0 + $0x80] sm:$0xff] }
  0x87   :  { %640 = vst.msk [vmem:[#allocation2 + $0x62] sm:$0x3] %vm590_vm0, %v7342_v0  ;;  %641 = vst.msk [vmem:[#allocation2 + $0x64] sm:$0x3] %vm590_vm0, %v7342_v0  ;;  %6993 = vmatprep.mubr.msk.f32.mxu0 %vm196_vm3, %v161_v20  ;;  %v1802_v31 = vld [vmem:[#allocation2 + $0x14] sm:$0x3] }
  0x88   :  { %642 = vst.msk [vmem:[#allocation2 + $0x66] sm:$0x3] %vm590_vm0, %v7342_v0  ;;  %643 = vst.msk [vmem:[#allocation2 + $0x68] sm:$0x3] %vm590_vm0, %v7342_v0  ;;  %2667 = vrot.lane.b32.xlu0 %v1945_v22, %s7344_s17  ;;  %v168_v32 = vld [vmem:[%s9577_s0 + $0x88] sm:$0xff]  ;;  %v169_v33 = vld [vmem:[%s9577_s0 + $0x90] sm:$0xff] }
  0x89   :  { %644 = vst.msk [vmem:[#allocation2 + $0x6a] sm:$0x3] %vm590_vm0, %v7342_v0  ;;  %645 = vst.msk [vmem:[#allocation2 + $0x6c] sm:$0x3] %vm590_vm0, %v7342_v0  ;;  %v170_v35 = vld [vmem:[%s9577_s0 + $0x98] sm:$0xff]  ;;  %v171_v36 = vld [vmem:[%s9577_s0 + $0xa0] sm:$0xff] }
  0x8a   :  { %647 = vst.msk [vmem:[#allocation2 + $0x70] sm:$0x3] %vm590_vm0, %v7342_v0  ;;  %648 = vst.msk [vmem:[#allocation2 + $0x72] sm:$0x3] %vm590_vm0, %v7342_v0  ;;  %6994 = vmatmul.mubr.msk.f32.gmra.mxu0 %vm196_vm3, %v162_v23  ;;  %v1841_v37 = vld [vmem:[#allocation2 + $0x54] sm:$0x3] }
  0x8b   :  { %649 = vst.msk [vmem:[#allocation2 + $0x74] sm:$0x3] %vm590_vm0, %v7342_v0  ;;  %650 = vst.msk [vmem:[#allocation2 + $0x76] sm:$0x3] %vm590_vm0, %v7342_v0  ;;  %6996 = vmatprep.mubr.msk.f32.mxu0 %vm196_vm3, %v163_v24  ;;  %v172_v38 = vld [vmem:[%s9577_s0 + $0xa8] sm:$0xff]  ;;  %v173_v45 = vld [vmem:[%s9577_s0 + $0xb0] sm:$0xff] }
  0x8c   :  { %651 = vst.msk [vmem:[#allocation2 + $0x78] sm:$0x3] %vm590_vm0, %v7342_v0  ;;  %652 = vst.msk [vmem:[#allocation2 + $0x7a] sm:$0x3] %vm590_vm0, %v7342_v0  ;;  %2379 = vrot.lane.b32.xlu0 %v1835_v25, %s7345_s24  ;;  %v1766_v41 = vld [vmem:[#allocation2 + $0x16] sm:$0x3] }
  0x8d   :  { %653 = vst.msk [vmem:[#allocation2 + $0x7c] sm:$0x3] %vm590_vm0, %v7342_v0  ;;  %654 = vst.msk [vmem:[#allocation2 + $0x7e] sm:$0x3] %vm590_vm0, %v7342_v0  ;;  %2101 = vrot.lane.b32.xlu1 %v1766_v41, %s7343_s12  ;;  %v1803_v43 = vld [vmem:[#allocation2 + $0x18] sm:$0x3] }
  0x8e   :  { %655 = vst.msk [vmem:[#allocation2 + $0x80] sm:$0x3] %vm590_vm0, %v7342_v0  ;;  %656 = vst.msk [vmem:[#allocation2 + $0x82] sm:$0x3] %vm590_vm0, %v7342_v0  ;;  %6997 = vmatmul.mubr.msk.f32.gmra.mxu0 %vm196_vm3, %v164_v26  ;;  %v174_v46 = vld [vmem:[%s9577_s0 + $0xb8] sm:$0xff]  ;;  %v175_v47 = vld [vmem:[%s9577_s0 + $0xc0] sm:$0xff] }
  0x8f   :  { %657 = vst.msk [vmem:[#allocation2 + $0x84] sm:$0x3] %vm590_vm0, %v7342_v0  ;;  %658 = vst.msk [vmem:[#allocation2 + $0x86] sm:$0x3] %vm590_vm0, %v7342_v0  ;;  %6999 = vmatprep.mubr.msk.f32.mxu0 %vm196_vm3, %v165_v27  ;;  %v176_v48 = vld [vmem:[%s9577_s0 + $0xc8] sm:$0xff]  ;;  %v177_v49 = vld [vmem:[%s9577_s0 + $0xd0] sm:$0xff] }
  0x90   :  { %659 = vst.msk [vmem:[#allocation2 + $0x88] sm:$0x3] %vm590_vm0, %v7342_v0  ;;  %661 = vst.msk [vmem:[#allocation2 + $0x8c] sm:$0x3] %vm590_vm0, %v7342_v0  ;;  %2099 = vrot.lane.b32.xlu0 %v1765_v28, %s7343_s12  ;;  %v178_v50 = vld [vmem:[%s9577_s0 + $0xd8] sm:$0xff]  ;;  %v179_v51 = vld [vmem:[%s9577_s0 + $0xe0] sm:$0xff] }
  0x91   :  { %662 = vst.msk [vmem:[#allocation2 + $0x8e] sm:$0x3] %vm590_vm0, %v7342_v0  ;;  %663 = vst.msk [vmem:[#allocation2 + $0x90] sm:$0x3] %vm590_vm0, %v7342_v0  ;;  %v1951_v34 = vld [vmem:[#allocation2 + $0x70] sm:$0x3]  ;;  %2245 = vrot.lane.b32.xlu1 %v1803_v43, %s7344_s17 }
  0x92   :  { %664 = vst.msk [vmem:[#allocation2 + $0x92] sm:$0x3] %vm590_vm0, %v7342_v0  ;;  %665 = vst.msk [vmem:[#allocation2 + $0x94] sm:$0x3] %vm590_vm0, %v7342_v0  ;;  %7000 = vmatmul.mubr.msk.f32.gmra.mxu0 %vm196_vm3, %v166_v29  ;;  %v180_v52 = vld [vmem:[%s9577_s0 + $0xe8] sm:$0xff]  ;;  %v181_v53 = vld [vmem:[%s9577_s0 + $0xf0] sm:$0xff] }
  0x93   :  { %666 = vst.msk [vmem:[#allocation2 + $0x96] sm:$0x3] %vm590_vm0, %v7342_v0  ;;  %667 = vst.msk [vmem:[#allocation2 + $0x98] sm:$0x3] %vm590_vm0, %v7342_v0  ;;  %7002 = vmatprep.mubr.msk.f32.mxu0 %vm196_vm3, %v167_v30  ;;  %v182_v54 = vld [vmem:[%s9577_s0 + $0xf8] sm:$0xff]  ;;  %v183_v55 = vld [vmem:[%s9577_s0 + $0x100] sm:$0xff] }
  0x94   :  { %668 = vst.msk [vmem:[#allocation2 + $0x9a] sm:$0x3] %vm590_vm0, %v7342_v0  ;;  %669 = vst.msk [vmem:[#allocation2 + $0x9c] sm:$0x3] %vm590_vm0, %v7342_v0  ;;  %2243 = vrot.lane.b32.xlu0 %v1802_v31, %s7344_s17  ;;  %v184_v56 = vld [vmem:[%s9577_s0 + $0x108] sm:$0xff]  ;;  %v8037_v61 = vshrl.u32 %v827_v59, 7 }
  0x95   :  { %670 = vst.msk [vmem:[#allocation2 + $0x9e] sm:$0x3] %vm590_vm0, %v7342_v0  ;;  %671 = vst.msk [vmem:[#allocation2 + $0xa0] sm:$0x3] %vm590_vm0, %v7342_v0  ;;  %v7346_v57 = vmov 1983009808  }
  0x96   :  { %672 = vst.msk [vmem:[#allocation2 + $0xa2] sm:$0x3] %vm590_vm0, %v7342_v0  ;;  %673 = vst.msk [vmem:[#allocation2 + $0xa4] sm:$0x3] %vm590_vm0, %v7342_v0  ;;  %7003 = vmatmul.mubr.msk.f32.gmra.mxu0 %vm196_vm3, %v168_v32  ;;  %v825_v58 = vunpack.c.l.s4 %v7346_v57  ;;  %v8039_v62 = vld [vmem:[#allocation7] ss:$0 sm:$0xff] }
  0x97   :  { %675 = vst.msk [vmem:[#allocation2 + $0xa8] sm:$0x3] %vm590_vm0, %v7342_v0  ;;  %676 = vst.msk [vmem:[#allocation2 + $0xaa] sm:$0x3] %vm590_vm0, %v7342_v0  ;;  %7005 = vmatprep.mubr.msk.f32.mxu0 %vm196_vm3, %v169_v33  ;;  %v1847_v40 = vld [vmem:[#allocation2 + $0x8c] sm:$0x3] }
  0x98   :  { %677 = vst.msk [vmem:[#allocation2 + $0xac] sm:$0x3] %vm590_vm0, %v7342_v0  ;;  %678 = vst.msk [vmem:[#allocation2 + $0xae] sm:$0x3] %vm590_vm0, %v7342_v0  ;;  %2679 = vrot.lane.b32.xlu0 %v1951_v34, %s7344_s17  ;;  %v826_v60 = vunpack.c.0.s8 %v825_v58  ;;  %vm2919_vm4 = vcmask 261120   ;;  %vm2956_vm5 = vcmask 523264  }
  0x99   :  { %679 = vst.msk [vmem:[#allocation2 + $0xb0] sm:$0x3] %vm590_vm0, %v7342_v0  ;;  %680 = vst.msk [vmem:[#allocation2 + $0xb2] sm:$0x3] %vm590_vm0, %v7342_v0  ;;  %vm2993_vm6 = vcmask 785408   ;;  %vm7347_vm7 = vmmov 0  }
  0x9a   :  { %681 = vst.msk [vmem:[#allocation2 + $0xb4] sm:$0x3] %vm590_vm0, %v7342_v0  ;;  %682 = vst.msk [vmem:[#allocation2 + $0xb6] sm:$0x3] %vm590_vm0, %v7342_v0  ;;  %7006 = vmatmul.mubr.msk.f32.gmra.mxu0 %vm196_vm3, %v170_v35  ;;  %v8043_v2 = vsub.s32 %v826_v60, %v8037_v61 }
  0x9b   :  { %683 = vst.msk [vmem:[#allocation2 + $0xb8] sm:$0x3] %vm590_vm0, %v7342_v0  ;;  %684 = vst.msk [vmem:[#allocation2 + $0xba] sm:$0x3] %vm590_vm0, %v7342_v0  ;;  %7008 = vmatprep.mubr.msk.f32.mxu0 %vm196_vm3, %v171_v36 }
  0x9c   :  { %685 = vst.msk [vmem:[#allocation2 + $0xbc] sm:$0x3] %vm590_vm0, %v7342_v0  ;;  %686 = vst.msk [vmem:[#allocation2 + $0xbe] sm:$0x3] %vm590_vm0, %v7342_v0  ;;  %2391 = vrot.lane.b32.xlu0 %v1841_v37, %s7345_s24 }
  0x9d   :  { %687 = vst.msk [vmem:[#allocation2 + $0xc0] sm:$0x3] %vm590_vm0, %v7342_v0  ;;  %689 = vst.msk [vmem:[#allocation2 + $0xc4] sm:$0x3] %vm590_vm0, %v7342_v0 }
  0x9e   :  { %690 = vst.msk [vmem:[#allocation2 + $0xc6] sm:$0x3] %vm590_vm0, %v7342_v0  ;;  %691 = vst.msk [vmem:[#allocation2 + $0xc8] sm:$0x3] %vm590_vm0, %v7342_v0  ;;  %7009 = vmatmul.mubr.msk.f32.gmra.mxu0 %vm196_vm3, %v172_v38  ;;  %v1957_v39 = vld [vmem:[#allocation2 + $0xa8] sm:$0x3] }
  0x9f   :  { %692 = vst.msk [vmem:[#allocation2 + $0xca] sm:$0x3] %vm590_vm0, %v7342_v0  ;;  %693 = vst.msk [vmem:[#allocation2 + $0xcc] sm:$0x3] %vm590_vm0, %v7342_v0  ;;  %7011 = vmatprep.mubr.msk.f32.mxu0 %vm196_vm3, %v173_v45 }
  0xa0   :  { %694 = vst.msk [vmem:[#allocation2 + $0xce] sm:$0x3] %vm590_vm0, %v7342_v0  ;;  %695 = vst.msk [vmem:[#allocation2 + $0xd0] sm:$0x3] %vm590_vm0, %v7342_v0  ;;  %2691 = vrot.lane.b32.xlu0 %v1957_v39, %s7344_s17 }
  0xa1   :  { %696 = vst.msk [vmem:[#allocation2 + $0xd2] sm:$0x3] %vm590_vm0, %v7342_v0  ;;  %697 = vst.msk [vmem:[#allocation2 + $0xd4] sm:$0x3] %vm590_vm0, %v7342_v0 }
  0xa2   :  { %698 = vst.msk [vmem:[#allocation2 + $0xd6] sm:$0x3] %vm590_vm0, %v7342_v0  ;;  %699 = vst.msk [vmem:[#allocation2 + $0xd8] sm:$0x3] %vm590_vm0, %v7342_v0  ;;  %7012 = vmatmul.mubr.msk.f32.gmra.mxu0 %vm196_vm3, %v174_v46 }
  0xa3   :  { %700 = vst.msk [vmem:[#allocation2 + $0xda] sm:$0x3] %vm590_vm0, %v7342_v0  ;;  %701 = vst.msk [vmem:[#allocation2 + $0xdc] sm:$0x3] %vm590_vm0, %v7342_v0  ;;  %7014 = vmatprep.mubr.msk.f32.mxu0 %vm196_vm3, %v175_v47 }
  0xa4   :  { %703 = vst.msk [vmem:[#allocation2 + $0xe0] sm:$0x3] %vm590_vm0, %v7342_v0  ;;  %704 = vst.msk [vmem:[#allocation2 + $0xe2] sm:$0x3] %vm590_vm0, %v7342_v0  ;;  %2403 = vrot.lane.b32.xlu0 %v1847_v40, %s7345_s24  ;;  %v1853_v44 = vld [vmem:[#allocation2 + $0xc4] sm:$0x3] }
  0xa5   :  { %705 = vst.msk [vmem:[#allocation2 + $0xe4] sm:$0x3] %vm590_vm0, %v7342_v0  ;;  %706 = vst.msk [vmem:[#allocation2 + $0xe6] sm:$0x3] %vm590_vm0, %v7342_v0 }
  0xa6   :  { %707 = vst.msk [vmem:[#allocation2 + $0xe8] sm:$0x3] %vm590_vm0, %v7342_v0  ;;  %708 = vst.msk [vmem:[#allocation2 + $0xea] sm:$0x3] %vm590_vm0, %v7342_v0  ;;  %7015 = vmatmul.mubr.msk.f32.gmra.mxu0 %vm196_vm3, %v176_v48 }
  0xa7   :  { %709 = vst.msk [vmem:[#allocation2 + $0xec] sm:$0x3] %vm590_vm0, %v7342_v0  ;;  %710 = vst.msk [vmem:[#allocation2 + $0xee] sm:$0x3] %vm590_vm0, %v7342_v0  ;;  %7017 = vmatprep.mubr.msk.f32.mxu0 %vm196_vm3, %v177_v49 }
  0xa8   :  { %711 = vst.msk [vmem:[#allocation2 + $0xf0] sm:$0x3] %vm590_vm0, %v7342_v0  ;;  %712 = vst.msk [vmem:[#allocation2 + $0xf2] sm:$0x3] %vm590_vm0, %v7342_v0 }
  0xa9   :  { %713 = vst.msk [vmem:[#allocation2 + $0xf4] sm:$0x3] %vm590_vm0, %v7342_v0  ;;  %714 = vst.msk [vmem:[#allocation2 + $0xf6] sm:$0x3] %vm590_vm0, %v7342_v0 }
  0xaa   :  { %715 = vst.msk [vmem:[#allocation2 + $0xf8] sm:$0x3] %vm590_vm0, %v7342_v0  ;;  %717 = vst.msk [vmem:[#allocation2 + $0xfc] sm:$0x3] %vm590_vm0, %v7342_v0  ;;  %7018 = vmatmul.mubr.msk.f32.gmra.mxu0 %vm196_vm3, %v178_v50 }
  0xab   :  { %718 = vst.msk [vmem:[#allocation2 + $0xfe] sm:$0x3] %vm590_vm0, %v7342_v0  ;;  %719 = vst.msk [vmem:[#allocation2 + $0x100] sm:$0x3] %vm590_vm0, %v7342_v0  ;;  %v1963_v42 = vld [vmem:[#allocation2 + $0xe0] sm:$0x3]  ;;  %7020 = vmatprep.mubr.msk.f32.mxu0 %vm196_vm3, %v179_v51 }
  0xac   :  { %720 = vst.msk [vmem:[#allocation2 + $0x102] sm:$0x3] %vm590_vm0, %v7342_v0  ;;  %721 = vst.msk [vmem:[#allocation2 + $0x104] sm:$0x3] %vm590_vm0, %v7342_v0  ;;  %2703 = vrot.lane.b32.xlu0 %v1963_v42, %s7344_s17 }
  0xad   :  { %722 = vst.msk [vmem:[#allocation2 + $0x106] sm:$0x3] %vm590_vm0, %v7342_v0  ;;  %723 = vst.msk [vmem:[#allocation2 + $0x108] sm:$0x3] %vm590_vm0, %v7342_v0 }
  0xae   :  { %724 = vst.msk [vmem:[#allocation2 + $0x10a] sm:$0x3] %vm590_vm0, %v7342_v0  ;;  %725 = vst.msk [vmem:[#allocation2 + $0x10c] sm:$0x3] %vm590_vm0, %v7342_v0  ;;  %7021 = vmatmul.mubr.msk.f32.gmra.mxu0 %vm196_vm3, %v180_v52 }
  0xaf   :  { %726 = vst.msk [vmem:[#allocation2 + $0x10e] sm:$0x3] %vm590_vm0, %v7342_v0  ;;  %727 = vst.msk [vmem:[#allocation2 + $0x110] sm:$0x3] %vm590_vm0, %v7342_v0  ;;  %7023 = vmatprep.mubr.msk.f32.mxu0 %vm196_vm3, %v181_v53 }
  0xb0   :  { %728 = vst.msk [vmem:[#allocation2 + $0x112] sm:$0x3] %vm590_vm0, %v7342_v0  ;;  %729 = vst.msk [vmem:[#allocation2 + $0x114] sm:$0x3] %vm590_vm0, %v7342_v0  ;;  %2415 = vrot.lane.b32.xlu0 %v1853_v44, %s7345_s24 }
  0xb1   :  { %731 = vst.msk [vmem:[#allocation2 + $0x118] sm:$0x3] %vm590_vm0, %v7342_v0  ;;  %732 = vst.msk [vmem:[#allocation2 + $0x11a] sm:$0x3] %vm590_vm0, %v7342_v0 }
  0xb2   :  { %733 = vst.msk [vmem:[#allocation2 + $0x11c] sm:$0x3] %vm590_vm0, %v7342_v0  ;;  %734 = vst.msk [vmem:[#allocation2 + $0x11e] sm:$0x3] %vm590_vm0, %v7342_v0  ;;  %7024 = vmatmul.mubr.msk.f32.gmra.mxu0 %vm196_vm3, %v182_v54 }
  0xb3   :  { %735 = vst.msk [vmem:[#allocation2 + $0x120] sm:$0x3] %vm590_vm0, %v7342_v0  ;;  %736 = vst.msk [vmem:[#allocation2 + $0x122] sm:$0x3] %vm590_vm0, %v7342_v0  ;;  %7026 = vmatprep.mubr.msk.f32.mxu0 %vm196_vm3, %v183_v55 }
  0xb4   :  { %737 = vst.msk [vmem:[#allocation2 + $0x124] sm:$0x3] %vm590_vm0, %v7342_v0  ;;  %738 = vst.msk [vmem:[#allocation2 + $0x126] sm:$0x3] %vm590_vm0, %v7342_v0 }
  0xb5   :  { %739 = vst.msk [vmem:[#allocation2 + $0x128] sm:$0x3] %vm590_vm0, %v7342_v0  ;;  %740 = vst.msk [vmem:[#allocation2 + $0x12a] sm:$0x3] %vm590_vm0, %v7342_v0 }
  0xb6   :  { %741 = vst.msk [vmem:[#allocation2 + $0x12c] sm:$0x3] %vm590_vm0, %v7342_v0  ;;  %742 = vst.msk [vmem:[#allocation2 + $0x12e] sm:$0x3] %vm590_vm0, %v7342_v0  ;;  %7027 = vmatmul.mubr.msk.f32.gmra.mxu0 %vm196_vm3, %v184_v56 }
  0xb7   :  { %743 = vst.msk [vmem:[#allocation2 + $0x130] sm:$0x3] %vm590_vm0, %v7342_v0  ;;  %745 = vst.msk [vmem:[#allocation2 + $0x134] sm:$0x3] %vm590_vm0, %v7342_v0 }
  0xb8   :  { %746 = vst.msk [vmem:[#allocation2 + $0x136] sm:$0x3] %vm590_vm0, %v7342_v0  ;;  %747 = vst.msk [vmem:[#allocation2 + $0x138] sm:$0x3] %vm590_vm0, %v7342_v0 }
  0xb9   :  { %748 = vst.msk [vmem:[#allocation2 + $0x13a] sm:$0x3] %vm590_vm0, %v7342_v0  ;;  %749 = vst.msk [vmem:[#allocation2 + $0x13c] sm:$0x3] %vm590_vm0, %v7342_v0 }
  0xba   :  { %750 = vst.msk [vmem:[#allocation2 + $0x13e] sm:$0x3] %vm590_vm0, %v7342_v0  ;;  %751 = vst.msk [vmem:[#allocation2 + $0x140] sm:$0x3] %vm590_vm0, %v7342_v0 }
  0xbb   :  { %752 = vst.msk [vmem:[#allocation2 + $0x142] sm:$0x3] %vm590_vm0, %v7342_v0  ;;  %753 = vst.msk [vmem:[#allocation2 + $0x144] sm:$0x3] %vm590_vm0, %v7342_v0 }
  0xbc   :  { %754 = vst.msk [vmem:[#allocation2 + $0x146] sm:$0x3] %vm590_vm0, %v7342_v0  ;;  %755 = vst.msk [vmem:[#allocation2 + $0x148] sm:$0x3] %vm590_vm0, %v7342_v0 }
  0xbd   :  { %756 = vst.msk [vmem:[#allocation2 + $0x14a] sm:$0x3] %vm590_vm0, %v7342_v0  ;;  %757 = vst.msk [vmem:[#allocation2 + $0x14c] sm:$0x3] %vm590_vm0, %v7342_v0 }
  0xbe   :  { %759 = vst.msk [vmem:[#allocation2 + $0x150] sm:$0x3] %vm590_vm0, %v7342_v0  ;;  %760 = vst.msk [vmem:[#allocation2 + $0x152] sm:$0x3] %vm590_vm0, %v7342_v0 }
  0xbf   :  { %761 = vst.msk [vmem:[#allocation2 + $0x154] sm:$0x3] %vm590_vm0, %v7342_v0  ;;  %762 = vst.msk [vmem:[#allocation2 + $0x156] sm:$0x3] %vm590_vm0, %v7342_v0 }
  0xc0   :  { %763 = vst.msk [vmem:[#allocation2 + $0x158] sm:$0x3] %vm590_vm0, %v7342_v0  ;;  %764 = vst.msk [vmem:[#allocation2 + $0x15a] sm:$0x3] %vm590_vm0, %v7342_v0 }
  0xc1   :  { %765 = vst.msk [vmem:[#allocation2 + $0x15c] sm:$0x3] %vm590_vm0, %v7342_v0  ;;  %766 = vst.msk [vmem:[#allocation2 + $0x15e] sm:$0x3] %vm590_vm0, %v7342_v0 }
  0xc2   :  { %767 = vst.msk [vmem:[#allocation2 + $0x160] sm:$0x3] %vm590_vm0, %v7342_v0  ;;  %768 = vst.msk [vmem:[#allocation2 + $0x162] sm:$0x3] %vm590_vm0, %v7342_v0 }
  0xc3   :  { %769 = vst.msk [vmem:[#allocation2 + $0x164] sm:$0x3] %vm590_vm0, %v7342_v0  ;;  %770 = vst.msk [vmem:[#allocation2 + $0x166] sm:$0x3] %vm590_vm0, %v7342_v0 }
  0xc4   :  { %771 = vst.msk [vmem:[#allocation2 + $0x168] sm:$0x3] %vm590_vm0, %v7342_v0 }
  0xc5   :  { %4446 = vst.msk [vmem:[#allocation3] sm:$0x3] %vm4445_vm1, %v7342_v0  ;;  %4447 = vst.msk [vmem:[#allocation3 + $0x2] sm:$0x3] %vm4445_vm1, %v7342_v0 }
  0xc6   :  { %4448 = vst.msk [vmem:[#allocation3 + $0x4] sm:$0x3] %vm4445_vm1, %v7342_v0  ;;  %4449 = vst.msk [vmem:[#allocation3 + $0x6] sm:$0x3] %vm4445_vm1, %v7342_v0 }
  0xc7   :  { %4450 = vst.msk [vmem:[#allocation3 + $0x8] sm:$0x3] %vm4445_vm1, %v7342_v0  ;;  %4451 = vst.msk [vmem:[#allocation3 + $0xa] sm:$0x3] %vm4445_vm1, %v7342_v0 }
  0xc8   :  { %4452 = vst.msk [vmem:[#allocation3 + $0xc] sm:$0x3] %vm4445_vm1, %v7342_v0  ;;  %4454 = vst.msk [vmem:[#allocation3 + $0x10] sm:$0x3] %vm4445_vm1, %v7342_v0 }
  0xc9   :  { %4455 = vst.msk [vmem:[#allocation3 + $0x12] sm:$0x3] %vm4445_vm1, %v7342_v0  ;;  %4456 = vst.msk [vmem:[#allocation3 + $0x14] sm:$0x3] %vm4445_vm1, %v7342_v0 }
  0xca   :  { %4457 = vst.msk [vmem:[#allocation3 + $0x16] sm:$0x3] %vm4445_vm1, %v7342_v0  ;;  %4458 = vst.msk [vmem:[#allocation3 + $0x18] sm:$0x3] %vm4445_vm1, %v7342_v0 }
  0xcb   :  { %4459 = vst.msk [vmem:[#allocation3 + $0x1a] sm:$0x3] %vm4445_vm1, %v7342_v0  ;;  %4460 = vst.msk [vmem:[#allocation3 + $0x1c] sm:$0x3] %vm4445_vm1, %v7342_v0 }
  0xcc   :  { %4462 = vst.msk [vmem:[#allocation3 + $0x20] sm:$0x3] %vm4445_vm1, %v7342_v0  ;;  %4463 = vst.msk [vmem:[#allocation3 + $0x22] sm:$0x3] %vm4445_vm1, %v7342_v0 }
  0xcd   :  { %4464 = vst.msk [vmem:[#allocation3 + $0x24] sm:$0x3] %vm4445_vm1, %v7342_v0  ;;  %4465 = vst.msk [vmem:[#allocation3 + $0x26] sm:$0x3] %vm4445_vm1, %v7342_v0 }
  0xce   :  { %4466 = vst.msk [vmem:[#allocation3 + $0x28] sm:$0x3] %vm4445_vm1, %v7342_v0  ;;  %4467 = vst.msk [vmem:[#allocation3 + $0x2a] sm:$0x3] %vm4445_vm1, %v7342_v0 }
  0xcf   :  { %4468 = vst.msk [vmem:[#allocation3 + $0x2c] sm:$0x3] %vm4445_vm1, %v7342_v0  ;;  %4470 = vst.msk [vmem:[#allocation3 + $0x30] sm:$0x3] %vm4445_vm1, %v7342_v0 }
  0xd0   :  { %4471 = vst.msk [vmem:[#allocation3 + $0x32] sm:$0x3] %vm4445_vm1, %v7342_v0  ;;  %4472 = vst.msk [vmem:[#allocation3 + $0x34] sm:$0x3] %vm4445_vm1, %v7342_v0 }
  0xd1   :  { %4473 = vst.msk [vmem:[#allocation3 + $0x36] sm:$0x3] %vm4445_vm1, %v7342_v0  ;;  %4474 = vst.msk [vmem:[#allocation3 + $0x38] sm:$0x3] %vm4445_vm1, %v7342_v0 }
  0xd2   :  { %4475 = vst.msk [vmem:[#allocation3 + $0x3a] sm:$0x3] %vm4445_vm1, %v7342_v0  ;;  %4476 = vst.msk [vmem:[#allocation3 + $0x3c] sm:$0x3] %vm4445_vm1, %v7342_v0 }
  0xd3   :  { %4478 = vst.msk [vmem:[#allocation3 + $0x40] sm:$0x3] %vm4445_vm1, %v7342_v0  ;;  %4479 = vst.msk [vmem:[#allocation3 + $0x42] sm:$0x3] %vm4445_vm1, %v7342_v0 }
  0xd4   :  { %4480 = vst.msk [vmem:[#allocation3 + $0x44] sm:$0x3] %vm4445_vm1, %v7342_v0  ;;  %4481 = vst.msk [vmem:[#allocation3 + $0x46] sm:$0x3] %vm4445_vm1, %v7342_v0 }
  0xd5   :  { %4482 = vst.msk [vmem:[#allocation3 + $0x48] sm:$0x3] %vm4445_vm1, %v7342_v0  ;;  %4483 = vst.msk [vmem:[#allocation3 + $0x4a] sm:$0x3] %vm4445_vm1, %v7342_v0 }
  0xd6   :  { %4484 = vst.msk [vmem:[#allocation3 + $0x4c] sm:$0x3] %vm4445_vm1, %v7342_v0  ;;  %4486 = vst.msk [vmem:[#allocation3 + $0x50] sm:$0x3] %vm4445_vm1, %v7342_v0 }
  0xd7   :  { %4487 = vst.msk [vmem:[#allocation3 + $0x52] sm:$0x3] %vm4445_vm1, %v7342_v0  ;;  %4488 = vst.msk [vmem:[#allocation3 + $0x54] sm:$0x3] %vm4445_vm1, %v7342_v0 }
  0xd8   :  { %4489 = vst.msk [vmem:[#allocation3 + $0x56] sm:$0x3] %vm4445_vm1, %v7342_v0  ;;  %4490 = vst.msk [vmem:[#allocation3 + $0x58] sm:$0x3] %vm4445_vm1, %v7342_v0 }
  0xd9   :  { %4491 = vst.msk [vmem:[#allocation3 + $0x5a] sm:$0x3] %vm4445_vm1, %v7342_v0  ;;  %4492 = vst.msk [vmem:[#allocation3 + $0x5c] sm:$0x3] %vm4445_vm1, %v7342_v0 }
  0xda   :  { %4494 = vst.msk [vmem:[#allocation3 + $0x60] sm:$0x3] %vm4445_vm1, %v7342_v0  ;;  %4495 = vst.msk [vmem:[#allocation3 + $0x62] sm:$0x3] %vm4445_vm1, %v7342_v0 }
  0xdb   :  { %4496 = vst.msk [vmem:[#allocation3 + $0x64] sm:$0x3] %vm4445_vm1, %v7342_v0  ;;  %4497 = vst.msk [vmem:[#allocation3 + $0x66] sm:$0x3] %vm4445_vm1, %v7342_v0 }
  0xdc   :  { %4498 = vst.msk [vmem:[#allocation3 + $0x68] sm:$0x3] %vm4445_vm1, %v7342_v0  ;;  %4499 = vst.msk [vmem:[#allocation3 + $0x6a] sm:$0x3] %vm4445_vm1, %v7342_v0 }
  0xdd   :  { %4500 = vst.msk [vmem:[#allocation3 + $0x6c] sm:$0x3] %vm4445_vm1, %v7342_v0 }
 0x136   :  { %v6980_v63 = vpop.f32.mrf.mxu0 }
 0x137   :  { %v381_v1 = vadd.f32 %v6980_v63, %v8039_v62 }
 0x138   :  { %v375_v3 = vpop.f32.mrf.mxu0 }
 0x139   :  { %v555_v4 = vmax.f32 %v381_v1, 0.0  ;;  %v376_v5 = vadd.f32 %v8039_v62, %v375_v3 }
 0x13a   :  { %v6983_v6 = vpop.f32.mrf.mxu0 }
 0x13b   :  { %v840_v7 = vcombine.high %v555_v4, %v555_v4  ;;  %v847_v8 = vrot.slane %v555_v4, %v8043_v2  ;;  %v554_v9 = vmax.f32 %v376_v5, 0.0  ;;  %v391_v10 = vadd.f32 %v6983_v6, %v8039_v62 }
 0x13c   :  { %v385_v11 = vpop.f32.mrf.mxu0 }
 0x13d   :  { %v854_v12 = vrot.slane %v840_v7, %v8043_v2  ;;  %v855_v13 = vcombine.high %v847_v8, %v847_v8  ;;  %1584 = vst.msk [vmem:[#allocation2 + $0x26] sm:$0x3] %vm590_vm0, %v847_v8  ;;  %v823_v14 = vcombine.high %v554_v9, %v554_v9  ;;  %v830_v15 = vrot.slane %v554_v9, %v8043_v2 }
 0x13e   :  { %v557_v16 = vmax.f32 %v391_v10, 0.0  ;;  %v386_v17 = vadd.f32 %v8039_v62, %v385_v11  ;;  %v6986_v18 = vpop.f32.mrf.mxu0 }
 0x13f   :  { %v856_v19 = vcombine.high %v854_v12, %v854_v12  ;;  %1585 = vst.msk [vmem:[#allocation2 + $0x28] sm:$0x3] %vm590_vm0, %v855_v13  ;;  %1586 = vst.msk [vmem:[#allocation2 + $0x2a] sm:$0x3] %vm590_vm0, %v854_v12  ;;  %v837_v20 = vrot.slane %v823_v14, %v8043_v2  ;;  %v838_v21 = vcombine.high %v830_v15, %v830_v15 }
 0x140   :  { %1580 = vst.msk [vmem:[#allocation2 + $0x1e] sm:$0x3] %vm590_vm0, %v830_v15  ;;  %v401_v22 = vadd.f32 %v6986_v18, %v8039_v62  ;;  %v874_v23 = vcombine.high %v557_v16, %v557_v16  ;;  %v881_v24 = vrot.slane %v557_v16, %v8043_v2  ;;  %v556_v25 = vmax.f32 %v386_v17, 0.0  ;;  %v395_v26 = vpop.f32.mrf.mxu0 }
 0x141   :  { %1587 = vst.msk [vmem:[#allocation2 + $0x2c] sm:$0x3] %vm590_vm0, %v856_v19  ;;  %v839_v27 = vcombine.high %v837_v20, %v837_v20  ;;  %1581 = vst.msk [vmem:[#allocation2 + $0x20] sm:$0x3] %vm590_vm0, %v838_v21  ;;  %v396_v29 = vadd.f32 %v8039_v62, %v395_v26 }
 0x142   :  { %1582 = vst.msk [vmem:[#allocation2 + $0x22] sm:$0x3] %vm590_vm0, %v837_v20  ;;  %v559_v28 = vmax.f32 %v401_v22, 0.0  ;;  %v888_v30 = vrot.slane %v874_v23, %v8043_v2  ;;  %v889_v31 = vcombine.high %v881_v24, %v881_v24  ;;  %1592 = vst.msk [vmem:[#allocation2 + $0x3a] sm:$0x3] %vm590_vm0, %v881_v24  ;;  %v857_v32 = vcombine.high %v556_v25, %v556_v25  ;;  %v6989_v34 = vpop.f32.mrf.mxu0 }
 0x143   :  { %v864_v33 = vrot.slane %v556_v25, %v8043_v2  ;;  %1583 = vst.msk [vmem:[#allocation2 + $0x24] sm:$0x3] %vm590_vm0, %v839_v27  ;;  %v558_v37 = vmax.f32 %v396_v29, 0.0  ;;  %v411_v38 = vadd.f32 %v6989_v34, %v8039_v62 }
 0x144   :  { %v908_v35 = vcombine.high %v559_v28, %v559_v28  ;;  %v915_v36 = vrot.slane %v559_v28, %v8043_v2  ;;  %v890_v39 = vcombine.high %v888_v30, %v888_v30  ;;  %1593 = vst.msk [vmem:[#allocation2 + $0x3c] sm:$0x3] %vm590_vm0, %v889_v31  ;;  %1594 = vst.msk [vmem:[#allocation2 + $0x3e] sm:$0x3] %vm590_vm0, %v888_v30  ;;  %v405_v42 = vpop.f32.mrf.mxu0 }
 0x145   :  { %v871_v40 = vrot.slane %v857_v32, %v8043_v2  ;;  %v872_v41 = vcombine.high %v864_v33, %v864_v33  ;;  %1588 = vst.msk [vmem:[#allocation2 + $0x2e] sm:$0x3] %vm590_vm0, %v864_v33  ;;  %v891_v45 = vcombine.high %v558_v37, %v558_v37  ;;  %v898_v46 = vrot.slane %v558_v37, %v8043_v2 }
 0x146   :  { %v922_v43 = vrot.slane %v908_v35, %v8043_v2  ;;  %v923_v44 = vcombine.high %v915_v36, %v915_v36  ;;  %1600 = vst.msk [vmem:[#allocation2 + $0x4a] sm:$0x3] %vm590_vm0, %v915_v36  ;;  %1595 = vst.msk [vmem:[#allocation2 + $0x40] sm:$0x3] %vm590_vm0, %v890_v39  ;;  %v1910_v48 = vld [vmem:[#allocation2 + $0x28] sm:$0x3]  ;;  %v406_v51 = vadd.f32 %v8039_v62, %v405_v42  ;;  %v6992_v52 = vpop.f32.mrf.mxu0 }
 0x147   :  { %v873_v47 = vcombine.high %v871_v40, %v871_v40  ;;  %1589 = vst.msk [vmem:[#allocation2 + $0x30] sm:$0x3] %vm590_vm0, %v872_v41  ;;  %1590 = vst.msk [vmem:[#allocation2 + $0x32] sm:$0x3] %vm590_vm0, %v871_v40  ;;  %v1838_v49 = vld [vmem:[#allocation2 + $0x28] sm:$0x3]  ;;  %v905_v54 = vrot.slane %v891_v45, %v8043_v2  ;;  %v906_v55 = vcombine.high %v898_v46, %v898_v46  ;;  %2527 = vrot.lane.b32.xlu0 %v1910_v48, %s7343_s12 }
 0x148   :  { %v561_v50 = vmax.f32 %v411_v38, 0.0  ;;  %v924_v53 = vcombine.high %v922_v43, %v922_v43  ;;  %1601 = vst.msk [vmem:[#allocation2 + $0x4c] sm:$0x3] %vm590_vm0, %v923_v44  ;;  %1602 = vst.msk [vmem:[#allocation2 + $0x4e] sm:$0x3] %vm590_vm0, %v922_v43  ;;  %2385 = vrot.lane.b32.xlu1 %v1838_v49, %s7345_s24  ;;  %v421_v58 = vadd.f32 %v6992_v52, %v8039_v62  ;;  %v415_v59 = vpop.f32.mrf.mxu0  ;;  %v560_v5 = vmax.f32 %v406_v51, 0.0 }
 0x149   :  { %1596 = vst.msk [vmem:[#allocation2 + $0x42] sm:$0x3] %vm590_vm0, %v898_v46  ;;  %1591 = vst.msk [vmem:[#allocation2 + $0x34] sm:$0x3] %vm590_vm0, %v873_v47  ;;  %v907_v60 = vcombine.high %v905_v54, %v905_v54  ;;  %v1911_v63 = vld [vmem:[#allocation2 + $0x2c] sm:$0x3]  ;;  %v416_v21 = vadd.f32 %v8039_v62, %v415_v59 }
 0x14a   :  { %v942_v56 = vcombine.high %v561_v50, %v561_v50  ;;  %v949_v57 = vrot.slane %v561_v50, %v8043_v2  ;;  %1603 = vst.msk [vmem:[#allocation2 + $0x50] sm:$0x3] %vm590_vm0, %v924_v53  ;;  %1597 = vst.msk [vmem:[#allocation2 + $0x44] sm:$0x3] %vm590_vm0, %v906_v55  ;;  %v1908_v1 = vld [vmem:[#allocation2 + $0x20] sm:$0x3]  ;;  %v6995_v7 = vpop.f32.mrf.mxu0  ;;  %v925_v10 = vcombine.high %v560_v5, %v560_v5 }
 0x14b   :  { %1598 = vst.msk [vmem:[#allocation2 + $0x46] sm:$0x3] %vm590_vm0, %v905_v54  ;;  %v563_v6 = vmax.f32 %v421_v58, 0.0  ;;  %1599 = vst.msk [vmem:[#allocation2 + $0x48] sm:$0x3] %vm590_vm0, %v907_v60  ;;  %2523 = vrot.lane.b32.xlu0 %v1908_v1, %s7343_s12  ;;  %v932_v11 = vrot.slane %v560_v5, %v8043_v2  ;;  %v431_v22 = vadd.f32 %v6995_v7, %v8039_v62  ;;  %v562_v32 = vmax.f32 %v416_v21, 0.0 }
 0x14c   :  { %v956_v3 = vrot.slane %v942_v56, %v8043_v2  ;;  %v957_v4 = vcombine.high %v949_v57, %v949_v57  ;;  %1608 = vst.msk [vmem:[#allocation2 + $0x5e] sm:$0x3] %vm590_vm0, %v949_v57  ;;  %2529 = vrot.lane.b32.xlu1 %v1911_v63, %s7343_s12  ;;  %v1982_v8 = vld [vmem:[#allocation2 + $0x3a] sm:$0x3]  ;;  %v425_v13 = vpop.f32.mrf.mxu0  ;;  %v1836_v15 = vld [vmem:[#allocation2 + $0x20] sm:$0x3]  ;;  %v939_v16 = vrot.slane %v925_v10, %v8043_v2 }
 0x14d   :  { %v976_v12 = vcombine.high %v563_v6, %v563_v6  ;;  %v983_v14 = vrot.slane %v563_v6, %v8043_v2  ;;  %v940_v17 = vcombine.high %v932_v11, %v932_v11  ;;  %1604 = vst.msk [vmem:[#allocation2 + $0x56] sm:$0x3] %vm590_vm0, %v932_v11  ;;  %v1767_v23 = vld [vmem:[#allocation2 + $0x3a] sm:$0x3]  ;;  %v426_v26 = vadd.f32 %v8039_v62, %v425_v13  ;;  %v1909_v30 = vld [vmem:[#allocation2 + $0x24] sm:$0x3] }
 0x14e   :  { %v958_v9 = vcombine.high %v956_v3, %v956_v3  ;;  %1609 = vst.msk [vmem:[#allocation2 + $0x60] sm:$0x3] %vm590_vm0, %v957_v4  ;;  %1610 = vst.msk [vmem:[#allocation2 + $0x62] sm:$0x3] %vm590_vm0, %v956_v3  ;;  %v6998_v19 = vpop.f32.mrf.mxu0  ;;  %v941_v24 = vcombine.high %v939_v16, %v939_v16  ;;  %v565_v33 = vmax.f32 %v431_v22, 0.0  ;;  %v185_v40 = vld [vmem:[%s9577_s0 + $0x110] sm:$0xff]  ;;  %v959_v41 = vcombine.high %v562_v32, %v562_v32 }
 0x14f   :  { %v990_v18 = vrot.slane %v976_v12, %v8043_v2  ;;  %2811 = vrot.lane.b32.xlu0 %v1982_v8, %s7345_s24  ;;  %v991_v20 = vcombine.high %v983_v14, %v983_v14  ;;  %1616 = vst.msk [vmem:[#allocation2 + $0x72] sm:$0x3] %vm590_vm0, %v983_v14  ;;  %1605 = vst.msk [vmem:[#allocation2 + $0x58] sm:$0x3] %vm590_vm0, %v940_v17  ;;  %v441_v27 = vadd.f32 %v6998_v19, %v8039_v62  ;;  %v1946_v34 = vld [vmem:[#allocation2 + $0x3c] sm:$0x3] }
 0x150   :  { %1611 = vst.msk [vmem:[#allocation2 + $0x64] sm:$0x3] %vm590_vm0, %v958_v9  ;;  %2381 = vrot.lane.b32.xlu1 %v1836_v15, %s7345_s24  ;;  %1606 = vst.msk [vmem:[#allocation2 + $0x5a] sm:$0x3] %vm590_vm0, %v939_v16  ;;  %v435_v28 = vpop.f32.mrf.mxu0  ;;  %v564_v35 = vmax.f32 %v426_v26, 0.0  ;;  %v966_v42 = vrot.slane %v562_v32, %v8043_v2  ;;  %v1010_v43 = vcombine.high %v565_v33, %v565_v33  ;;  %7029 = vmatprep.mubr.msk.f32.mxu0 %vm196_vm3, %v185_v40  ;;  %v186_v51 = vld [vmem:[%s9577_s0 + $0x118] sm:$0xff] }
 0x151   :  { %v992_v25 = vcombine.high %v990_v18, %v990_v18  ;;  %1618 = vst.msk [vmem:[#allocation2 + $0x76] sm:$0x3] %vm590_vm0, %v990_v18  ;;  %1617 = vst.msk [vmem:[#allocation2 + $0x74] sm:$0x3] %vm590_vm0, %v991_v20  ;;  %v436_v29 = vadd.f32 %v8039_v62, %v435_v28  ;;  %v567_v36 = vmax.f32 %v441_v27, 0.0  ;;  %v1017_v44 = vrot.slane %v565_v33, %v8043_v2 }
 0x152   :  { %1607 = vst.msk [vmem:[#allocation2 + $0x5c] sm:$0x3] %vm590_vm0, %v941_v24  ;;  %v7001_v31 = vpop.f32.mrf.mxu0  ;;  %v1839_v45 = vld [vmem:[#allocation2 + $0x2c] sm:$0x3]  ;;  %v993_v46 = vcombine.high %v564_v35, %v564_v35  ;;  %v1000_v47 = vrot.slane %v564_v35, %v8043_v2  ;;  %v973_v52 = vrot.slane %v959_v41, %v8043_v2  ;;  %v974_v53 = vcombine.high %v966_v42, %v966_v42  ;;  %v1983_v4 = vld [vmem:[#allocation2 + $0x3e] sm:$0x3] }
 0x153   :  { %1619 = vst.msk [vmem:[#allocation2 + $0x78] sm:$0x3] %vm590_vm0, %v992_v25  ;;  %2103 = vrot.lane.b32.xlu0 %v1767_v23, %s7343_s12  ;;  %v566_v37 = vmax.f32 %v436_v29, 0.0  ;;  %v451_v38 = vadd.f32 %v7001_v31, %v8039_v62  ;;  %v1044_v48 = vcombine.high %v567_v36, %v567_v36  ;;  %v1051_v49 = vrot.slane %v567_v36, %v8043_v2  ;;  %v1837_v5 = vld [vmem:[#allocation2 + $0x24] sm:$0x3]  ;;  %v3853_v25 = vld [vmem:[%s9580_s3 + $0xf8] sm:$0xff] }
 0x154   :  { %2525 = vrot.lane.b32.xlu1 %v1909_v30, %s7343_s12  ;;  %v445_v39 = vpop.f32.mrf.mxu0  ;;  %1612 = vst.msk [vmem:[#allocation2 + $0x66] sm:$0x3] %vm590_vm0, %v966_v42  ;;  %v1024_v54 = vrot.slane %v1010_v43, %v8043_v2  ;;  %1624 = vst.msk [vmem:[#allocation2 + $0x82] sm:$0x3] %vm590_vm0, %v1017_v44  ;;  %v1025_v55 = vcombine.high %v1017_v44, %v1017_v44  ;;  %v1007_v56 = vrot.slane %v993_v46, %v8043_v2  ;;  %v1768_v20 = vld [vmem:[#allocation2 + $0x3e] sm:$0x3] }
 0x155   :  { %v1008_v57 = vcombine.high %v1000_v47, %v1000_v47  ;;  %1620 = vst.msk [vmem:[#allocation2 + $0x7a] sm:$0x3] %vm590_vm0, %v1000_v47  ;;  %v1058_v58 = vrot.slane %v1044_v48, %v8043_v2  ;;  %1632 = vst.msk [vmem:[#allocation2 + $0x96] sm:$0x3] %vm590_vm0, %v1051_v49  ;;  %7030 = vmatmul.mubr.msk.f32.gmra.mxu0 %vm196_vm3, %v186_v51  ;;  %v975_v59 = vcombine.high %v973_v52, %v973_v52  ;;  %v1804_v21 = vld [vmem:[#allocation2 + $0x3c] sm:$0x3] }
 0x156   :  { %v7004_v50 = vpop.f32.mrf.mxu0  ;;  %1613 = vst.msk [vmem:[#allocation2 + $0x68] sm:$0x3] %vm590_vm0, %v974_v53  ;;  %1614 = vst.msk [vmem:[#allocation2 + $0x6a] sm:$0x3] %vm590_vm0, %v973_v52  ;;  %v1026_v60 = vcombine.high %v1024_v54, %v1024_v54  ;;  %v1059_v63 = vcombine.high %v1051_v49, %v1051_v49  ;;  %v1027_v1 = vcombine.high %v566_v37, %v566_v37  ;;  %v569_v9 = vmax.f32 %v451_v38, 0.0  ;;  %v3837_v29 = vld [vmem:[%s9580_s3 + $0x78] sm:$0xff] }
 0x157   :  { %2387 = vrot.lane.b32.xlu0 %v1839_v45, %s7345_s24  ;;  %1626 = vst.msk [vmem:[#allocation2 + $0x86] sm:$0x3] %vm590_vm0, %v1024_v54  ;;  %1625 = vst.msk [vmem:[#allocation2 + $0x84] sm:$0x3] %vm590_vm0, %v1025_v55  ;;  %v1009_v6 = vcombine.high %v1007_v56, %v1007_v56  ;;  %v1060_v7 = vcombine.high %v1058_v58, %v1058_v58  ;;  %v1034_v8 = vrot.slane %v566_v37, %v8043_v2  ;;  %v1805_v37 = vld [vmem:[#allocation2 + $0x40] sm:$0x3]  ;;  %v8197_v45 = vpop.permute.xlu0 %2091 }
 0x158   :  { %2669 = vrot.lane.b32.xlu1 %v1946_v34, %s7344_s17  ;;  %v455_v3 = vpop.f32.mrf.mxu0  ;;  %1621 = vst.msk [vmem:[#allocation2 + $0x7c] sm:$0x3] %vm590_vm0, %v1008_v57  ;;  %1622 = vst.msk [vmem:[#allocation2 + $0x7e] sm:$0x3] %vm590_vm0, %v1007_v56  ;;  %v1041_v10 = vrot.slane %v1027_v1, %v8043_v2  ;;  %v446_v11 = vadd.f32 %v8039_v62, %v445_v39  ;;  %v461_v12 = vadd.f32 %v7004_v50, %v8039_v62  ;;  %v1947_v38 = vld [vmem:[#allocation2 + $0x40] sm:$0x3] }
 0x159   :  { %1634 = vst.msk [vmem:[#allocation2 + $0x9a] sm:$0x3] %vm590_vm0, %v1058_v58  ;;  %1615 = vst.msk [vmem:[#allocation2 + $0x6c] sm:$0x3] %vm590_vm0, %v975_v59  ;;  %v1042_v13 = vcombine.high %v1034_v8, %v1034_v8  ;;  %v1078_v14 = vcombine.high %v569_v9, %v569_v9  ;;  %v1085_v15 = vrot.slane %v569_v9, %v8043_v2  ;;  %6774 = vmatprep.subr.mxu1 %v3853_v25  ;;  %v1840_v46 = vld [vmem:[#allocation2 + $0x30] sm:$0x3] }
 0x15a   :  { %1627 = vst.msk [vmem:[#allocation2 + $0x88] sm:$0x3] %vm590_vm0, %v1026_v60  ;;  %1633 = vst.msk [vmem:[#allocation2 + $0x98] sm:$0x3] %vm590_vm0, %v1059_v63  ;;  %v456_v16 = vadd.f32 %v8039_v62, %v455_v3  ;;  %v1043_v17 = vcombine.high %v1041_v10, %v1041_v10  ;;  %v568_v18 = vmax.f32 %v446_v11, 0.0  ;;  %v571_v19 = vmax.f32 %v461_v12, 0.0  ;;  %6775 = vmatpush3.msra.mxu1 %v3837_v29  ;;  %v7007_v52 = vpop.f32.mrf.mxu0 }
 0x15b   :  { %2383 = vrot.lane.b32.xlu0 %v1837_v5, %s7345_s24  ;;  %1623 = vst.msk [vmem:[#allocation2 + $0x80] sm:$0x3] %vm590_vm0, %v1009_v6  ;;  %1635 = vst.msk [vmem:[#allocation2 + $0x9c] sm:$0x3] %vm590_vm0, %v1060_v7  ;;  %v1092_v22 = vrot.slane %v1078_v14, %v8043_v2  ;;  %v1093_v23 = vcombine.high %v1085_v15, %v1085_v15  ;;  %v1912_v47 = vld [vmem:[#allocation2 + $0x30] sm:$0x3]  ;;  %v471_v55 = vadd.f32 %v7007_v52, %v8039_v62  ;;  %v8219_v56 = vpop.permute.xlu0 %2093 }
 0x15c   :  { %2813 = vrot.lane.b32.xlu1 %v1983_v4, %s7345_s24  ;;  %1628 = vst.msk [vmem:[#allocation2 + $0x8e] sm:$0x3] %vm590_vm0, %v1034_v8  ;;  %1630 = vst.msk [vmem:[#allocation2 + $0x92] sm:$0x3] %vm590_vm0, %v1041_v10  ;;  %v570_v24 = vmax.f32 %v456_v16, 0.0  ;;  %v1061_v26 = vcombine.high %v568_v18, %v568_v18  ;;  %v1068_v27 = vrot.slane %v568_v18, %v8043_v2  ;;  %v3852_v49 = vld [vmem:[%s9580_s3 + $0xf0] sm:$0xff]  ;;  %v465_v58 = vpop.f32.mrf.mxu0 }
 0x15d   :  { %1629 = vst.msk [vmem:[#allocation2 + $0x90] sm:$0x3] %vm590_vm0, %v1042_v13  ;;  %1640 = vst.msk [vmem:[#allocation2 + $0xaa] sm:$0x3] %vm590_vm0, %v1085_v15  ;;  %v1112_v28 = vcombine.high %v571_v19, %v571_v19  ;;  %v1094_v30 = vcombine.high %v1092_v22, %v1092_v22  ;;  %v1119_v31 = vrot.slane %v571_v19, %v8043_v2  ;;  %v1986_v48 = vld [vmem:[#allocation2 + $0x4a] sm:$0x3]  ;;  %6776 = vmatprep.subr.mxu1 %v3852_v49 }
 0x15e   :  { %1631 = vst.msk [vmem:[#allocation2 + $0x94] sm:$0x3] %vm590_vm0, %v1043_v17  ;;  %1641 = vst.msk [vmem:[#allocation2 + $0xac] sm:$0x3] %vm590_vm0, %v1093_v23  ;;  %v1095_v32 = vcombine.high %v570_v24, %v570_v24  ;;  %v1102_v33 = vrot.slane %v570_v24, %v8043_v2  ;;  %v1075_v34 = vrot.slane %v1061_v26, %v8043_v2  ;;  %v3836_v50 = vld [vmem:[%s9580_s3 + $0x70] sm:$0xff]  ;;  %v3851_v51 = vld [vmem:[%s9580_s3 + $0xe8] sm:$0xff]  ;;  %v7010_v3 = vpop.f32.mrf.mxu0 }
 0x15f   :  { %2247 = vrot.lane.b32.xlu0 %v1804_v21, %s7344_s17  ;;  %1642 = vst.msk [vmem:[#allocation2 + $0xae] sm:$0x3] %vm590_vm0, %v1092_v22  ;;  %v1076_v35 = vcombine.high %v1068_v27, %v1068_v27  ;;  %1636 = vst.msk [vmem:[#allocation2 + $0x9e] sm:$0x3] %vm590_vm0, %v1068_v27  ;;  %v1126_v36 = vrot.slane %v1112_v28, %v8043_v2  ;;  %v1127_v39 = vcombine.high %v1119_v31, %v1119_v31  ;;  %v1913_v53 = vld [vmem:[#allocation2 + $0x34] sm:$0x3]  ;;  %v8241_v15 = vpop.permute.xlu0 %2235 }
 0x160   :  { %2105 = vrot.lane.b32.xlu1 %v1768_v20, %s7343_s12  ;;  %1643 = vst.msk [vmem:[#allocation2 + $0xb0] sm:$0x3] %vm590_vm0, %v1094_v30  ;;  %1648 = vst.msk [vmem:[#allocation2 + $0xba] sm:$0x3] %vm590_vm0, %v1119_v31  ;;  %v1109_v40 = vrot.slane %v1095_v32, %v8043_v2  ;;  %v1110_v41 = vcombine.high %v1102_v33, %v1102_v33  ;;  %v1077_v42 = vcombine.high %v1075_v34, %v1075_v34  ;;  %v3835_v54 = vld [vmem:[%s9580_s3 + $0x68] sm:$0xff]  ;;  %v3850_v57 = vld [vmem:[%s9580_s3 + $0xe0] sm:$0xff] }
 0x161   :  { %1644 = vst.msk [vmem:[#allocation2 + $0xb2] sm:$0x3] %vm590_vm0, %v1102_v33  ;;  %1637 = vst.msk [vmem:[#allocation2 + $0xa0] sm:$0x3] %vm590_vm0, %v1076_v35  ;;  %v1128_v43 = vcombine.high %v1126_v36, %v1126_v36  ;;  %6777 = vmatpush3.msra.mxu1 %v3836_v50  ;;  %v1950_v59 = vld [vmem:[#allocation2 + $0x4c] sm:$0x3]  ;;  %v466_v63 = vadd.f32 %v8039_v62, %v465_v58  ;;  %v481_v9 = vadd.f32 %v7010_v3, %v8039_v62  ;;  %v475_v58 = vpop.f32.mrf.mxu0 }
 0x162   :  { %1638 = vst.msk [vmem:[#allocation2 + $0xa2] sm:$0x3] %vm590_vm0, %v1075_v34  ;;  %1650 = vst.msk [vmem:[#allocation2 + $0xbe] sm:$0x3] %vm590_vm0, %v1126_v36  ;;  %v1111_v44 = vcombine.high %v1109_v40, %v1109_v40  ;;  %6778 = vmatprep.subr.mxu1 %v3851_v51  ;;  %v573_v60 = vmax.f32 %v471_v55, 0.0  ;;  %v3834_v1 = vld [vmem:[%s9580_s3 + $0x60] sm:$0xff] }
 0x163   :  { %2671 = vrot.lane.b32.xlu0 %v1947_v38, %s7344_s17  ;;  %1649 = vst.msk [vmem:[#allocation2 + $0xbc] sm:$0x3] %vm590_vm0, %v1127_v39  ;;  %1645 = vst.msk [vmem:[#allocation2 + $0xb4] sm:$0x3] %vm590_vm0, %v1110_v41  ;;  %6779 = vmatpush3.msra.mxu1 %v3835_v54  ;;  %v1771_v4 = vld [vmem:[#allocation2 + $0x4a] sm:$0x3]  ;;  %v8273_v34 = vpop.permute.xlu0 %2239  ;;  %v7013_v3 = vpop.f32.mrf.mxu0 }
 0x164   :  { %2249 = vrot.lane.b32.xlu1 %v1805_v37, %s7344_s17  ;;  %1646 = vst.msk [vmem:[#allocation2 + $0xb6] sm:$0x3] %vm590_vm0, %v1109_v40  ;;  %1639 = vst.msk [vmem:[#allocation2 + $0xa4] sm:$0x3] %vm590_vm0, %v1077_v42  ;;  %6780 = vmatprep.subr.mxu1 %v3850_v57  ;;  %v3849_v5 = vld [vmem:[%s9580_s3 + $0xd8] sm:$0xff]  ;;  %v1146_v6 = vcombine.high %v573_v60, %v573_v60  ;;  %v1153_v7 = vrot.slane %v573_v60, %v8043_v2  ;;  %v572_v8 = vmax.f32 %v466_v63, 0.0 }
 0x165   :  { %1651 = vst.msk [vmem:[#allocation2 + $0xc0] sm:$0x3] %vm590_vm0, %v1128_v43  ;;  %1647 = vst.msk [vmem:[#allocation2 + $0xb8] sm:$0x3] %vm590_vm0, %v1111_v44  ;;  %v3833_v10 = vld [vmem:[%s9580_s3 + $0x58] sm:$0xff]  ;;  %6781 = vmatpush3.msra.mxu1 %v3834_v1  ;;  %v3848_v16 = vld [vmem:[%s9580_s3 + $0xd0] sm:$0xff]  ;;  %v476_v63 = vadd.f32 %v8039_v62, %v475_v58 }
 0x166   :  { %v1160_v11 = vrot.slane %v1146_v6, %v8043_v2  ;;  %v1161_v12 = vcombine.high %v1153_v7, %v1153_v7  ;;  %1656 = vst.msk [vmem:[#allocation2 + $0xce] sm:$0x3] %vm590_vm0, %v1153_v7  ;;  %v1129_v13 = vcombine.high %v572_v8, %v572_v8  ;;  %v1136_v14 = vrot.slane %v572_v8, %v8043_v2  ;;  %v1987_v18 = vld [vmem:[#allocation2 + $0x4e] sm:$0x3]  ;;  %v1984_v19 = vld [vmem:[#allocation2 + $0x42] sm:$0x3] }
 0x167   :  { %2531 = vrot.lane.b32.xlu0 %v1912_v47, %s7343_s12  ;;  %6782 = vmatprep.subr.mxu1 %v3849_v5  ;;  %v575_v17 = vmax.f32 %v481_v9, 0.0  ;;  %v3832_v21 = vld [vmem:[%s9580_s3 + $0x50] sm:$0xff]  ;;  %v3847_v24 = vld [vmem:[%s9580_s3 + $0xc8] sm:$0xff]  ;;  %v1769_v32 = vld [vmem:[#allocation2 + $0x42] sm:$0x3]  ;;  %v8292_v42 = vpop.permute.xlu0 %2667  ;;  %v574_v5 = vmax.f32 %v476_v63, 0.0  ;;  %v491_v6 = vadd.f32 %v7013_v3, %v8039_v62  ;;  %v485_v9 = vpop.f32.mrf.mxu0 }
 0x168   :  { %2389 = vrot.lane.b32.xlu1 %v1840_v46, %s7345_s24  ;;  %6783 = vmatpush3.msra.mxu1 %v3833_v10  ;;  %v1162_v20 = vcombine.high %v1160_v11, %v1160_v11  ;;  %1657 = vst.msk [vmem:[#allocation2 + $0xd0] sm:$0x3] %vm590_vm0, %v1161_v12  ;;  %1658 = vst.msk [vmem:[#allocation2 + $0xd2] sm:$0x3] %vm590_vm0, %v1160_v11  ;;  %v1143_v22 = vrot.slane %v1129_v13, %v8043_v2  ;;  %v3831_v28 = vld [vmem:[%s9580_s3 + $0x48] sm:$0xff]  ;;  %v3846_v33 = vld [vmem:[%s9580_s3 + $0xc0] sm:$0xff] }
 0x169   :  { %v1144_v23 = vcombine.high %v1136_v14, %v1136_v14  ;;  %1652 = vst.msk [vmem:[#allocation2 + $0xc6] sm:$0x3] %vm590_vm0, %v1136_v14  ;;  %v1180_v25 = vcombine.high %v575_v17, %v575_v17  ;;  %v1187_v26 = vrot.slane %v575_v17, %v8043_v2  ;;  %6784 = vmatprep.subr.mxu1 %v3848_v16  ;;  %v1772_v31 = vld [vmem:[#allocation2 + $0x4e] sm:$0x3]  ;;  %v3830_v36 = vld [vmem:[%s9580_s3 + $0x40] sm:$0xff]  ;;  %v3845_v37 = vld [vmem:[%s9580_s3 + $0xb8] sm:$0xff] }
 0x16a   :  { %1659 = vst.msk [vmem:[#allocation2 + $0xd4] sm:$0x3] %vm590_vm0, %v1162_v20  ;;  %v1145_v27 = vcombine.high %v1143_v22, %v1143_v22  ;;  %1654 = vst.msk [vmem:[#allocation2 + $0xca] sm:$0x3] %vm590_vm0, %v1143_v22  ;;  %6785 = vmatpush3.msra.mxu1 %v3832_v21  ;;  %v1948_v38 = vld [vmem:[#allocation2 + $0x44] sm:$0x3]  ;;  %v1163_v12 = vcombine.high %v574_v5, %v574_v5  ;;  %v1170_v13 = vrot.slane %v574_v5, %v8043_v2 }
 0x16b   :  { %2819 = vrot.lane.b32.xlu0 %v1986_v48, %s7345_s24  ;;  %1653 = vst.msk [vmem:[#allocation2 + $0xc8] sm:$0x3] %vm590_vm0, %v1144_v23  ;;  %v1194_v29 = vrot.slane %v1180_v25, %v8043_v2  ;;  %v1195_v30 = vcombine.high %v1187_v26, %v1187_v26  ;;  %1664 = vst.msk [vmem:[#allocation2 + $0xe2] sm:$0x3] %vm590_vm0, %v1187_v26  ;;  %6786 = vmatprep.subr.mxu1 %v3847_v24  ;;  %v1808_v39 = vld [vmem:[#allocation2 + $0x4c] sm:$0x3] }
 0x16c   :  { %2533 = vrot.lane.b32.xlu1 %v1913_v53, %s7343_s12  ;;  %1655 = vst.msk [vmem:[#allocation2 + $0xcc] sm:$0x3] %vm590_vm0, %v1145_v27  ;;  %6787 = vmatpush3.msra.mxu1 %v3831_v28  ;;  %v3829_v40 = vld [vmem:[%s9580_s3 + $0x38] sm:$0xff]  ;;  %v3844_v41 = vld [vmem:[%s9580_s3 + $0xb0] sm:$0xff]  ;;  %v1985_v44 = vld [vmem:[#allocation2 + $0x46] sm:$0x3]  ;;  %v8313_v53 = vpop.permute.xlu0 %2379  ;;  %v486_v16 = vadd.f32 %v8039_v62, %v485_v9  ;;  %v1177_v20 = vrot.slane %v1163_v12, %v8043_v2 }
 0x16d   :  { %v1196_v35 = vcombine.high %v1194_v29, %v1194_v29  ;;  %1665 = vst.msk [vmem:[#allocation2 + $0xe4] sm:$0x3] %vm590_vm0, %v1195_v30  ;;  %1666 = vst.msk [vmem:[#allocation2 + $0xe6] sm:$0x3] %vm590_vm0, %v1194_v29  ;;  %6788 = vmatprep.subr.mxu1 %v3846_v33  ;;  %v3828_v43 = vld [vmem:[%s9580_s3 + $0x30] sm:$0xff]  ;;  %v3843_v47 = vld [vmem:[%s9580_s3 + $0xa8] sm:$0xff]  ;;  %v1178_v21 = vcombine.high %v1170_v13, %v1170_v13 }
 0x16e   :  { %6789 = vmatpush3.msra.mxu1 %v3830_v36  ;;  %v1806_v46 = vld [vmem:[#allocation2 + $0x44] sm:$0x3]  ;;  %v3827_v48 = vld [vmem:[%s9580_s3 + $0x28] sm:$0xff]  ;;  %v1770_v50 = vld [vmem:[#allocation2 + $0x46] sm:$0x3]  ;;  %v577_v14 = vmax.f32 %v491_v6, 0.0  ;;  %v1179_v26 = vcombine.high %v1177_v20, %v1177_v20 }
 0x16f   :  { %2111 = vrot.lane.b32.xlu0 %v1771_v4, %s7343_s12  ;;  %1667 = vst.msk [vmem:[#allocation2 + $0xe8] sm:$0x3] %vm590_vm0, %v1196_v35  ;;  %6790 = vmatprep.subr.mxu1 %v3845_v37  ;;  %v3842_v49 = vld [vmem:[%s9580_s3 + $0xa0] sm:$0xff]  ;;  %v1949_v51 = vld [vmem:[#allocation2 + $0x48] sm:$0x3]  ;;  %v3841_v54 = vld [vmem:[%s9580_s3 + $0x98] sm:$0xff] }
 0x170   :  { %2677 = vrot.lane.b32.xlu1 %v1950_v59, %s7344_s17  ;;  %6791 = vmatpush3.msra.mxu1 %v3829_v40  ;;  %v3826_v52 = vld [vmem:[%s9580_s3 + $0x20] sm:$0xff]  ;;  %v3825_v57 = vld [vmem:[%s9580_s3 + $0x18] sm:$0xff]  ;;  %v1809_v59 = vld [vmem:[#allocation2 + $0x50] sm:$0x3]  ;;  %v8331_v7 = vpop.permute.xlu0 %2099  ;;  %1660 = vst.msk [vmem:[#allocation2 + $0xd6] sm:$0x3] %vm590_vm0, %v1170_v13  ;;  %v1214_v22 = vcombine.high %v577_v14, %v577_v14  ;;  %v1221_v23 = vrot.slane %v577_v14, %v8043_v2 }
 0x171   :  { %6792 = vmatprep.subr.mxu1 %v3844_v41  ;;  %v1916_v55 = vld [vmem:[#allocation2 + $0x60] sm:$0x3]  ;;  %v3840_v60 = vld [vmem:[%s9580_s3 + $0x90] sm:$0xff]  ;;  %v1914_v4 = vld [vmem:[#allocation2 + $0x58] sm:$0x3]  ;;  %v576_v25 = vmax.f32 %v486_v16, 0.0 }
 0x172   :  { %6793 = vmatpush3.msra.mxu1 %v3828_v43  ;;  %v3824_v1 = vld [vmem:[%s9580_s3 + $0x10] sm:$0xff]  ;;  %v3839_v8 = vld [vmem:[%s9580_s3 + $0x88] sm:$0xff]  ;;  %v3838_v17 = vld [vmem:[%s9580_s3 + $0x80] sm:$0xff]  ;;  %1661 = vst.msk [vmem:[#allocation2 + $0xd8] sm:$0x3] %vm590_vm0, %v1178_v21  ;;  %v1228_v27 = vrot.slane %v1214_v22, %v8043_v2  ;;  %v1229_v28 = vcombine.high %v1221_v23, %v1221_v23  ;;  %v8377_v43 = vpop.permute.xlu1 %2095 }
 0x173   :  { %2815 = vrot.lane.b32.xlu0 %v1984_v19, %s7345_s24  ;;  %6794 = vmatprep.subr.mxu1 %v3843_v47  ;;  %v1807_v10 = vld [vmem:[#allocation2 + $0x48] sm:$0x3]  ;;  %v1988_v19 = vld [vmem:[#allocation2 + $0x72] sm:$0x3]  ;;  %v3822_v24 = vld [vmem:[%s9580_s3] sm:$0xff]  ;;  %v1197_v30 = vcombine.high %v576_v25, %v576_v25 }
 0x174   :  { %2821 = vrot.lane.b32.xlu1 %v1987_v18, %s7345_s24  ;;  %6795 = vmatpush3.msra.mxu1 %v3827_v48  ;;  %v3823_v11 = vld [vmem:[%s9580_s3 + $0x8] sm:$0xff]  ;;  %v1844_v18 = vld [vmem:[#allocation2 + $0x60] sm:$0x3]  ;;  %1662 = vst.msk [vmem:[#allocation2 + $0xda] sm:$0x3] %vm590_vm0, %v1177_v20  ;;  %v8358_v29 = vpop.permute.xlu0 %2243 }
 0x175   :  { %6796 = vmatprep.subr.mxu1 %v3842_v49  ;;  %1672 = vst.msk [vmem:[#allocation2 + $0xf2] sm:$0x3] %vm590_vm0, %v1221_v23  ;;  %1663 = vst.msk [vmem:[#allocation2 + $0xdc] sm:$0x3] %vm590_vm0, %v1179_v26  ;;  %v1211_v33 = vrot.slane %v1197_v30, %v8043_v2  ;;  %v1842_v36 = vld [vmem:[#allocation2 + $0x58] sm:$0x3] }
 0x176   :  { %6797 = vmatpush3.msra.mxu1 %v3826_v52  ;;  %1673 = vst.msk [vmem:[#allocation2 + $0xf4] sm:$0x3] %vm590_vm0, %v1229_v28  ;;  %1674 = vst.msk [vmem:[#allocation2 + $0xf6] sm:$0x3] %vm590_vm0, %v1228_v27  ;;  %v1845_v37 = vld [vmem:[#allocation2 + $0x64] sm:$0x3] }
 0x177   :  { %2107 = vrot.lane.b32.xlu0 %v1769_v32, %s7343_s12  ;;  %6798 = vmatprep.subr.mxu1 %v3841_v54  ;;  %v1230_v32 = vcombine.high %v1228_v27, %v1228_v27  ;;  %1670 = vst.msk [vmem:[#allocation2 + $0xee] sm:$0x3] %vm590_vm0, %v1211_v33  ;;  %v1917_v41 = vld [vmem:[#allocation2 + $0x64] sm:$0x3]  ;;  %v1952_v48 = vld [vmem:[#allocation2 + $0x74] sm:$0x3] }
 0x178   :  { %2113 = vrot.lane.b32.xlu1 %v1772_v31, %s7343_s12  ;;  %6799 = vmatpush3.msra.mxu1 %v3825_v57  ;;  %v1204_v31 = vrot.slane %v576_v25, %v8043_v2  ;;  %v8372_v40 = vpop.permute.xlu0 %2679  ;;  %v1810_v49 = vld [vmem:[#allocation2 + $0x74] sm:$0x3]  ;;  %v1989_v52 = vld [vmem:[#allocation2 + $0x76] sm:$0x3]  ;;  %v1918_v54 = vld [vmem:[#allocation2 + $0x68] sm:$0x3] }
 0x179   :  { %6800 = vmatprep.subr.mxu1 %v3840_v60  ;;  %1675 = vst.msk [vmem:[#allocation2 + $0xf8] sm:$0x3] %vm590_vm0, %v1230_v32  ;;  %v1953_v60 = vld [vmem:[#allocation2 + $0x78] sm:$0x3]  ;;  %v1992_v3 = vld [vmem:[#allocation2 + $0x82] sm:$0x3] }
 0x17a   :  { %6801 = vmatpush3.msra.mxu1 %v3824_v1  ;;  %v1212_v35 = vcombine.high %v1204_v31, %v1204_v31  ;;  %1668 = vst.msk [vmem:[#allocation2 + $0xea] sm:$0x3] %vm590_vm0, %v1204_v31  ;;  %v1777_v13 = vld [vmem:[#allocation2 + $0x82] sm:$0x3]  ;;  %v1990_v21 = vld [vmem:[#allocation2 + $0x7a] sm:$0x3] }
 0x17b   :  { %2255 = vrot.lane.b32.xlu0 %v1808_v39, %s7344_s17  ;;  %6802 = vmatprep.subr.mxu1 %v3839_v8  ;;  %v1773_v39 = vld [vmem:[#allocation2 + $0x72] sm:$0x3]  ;;  %v1846_v8 = vld [vmem:[#allocation2 + $0x68] sm:$0x3]  ;;  %v1956_v27 = vld [vmem:[#allocation2 + $0x84] sm:$0x3] }
 0x17c   :  { %2673 = vrot.lane.b32.xlu1 %v1948_v38, %s7344_s17  ;;  %6803 = vmatpush3.msra.mxu1 %v3823_v11  ;;  %v1213_v38 = vcombine.high %v1211_v33, %v1211_v33  ;;  %1669 = vst.msk [vmem:[#allocation2 + $0xec] sm:$0x3] %vm590_vm0, %v1212_v35  ;;  %v8381_v47 = vpop.permute.xlu0 %2391  ;;  %v1775_v30 = vld [vmem:[#allocation2 + $0x7a] sm:$0x3]  ;;  %v1993_v33 = vld [vmem:[#allocation2 + $0x86] sm:$0x3] }
 0x17d   :  { %6804 = vmatprep.subr.mxu1 %v3838_v17  ;;  %v1814_v35 = vld [vmem:[#allocation2 + $0x84] sm:$0x3] }
 0x17e   :  { %6805 = vmatpush3.msra.mxu1 %v3822_v24  ;;  %1671 = vst.msk [vmem:[#allocation2 + $0xf0] sm:$0x3] %vm590_vm0, %v1213_v38  ;;  %v1919_v24 = vld [vmem:[#allocation2 + $0x6c] sm:$0x3] }
 0x17f   :  { %2251 = vrot.lane.b32.xlu0 %v1806_v46, %s7344_s17  ;;  %7032 = vmatprep.subr.mxu1 %v7342_v0  ;;  %v1843_v46 = vld [vmem:[#allocation2 + $0x5c] sm:$0x3] }
 0x180   :  { %2817 = vrot.lane.b32.xlu1 %v1985_v44, %s7345_s24  ;;  %v1915_v44 = vld [vmem:[#allocation2 + $0x5c] sm:$0x3] }
 0x183   :  { %2675 = vrot.lane.b32.xlu0 %v1949_v51, %s7344_s17  ;;  %v8387_v51 = vpop.permute.xlu0 %2691 }
 0x184   :  { %2109 = vrot.lane.b32.xlu1 %v1770_v50, %s7343_s12  ;;  %v8383_v50 = vpop.permute.xlu1 %2097 }
 0x187   :  { %2539 = vrot.lane.b32.xlu0 %v1916_v55, %s7343_s12  ;;  %v7016_v55 = vpop.f32.mrf.mxu0  ;;  %v8396_v63 = vpop.permute.xlu0 %2403 }
 0x188   :  { %2257 = vrot.lane.b32.xlu1 %v1809_v59, %s7344_s17  ;;  %v8391_v57 = vpop.permute.xlu1 %2237  ;;  %v501_v58 = vadd.f32 %v7016_v55, %v8039_v62  ;;  %v1774_v59 = vld [vmem:[#allocation2 + $0x76] sm:$0x3] }
 0x189   :  { %v495_v6 = vpop.f32.mrf.mxu0 }
 0x18a   :  { %v579_v1 = vmax.f32 %v501_v58, 0.0  ;;  %v496_v9 = vadd.f32 %v8039_v62, %v495_v6  ;;  %v1811_v62 = vld [vmem:[#allocation2 + $0x78] sm:$0x3] }
 0x18b   :  { %2535 = vrot.lane.b32.xlu0 %v1914_v4, %s7343_s12  ;;  %v8406_v16 = vpop.permute.xlu0 %2703 }
 0x18c   :  { %2253 = vrot.lane.b32.xlu1 %v1807_v10, %s7344_s17  ;;  %v1248_v4 = vcombine.high %v579_v1, %v579_v1  ;;  %v1255_v5 = vrot.slane %v579_v1, %v8043_v2  ;;  %v8400_v10 = vpop.permute.xlu1 %2241  ;;  %v578_v14 = vmax.f32 %v496_v9, 0.0  ;;  %v1955_v1 = vld [vmem:[#allocation2 + $0x80] sm:$0x3] }
 0x18e   :  { %v1262_v11 = vrot.slane %v1248_v4, %v8043_v2  ;;  %v1263_v12 = vcombine.high %v1255_v5, %v1255_v5  ;;  %1680 = vst.msk [vmem:[#allocation2 + $0x106] sm:$0x3] %vm590_vm0, %v1255_v5  ;;  %v1922_v4 = vld [vmem:[#allocation2 + $0x98] sm:$0x3] }
 0x18f   :  { %2823 = vrot.lane.b32.xlu0 %v1988_v19, %s7345_s24  ;;  %v1238_v19 = vrot.slane %v578_v14, %v8043_v2  ;;  %v8422_v26 = vpop.permute.xlu0 %2415 }
 0x190   :  { %2397 = vrot.lane.b32.xlu1 %v1844_v18, %s7345_s24  ;;  %v1264_v17 = vcombine.high %v1262_v11, %v1262_v11  ;;  %1681 = vst.msk [vmem:[#allocation2 + $0x108] sm:$0x3] %vm590_vm0, %v1263_v12  ;;  %1682 = vst.msk [vmem:[#allocation2 + $0x10a] sm:$0x3] %vm590_vm0, %v1262_v11  ;;  %v1231_v18 = vcombine.high %v578_v14, %v578_v14  ;;  %v8411_v20 = vpop.permute.xlu1 %2101  ;;  %v1920_v11 = vld [vmem:[#allocation2 + $0x90] sm:$0x3] }
 0x191   :  { %v1246_v23 = vcombine.high %v1238_v19, %v1238_v19  ;;  %1676 = vst.msk [vmem:[#allocation2 + $0xfe] sm:$0x3] %vm590_vm0, %v1238_v19 }
 0x192   :  { %1683 = vst.msk [vmem:[#allocation2 + $0x10c] sm:$0x3] %vm590_vm0, %v1264_v17  ;;  %v1245_v22 = vrot.slane %v1231_v18, %v8043_v2  ;;  %v1776_v17 = vld [vmem:[#allocation2 + $0x7e] sm:$0x3] }
 0x193   :  { %2399 = vrot.lane.b32.xlu0 %v1845_v37, %s7345_s24  ;;  %1677 = vst.msk [vmem:[#allocation2 + $0x100] sm:$0x3] %vm590_vm0, %v1246_v23  ;;  %v8435_v37 = vld [vmem:[#allocation7] ss:$0 sm:$0xff] }
 0x194   :  { %2393 = vrot.lane.b32.xlu1 %v1842_v36, %s7345_s24  ;;  %v1247_v25 = vcombine.high %v1245_v22, %v1245_v22  ;;  %1678 = vst.msk [vmem:[#allocation2 + $0x102] sm:$0x3] %vm590_vm0, %v1245_v22  ;;  %v8425_v28 = vpop.permute.xlu1 %2245  ;;  %v7019_v36 = vpop.f32.mrf.mxu0 }
 0x195   :  { %v511_v38 = vadd.f32 %v8435_v37, %v7019_v36 }
 0x196   :  { %1679 = vst.msk [vmem:[#allocation2 + $0x104] sm:$0x3] %vm590_vm0, %v1247_v25  ;;  %v505_v9 = vpop.f32.mrf.mxu0 }
 0x197   :  { %2115 = vrot.lane.b32.xlu0 %v1773_v39, %s7343_s12  ;;  %v506_v12 = vadd.f32 %v8435_v37, %v505_v9 }
 0x198   :  { %2541 = vrot.lane.b32.xlu1 %v1917_v41, %s7343_s12  ;;  %v7022_v18 = vpop.f32.mrf.mxu0 }
 0x199   :  { %v521_v19 = vadd.f32 %v8435_v37, %v7022_v18 }
 0x19b   :  { %2395 = vrot.lane.b32.xlu0 %v1843_v46, %s7345_s24  ;;  %v1778_v46 = vld [vmem:[#allocation2 + $0x86] sm:$0x3] }
 0x19c   :  { %2537 = vrot.lane.b32.xlu1 %v1915_v44, %s7343_s12  ;;  %v581_v44 = vmax.f32 %v511_v38, 0.0 }
 0x19f   :  { %2259 = vrot.lane.b32.xlu0 %v1810_v49, %s7344_s17  ;;  %v1282_v49 = vcombine.high %v581_v44, %v581_v44 }
 0x1a0   :  { %2681 = vrot.lane.b32.xlu1 %v1952_v48, %s7344_s17  ;;  %v1812_v48 = vld [vmem:[#allocation2 + $0x7c] sm:$0x3] }
 0x1a1   :  { %v1296_v58 = vrot.slane %v1282_v49, %v8043_v2  ;;  %v1779_v49 = vld [vmem:[#allocation2 + $0xaa] sm:$0x3] }
 0x1a3   :  { %2543 = vrot.lane.b32.xlu0 %v1918_v54, %s7343_s12  ;;  %1690 = vst.msk [vmem:[#allocation2 + $0x11e] sm:$0x3] %vm590_vm0, %v1296_v58 }
 0x1a4   :  { %2825 = vrot.lane.b32.xlu1 %v1989_v52, %s7345_s24  ;;  %v1289_v52 = vrot.slane %v581_v44, %v8043_v2 }
 0x1a6   :  { %1688 = vst.msk [vmem:[#allocation2 + $0x11a] sm:$0x3] %vm590_vm0, %v1289_v52 }
 0x1a7   :  { %2683 = vrot.lane.b32.xlu0 %v1953_v60, %s7344_s17  ;;  %v1954_v60 = vld [vmem:[#allocation2 + $0x7c] sm:$0x3] }
 0x1a8   :  { %2117 = vrot.lane.b32.xlu1 %v1774_v59, %s7343_s12  ;;  %v1297_v59 = vcombine.high %v1289_v52, %v1289_v52 }
 0x1aa   :  { %1689 = vst.msk [vmem:[#allocation2 + $0x11c] sm:$0x3] %vm590_vm0, %v1297_v59 }
 0x1ab   :  { %2831 = vrot.lane.b32.xlu0 %v1992_v3, %s7345_s24  ;;  %v1298_v3 = vcombine.high %v1296_v58, %v1296_v58 }
 0x1ac   :  { %2401 = vrot.lane.b32.xlu1 %v1846_v8, %s7345_s24  ;;  %v1991_v8 = vld [vmem:[#allocation2 + $0x7e] sm:$0x3] }
 0x1ad   :  { %1691 = vst.msk [vmem:[#allocation2 + $0x120] sm:$0x3] %vm590_vm0, %v1298_v3 }
 0x1af   :  { %2123 = vrot.lane.b32.xlu0 %v1777_v13, %s7343_s12 }
 0x1b0   :  { %2261 = vrot.lane.b32.xlu1 %v1811_v62, %s7344_s17  ;;  %v580_v62 = vmax.f32 %v506_v12, 0.0  ;;  %v1850_v12 = vld [vmem:[#allocation2 + $0x98] sm:$0x3] }
 0x1b2   :  { %v1265_v22 = vcombine.high %v580_v62, %v580_v62  ;;  %v1272_v23 = vrot.slane %v580_v62, %v8043_v2 }
 0x1b3   :  { %2827 = vrot.lane.b32.xlu0 %v1990_v21, %s7345_s24  ;;  %v1994_v21 = vld [vmem:[#allocation2 + $0xaa] sm:$0x3] }
 0x1b4   :  { %2545 = vrot.lane.b32.xlu1 %v1919_v24, %s7343_s12  ;;  %v515_v24 = vpop.f32.mrf.mxu0  ;;  %v1279_v36 = vrot.slane %v1265_v22, %v8043_v2  ;;  %v1280_v38 = vcombine.high %v1272_v23, %v1272_v23  ;;  %1684 = vst.msk [vmem:[#allocation2 + $0x10e] sm:$0x3] %vm590_vm0, %v1272_v23 }
 0x1b6   :  { %v1281_v52 = vcombine.high %v1279_v36, %v1279_v36  ;;  %1685 = vst.msk [vmem:[#allocation2 + $0x110] sm:$0x3] %vm590_vm0, %v1280_v38  ;;  %1686 = vst.msk [vmem:[#allocation2 + $0x112] sm:$0x3] %vm590_vm0, %v1279_v36  ;;  %v7025_v9 = vpop.f32.mrf.mxu0 }
 0x1b7   :  { %2119 = vrot.lane.b32.xlu0 %v1775_v30, %s7343_s12  ;;  %v583_v30 = vmax.f32 %v521_v19, 0.0  ;;  %v531_v19 = vadd.f32 %v8435_v37, %v7025_v9 }
 0x1b8   :  { %2689 = vrot.lane.b32.xlu1 %v1956_v27, %s7344_s17  ;;  %1687 = vst.msk [vmem:[#allocation2 + $0x114] sm:$0x3] %vm590_vm0, %v1281_v52 }
 0x1b9   :  { %v8429_v31 = vpop.permute.xlu0 %2527  ;;  %v1316_v44 = vcombine.high %v583_v30, %v583_v30 }
 0x1ba   :  { %v8431_v32 = vpop.permute.xlu1 %2385 }
 0x1bb   :  { %2267 = vrot.lane.b32.xlu0 %v1814_v35, %s7344_s17  ;;  %v1815_v35 = vld [vmem:[#allocation2 + $0x88] sm:$0x3] }
 0x1bc   :  { %2833 = vrot.lane.b32.xlu1 %v1993_v33, %s7345_s24  ;;  %v516_v33 = vadd.f32 %v8435_v37, %v515_v24 }
 0x1bd   :  { %v8440_v41 = vpop.permute.xlu0 %2523 }
 0x1be   :  { %v8438_v39 = vpop.permute.xlu1 %2529 }
 0x1bf   :  { %2263 = vrot.lane.b32.xlu0 %v1812_v48, %s7344_s17  ;;  %v582_v48 = vmax.f32 %v516_v33, 0.0  ;;  %v585_v33 = vmax.f32 %v531_v19, 0.0 }
 0x1c0   :  { %2125 = vrot.lane.b32.xlu1 %v1778_v46, %s7343_s12  ;;  %v1323_v46 = vrot.slane %v583_v30, %v8043_v2 }
 0x1c1   :  { %v8445_v54 = vpop.permute.xlu0 %2811  ;;  %v1299_v3 = vcombine.high %v582_v48, %v582_v48 }
 0x1c2   :  { %v8447_v55 = vpop.permute.xlu1 %2381  ;;  %1696 = vst.msk [vmem:[#allocation2 + $0x12a] sm:$0x3] %vm590_vm0, %v1323_v46 }
 0x1c3   :  { %2687 = vrot.lane.b32.xlu0 %v1955_v1, %s7344_s17  ;;  %v1331_v1 = vcombine.high %v1323_v46, %v1323_v46  ;;  %v1313_v62 = vrot.slane %v1299_v3, %v8043_v2  ;;  %v1357_v46 = vrot.slane %v585_v33, %v8043_v2  ;;  %v1923_v3 = vld [vmem:[#allocation2 + $0x9c] sm:$0x3] }
 0x1c4   :  { %2685 = vrot.lane.b32.xlu1 %v1954_v60, %s7344_s17  ;;  %v1330_v60 = vrot.slane %v1316_v44, %v8043_v2  ;;  %v1350_v44 = vcombine.high %v585_v33, %v585_v33 }
 0x1c5   :  { %v8455_v5 = vpop.permute.xlu0 %2103  ;;  %1697 = vst.msk [vmem:[#allocation2 + $0x12c] sm:$0x3] %vm590_vm0, %v1331_v1  ;;  %v1315_v30 = vcombine.high %v1313_v62, %v1313_v62  ;;  %1694 = vst.msk [vmem:[#allocation2 + $0x126] sm:$0x3] %vm590_vm0, %v1313_v62  ;;  %v1365_v9 = vcombine.high %v1357_v46, %v1357_v46  ;;  %v1816_v62 = vld [vmem:[#allocation2 + $0xac] sm:$0x3] }
 0x1c6   :  { %v8457_v6 = vpop.permute.xlu1 %2525  ;;  %1698 = vst.msk [vmem:[#allocation2 + $0x12e] sm:$0x3] %vm590_vm0, %v1330_v60  ;;  %1704 = vst.msk [vmem:[#allocation2 + $0x13e] sm:$0x3] %vm590_vm0, %v1357_v46 }
 0x1c7   :  { %2551 = vrot.lane.b32.xlu0 %v1922_v4, %s7343_s12  ;;  %v1813_v4 = vld [vmem:[#allocation2 + $0x80] sm:$0x3]  ;;  %1695 = vst.msk [vmem:[#allocation2 + $0x128] sm:$0x3] %vm590_vm0, %v1315_v30  ;;  %1705 = vst.msk [vmem:[#allocation2 + $0x140] sm:$0x3] %vm590_vm0, %v1365_v9 }
 0x1c8   :  { %2829 = vrot.lane.b32.xlu1 %v1991_v8, %s7345_s24  ;;  %v1306_v8 = vrot.slane %v582_v48, %v8043_v2 }
 0x1c9   :  { %v8463_v13 = vpop.permute.xlu0 %2387 }
 0x1ca   :  { %v8465_v14 = vpop.permute.xlu1 %2669  ;;  %v1314_v18 = vcombine.high %v1306_v8, %v1306_v8  ;;  %1692 = vst.msk [vmem:[#allocation2 + $0x122] sm:$0x3] %vm590_vm0, %v1306_v8  ;;  %v1364_v8 = vrot.slane %v1350_v44, %v8043_v2  ;;  %v1959_v44 = vld [vmem:[#allocation2 + $0xb0] sm:$0x3] }
 0x1cb   :  { %2547 = vrot.lane.b32.xlu0 %v1920_v11, %s7343_s12  ;;  %v1332_v11 = vcombine.high %v1330_v60, %v1330_v60 }
 0x1cc   :  { %2121 = vrot.lane.b32.xlu1 %v1776_v17, %s7343_s12  ;;  %v1851_v17 = vld [vmem:[#allocation2 + $0x9c] sm:$0x3]  ;;  %1693 = vst.msk [vmem:[#allocation2 + $0x124] sm:$0x3] %vm590_vm0, %v1314_v18  ;;  %v1366_v18 = vcombine.high %v1364_v8, %v1364_v8  ;;  %1706 = vst.msk [vmem:[#allocation2 + $0x142] sm:$0x3] %vm590_vm0, %v1364_v8 }
 0x1cd   :  { %v8473_v27 = vpop.permute.xlu0 %2383  ;;  %1699 = vst.msk [vmem:[#allocation2 + $0x130] sm:$0x3] %vm590_vm0, %v1332_v11  ;;  %v1725_v8 = vld [vmem:[#allocation2 + $0x4] sm:$0x3] }
 0x1ce   :  { %v8471_v25 = vpop.permute.xlu1 %2813  ;;  %1707 = vst.msk [vmem:[#allocation2 + $0x144] sm:$0x3] %vm590_vm0, %v1366_v18  ;;  %v2921_v18 = vsel %vm2919_vm4, %v1725_v8, %v8219_v56 }
 0x1cf   :  { %2835 = vrot.lane.b32.xlu0 %v1994_v21, %s7345_s24  ;;  %v525_v21 = vpop.f32.mrf.mxu0 }
 0x1d0   :  { %2269 = vrot.lane.b32.xlu1 %v1815_v35, %s7344_s17  ;;  %v526_v24 = vadd.f32 %v8435_v37, %v525_v21 }
 0x1d1   :  { %v8485_v59 = vpop.permute.xlu0 %2247  ;;  %v7028_v35 = vpop.f32.mrf.mxu0 }
 0x1d2   :  { %v8483_v58 = vpop.permute.xlu1 %2105  ;;  %v584_v36 = vmax.f32 %v526_v24, 0.0  ;;  %v541_v38 = vadd.f32 %v8435_v37, %v7028_v35  ;;  %v1848_v35 = vld [vmem:[#allocation2 + $0x90] sm:$0x3] }
 0x1d3   :  { %2127 = vrot.lane.b32.xlu0 %v1779_v49, %s7343_s12 }
 0x1d4   :  { %2265 = vrot.lane.b32.xlu1 %v1813_v4, %s7344_s17  ;;  %v1333_v52 = vcombine.high %v584_v36, %v584_v36  ;;  %v1340_v60 = vrot.slane %v584_v36, %v8043_v2  ;;  %v587_v1 = vmax.f32 %v541_v38, 0.0  ;;  %v1849_v4 = vld [vmem:[#allocation2 + $0x94] sm:$0x3] }
 0x1d5   :  { %v8500_v23 = vpop.permute.xlu0 %2671 }
 0x1d6   :  { %v8498_v22 = vpop.permute.xlu1 %2249  ;;  %v1347_v11 = vrot.slane %v1333_v52, %v8043_v2  ;;  %1700 = vst.msk [vmem:[#allocation2 + $0x136] sm:$0x3] %vm590_vm0, %v1340_v60  ;;  %v1391_v19 = vrot.slane %v587_v1, %v8043_v2 }
 0x1d7   :  { %2411 = vrot.lane.b32.xlu0 %v1851_v17, %s7345_s24  ;;  %v1384_v17 = vcombine.high %v587_v1, %v587_v1  ;;  %v1724_v1 = vld [vmem:[#allocation2] sm:$0x3] }
 0x1d8   :  { %2409 = vrot.lane.b32.xlu1 %v1850_v12, %s7345_s24  ;;  %v1348_v12 = vcombine.high %v1340_v60, %v1340_v60  ;;  %v1349_v30 = vcombine.high %v1347_v11, %v1347_v11  ;;  %1702 = vst.msk [vmem:[#allocation2 + $0x13a] sm:$0x3] %vm590_vm0, %v1347_v11  ;;  %v1399_v36 = vcombine.high %v1391_v19, %v1391_v19  ;;  %1712 = vst.msk [vmem:[#allocation2 + $0x152] sm:$0x3] %vm590_vm0, %v1391_v19  ;;  %v1921_v60 = vld [vmem:[#allocation2 + $0x94] sm:$0x3] }
 0x1d9   :  { %v8513_v49 = vpop.permute.xlu0 %2531  ;;  %v1398_v33 = vrot.slane %v1384_v17, %v8043_v2  ;;  %v1871_v17 = vld [vmem:[#allocation2 + $0x1e] sm:$0x3] }
 0x1da   :  { %v8511_v48 = vpop.permute.xlu1 %2389  ;;  %1701 = vst.msk [vmem:[#allocation2 + $0x138] sm:$0x3] %vm590_vm0, %v1348_v12  ;;  %1703 = vst.msk [vmem:[#allocation2 + $0x13c] sm:$0x3] %vm590_vm0, %v1349_v30  ;;  %v2920_v12 = vsel %vm2919_vm4, %v1724_v1, %v8197_v45  ;;  %v3030_v19 = vsel %vm2919_vm4, %v1871_v17, %v8440_v41  ;;  %v1873_v1 = vld [vmem:[#allocation2 + $0x26] sm:$0x3] }
 0x1db   :  { %2407 = vrot.lane.b32.xlu0 %v1849_v4, %s7345_s24  ;;  %v1400_v38 = vcombine.high %v1398_v33, %v1398_v33  ;;  %1714 = vst.msk [vmem:[#allocation2 + $0x156] sm:$0x3] %vm590_vm0, %v1398_v33  ;;  %1713 = vst.msk [vmem:[#allocation2 + $0x154] sm:$0x3] %vm590_vm0, %v1399_v36  ;;  %v1924_v4 = vld [vmem:[#allocation2 + $0xa0] sm:$0x3]  ;;  %v2957_v41 = vsel %vm2956_vm5, %v2920_v12, %v8241_v15 }
 0x1dc   :  { %2553 = vrot.lane.b32.xlu1 %v1923_v3, %s7343_s12  ;;  %v1958_v3 = vld [vmem:[#allocation2 + $0xac] sm:$0x3]  ;;  %v1998_v33 = vld [vmem:[#allocation2 + $0xba] sm:$0x3] }
 0x1dd   :  { %v8527_v24 = vpop.permute.xlu0 %2819  ;;  %1715 = vst.msk [vmem:[#allocation2 + $0x158] sm:$0x3] %vm590_vm0, %v1400_v38 }
 0x1de   :  { %v8525_v21 = vpop.permute.xlu1 %2533 }
 0x1df   :  { %2271 = vrot.lane.b32.xlu0 %v1816_v62, %s7344_s17  ;;  %v1872_v62 = vld [vmem:[#allocation2 + $0x22] sm:$0x3] }
 0x1e0   :  { %2405 = vrot.lane.b32.xlu1 %v1848_v35, %s7345_s24  ;;  %v3031_v30 = vsel %vm2919_vm4, %v1872_v62, %v8457_v6  ;;  %v1726_v35 = vld [vmem:[#allocation2 + $0x8] sm:$0x3]  ;;  %v2958_v6 = vsel %vm2956_vm5, %v2921_v18, %v8391_v57  ;;  %v1874_v18 = vld [vmem:[#allocation2 + $0x2a] sm:$0x3] }
 0x1e1   :  { %v8541_v52 = vpop.permute.xlu0 %2111  ;;  %v3067_v45 = vsel %vm2956_vm5, %v3031_v30, %v8465_v14  ;;  %v2922_v14 = vsel %vm2919_vm4, %v1726_v35, %v8377_v43  ;;  %v2995_v57 = vsel %vm2993_vm6, %v2958_v6, %v8447_v55  ;;  %v2994_v43 = vsel %vm2993_vm6, %v2957_v41, %v8313_v53  ;;  %v1996_v30 = vld [vmem:[#allocation2 + $0xb2] sm:$0x3] }
 0x1e2   :  { %v8539_v46 = vpop.permute.xlu1 %2677  ;;  %v3103_v56 = vsel %vm2993_vm6, %v3067_v45, %v8471_v25  ;;  %v3032_v25 = vsel %vm2919_vm4, %v1873_v1, %v8429_v31  ;;  %v2959_v55 = vsel %vm2956_vm5, %v2922_v14, %v8273_v34 }
 0x1e3   :  { %2695 = vrot.lane.b32.xlu0 %v1959_v44, %s7344_s17  ;;  %v1995_v44 = vld [vmem:[#allocation2 + $0xae] sm:$0x3]  ;;  %v3262_v8 = vcombine.low %v2995_v57, %v3103_v56  ;;  %v2996_v53 = vsel %vm2993_vm6, %v2959_v55, %v8473_v27 }
 0x1e4   :  { %2549 = vrot.lane.b32.xlu1 %v1921_v60, %s7343_s12  ;;  %v1727_v60 = vld [vmem:[#allocation2 + $0xc] sm:$0x3] }
 0x1e5   :  { %v2816_v11 = vpop.permute.xlu0 %2815  ;;  %v2923_v31 = vsel %vm2919_vm4, %v1727_v60, %v8383_v50 }
 0x1e6   :  { %v8546_v9 = vpop.permute.xlu1 %2821  ;;  %v2960_v50 = vsel %vm2956_vm5, %v2923_v31, %v8400_v10  ;;  %v1781_v10 = vld [vmem:[#allocation2 + $0xb2] sm:$0x3] }
 0x1e7   :  { %2555 = vrot.lane.b32.xlu0 %v1924_v4, %s7343_s12  ;;  %v1783_v4 = vld [vmem:[#allocation2 + $0xba] sm:$0x3]  ;;  %v2997_v56 = vsel %vm2993_vm6, %v2960_v50, %v8431_v32  ;;  %v1852_v32 = vld [vmem:[#allocation2 + $0xa0] sm:$0x3]  ;;  %v1928_v50 = vld [vmem:[#allocation2 + $0xd0] sm:$0x3] }
 0x1e8   :  { %2693 = vrot.lane.b32.xlu1 %v1958_v3, %s7344_s17  ;;  %v3066_v3 = vsel %vm2956_vm5, %v3030_v19, %v8292_v42  ;;  %v3068_v42 = vsel %vm2956_vm5, %v3032_v25, %v8500_v23  ;;  %v3033_v23 = vsel %vm2919_vm4, %v1874_v18, %v8438_v39 }
 0x1e9   :  { %v8562_v38 = vpop.permute.xlu0 %2107  ;;  %v3102_v15 = vsel %vm2993_vm6, %v3066_v3, %v8445_v54  ;;  %v3104_v62 = vsel %vm2993_vm6, %v3068_v42, %v2816_v11  ;;  %v1780_v54 = vld [vmem:[#allocation2 + $0xae] sm:$0x3]  ;;  %v3269_v11 = vrot.slane %v3262_v8, %v8043_v2 }
 0x1ea   :  { %v8560_v36 = vpop.permute.xlu1 %2113  ;;  %v3246_v19 = vcombine.low %v2994_v43, %v3102_v15  ;;  %v1820_v15 = vld [vmem:[#allocation2 + $0xbc] sm:$0x3] }
 0x1eb   :  { %2843 = vrot.lane.b32.xlu0 %v1998_v33, %s7345_s24  ;;  %v3278_v33 = vcombine.low %v2996_v53, %v3104_v62  ;;  %v1962_v62 = vld [vmem:[#allocation2 + $0xbc] sm:$0x3]  ;;  %v1999_v53 = vld [vmem:[#allocation2 + $0xbe] sm:$0x3] }
 0x1ec   :  { %2837 = vrot.lane.b32.xlu1 %v1995_v44, %s7345_s24  ;;  %v1817_v44 = vld [vmem:[#allocation2 + $0xb0] sm:$0x3]  ;;  %v3253_v27 = vrot.slane %v3246_v19, %v8043_v2 }
 0x1ed   :  { %v8584_v17 = vpop.permute.xlu0 %2255  ;;  %v3285_v60 = vrot.slane %v3278_v33, %v8043_v2 }
 0x1ee   :  { %v2674_v12 = vpop.permute.xlu1 %2673  ;;  %v6668_v14 = vcombine.low %v3253_v27, %v3269_v11 }
 0x1ef   :  { %2135 = vrot.lane.b32.xlu0 %v1783_v4, %s7343_s12  ;;  %v3069_v35 = vsel %vm2956_vm5, %v3033_v23, %v2674_v12  ;;  %v1925_v12 = vld [vmem:[#allocation2 + $0xa4] sm:$0x3] }
 0x1f0   :  { %2129 = vrot.lane.b32.xlu1 %v1780_v54, %s7343_s12  ;;  %v3875_v8 = vrot.slane %v6668_v14, %v8043_v2  ;;  %v1818_v54 = vld [vmem:[#allocation2 + $0xb4] sm:$0x3] }
 0x1f1   :  { %v8603_v45 = vpop.permute.xlu0 %2251  ;;  %v1960_v14 = vld [vmem:[#allocation2 + $0xb4] sm:$0x3] }
 0x1f2   :  { %v2818_v34 = vpop.permute.xlu1 %2817 }
 0x1f3   :  { %v3105_v39 = vsel %vm2993_vm6, %v3069_v35, %v2818_v34  ;;  %2839 = vrot.lane.b32.xlu0 %v1996_v30, %s7345_s24  ;;  %v1961_v30 = vld [vmem:[#allocation2 + $0xb8] sm:$0x3]  ;;  %v1728_v35 = vld [vmem:[#allocation2 + $0x10] sm:$0x3]  ;;  %v1784_v34 = vld [vmem:[#allocation2 + $0xbe] sm:$0x3] }
 0x1f4   :  { %v3294_v41 = vcombine.low %v2997_v56, %v3105_v39  ;;  %2273 = vrot.lane.b32.xlu1 %v1817_v44, %s7344_s17  ;;  %v1875_v56 = vld [vmem:[#allocation2 + $0x2e] sm:$0x3]  ;;  %v1926_v39 = vld [vmem:[#allocation2 + $0xc8] sm:$0x3]  ;;  %v2924_v44 = vsel %vm2919_vm4, %v1728_v35, %v8331_v7 }
 0x1f5   :  { %v2676_v3 = vpop.permute.xlu0 %2675  ;;  %v3034_v27 = vsel %vm2919_vm4, %v1875_v56, %v8513_v49  ;;  %v2961_v7 = vsel %vm2956_vm5, %v2924_v44, %v8358_v29  ;;  %v1876_v49 = vld [vmem:[#allocation2 + $0x32] sm:$0x3] }
 0x1f6   :  { %v3301_v6 = vrot.slane %v3294_v41, %v8043_v2  ;;  %v8613_v1 = vpop.permute.xlu1 %2109  ;;  %v2998_v29 = vsel %vm2993_vm6, %v2961_v7, %v8463_v13 }
 0x1f7   :  { %2131 = vrot.lane.b32.xlu0 %v1781_v10, %s7343_s12 }
 0x1f8   :  { %2413 = vrot.lane.b32.xlu1 %v1852_v32, %s7345_s24  ;;  %v6670_v25 = vcombine.low %v3285_v60, %v3301_v6  ;;  %v1729_v60 = vld [vmem:[#allocation2 + $0x14] sm:$0x3]  ;;  %v3070_v6 = vsel %vm2956_vm5, %v3034_v27, %v2676_v3  ;;  %v535_v32 = vpop.f32.mrf.mxu0  ;;  %v3035_v3 = vsel %vm2919_vm4, %v1876_v49, %v8525_v21  ;;  %v1997_v21 = vld [vmem:[#allocation2 + $0xb6] sm:$0x3] }
 0x1f9   :  { %v8619_v4 = vpop.permute.xlu0 %2539 }
 0x1fa   :  { %v8617_v57 = vpop.permute.xlu1 %2257  ;;  %v3889_v42 = vrot.slane %v6670_v25, %v8043_v2  ;;  %v1730_v25 = vld [vmem:[#allocation2 + $0x38] sm:$0x3] }
 0x1fb   :  { %2279 = vrot.lane.b32.xlu0 %v1820_v15, %s7344_s17  ;;  %v536_v15 = vadd.f32 %v8435_v37, %v535_v32 }
 0x1fc   :  { %2557 = vrot.lane.b32.xlu1 %v1925_v12, %s7343_s12  ;;  %v3898_v43 = vcombine.high %v3875_v8, %v3889_v42  ;;  %v3897_v31 = vcombine.low %v3875_v8, %v3889_v42  ;;  %v2000_v8 = vld [vmem:[#allocation2 + $0xe2] sm:$0x3]  ;;  %v2925_v42 = vsel %vm2919_vm4, %v1729_v60, %v8411_v20  ;;  %v3106_v12 = vsel %vm2993_vm6, %v3070_v6, %v8527_v24  ;;  %v1731_v6 = vld [vmem:[#allocation2 + $0x3c] sm:$0x3] }
 0x1fd   :  { %v2536_v19 = vpop.permute.xlu0 %2535  ;;  %v3071_v20 = vsel %vm2956_vm5, %v3035_v3, %v8539_v46  ;;  %v3310_v46 = vcombine.low %v2998_v29, %v3106_v12 }
 0x1fe   :  { %v8625_v18 = vpop.permute.xlu1 %2253  ;;  %4280 = vmatprep.mubr.f32.mxu1 %v3898_v43  ;;  %v1877_v43 = vld [vmem:[#allocation2 + $0x56] sm:$0x3]  ;;  %v3107_v24 = vsel %vm2993_vm6, %v3071_v20, %v8546_v9 }
 0x1ff   :  { %4281 = vmatmul.mubr.f32.vlgmr.msra.gmra.mxu1 %v3897_v31  ;;  %2275 = vrot.lane.b32.xlu0 %v1818_v54, %s7344_s17  ;;  %v586_v54 = vmax.f32 %v536_v15, 0.0  ;;  %v3317_v32 = vrot.slane %v3310_v46, %v8043_v2  ;;  %v1965_v15 = vld [vmem:[#allocation2 + $0xe8] sm:$0x3]  ;;  %v1855_v46 = vld [vmem:[#allocation2 + $0xcc] sm:$0x3] }
 0x200   :  { %2701 = vrot.lane.b32.xlu1 %v1962_v62, %s7344_s17 }
 0x201   :  { %v2824_v23 = vpop.permute.xlu0 %2823  ;;  %v1374_v35 = vrot.slane %v586_v54, %v8043_v2 }
 0x202   :  { %v8629_v55 = vpop.permute.xlu1 %2397 }
 0x203   :  { %2699 = vrot.lane.b32.xlu0 %v1961_v30, %s7344_s17  ;;  %v3036_v30 = vsel %vm2919_vm4, %v1877_v43, %v2536_v19  ;;  %v1382_v27 = vcombine.high %v1374_v35, %v1374_v35  ;;  %1708 = vst.msk [vmem:[#allocation2 + $0x146] sm:$0x3] %vm590_vm0, %v1374_v35  ;;  %v1821_v43 = vld [vmem:[#allocation2 + $0xc0] sm:$0x3] }
 0x204   :  { %2845 = vrot.lane.b32.xlu1 %v1999_v53, %s7345_s24  ;;  %v2926_v53 = vsel %vm2919_vm4, %v1730_v25, %v8455_v5  ;;  %v2962_v5 = vsel %vm2956_vm5, %v2925_v42, %v8425_v28  ;;  %v3072_v9 = vsel %vm2956_vm5, %v3036_v30, %v8372_v40  ;;  %v2927_v40 = vsel %vm2919_vm4, %v1731_v6, %v8483_v58 }
 0x205   :  { %v8635_v33 = vpop.permute.xlu0 %2399  ;;  %v2963_v13 = vsel %vm2956_vm5, %v2926_v53, %v8485_v59  ;;  %v2999_v19 = vsel %vm2993_vm6, %v2962_v5, %v8511_v48  ;;  %v3108_v60 = vsel %vm2993_vm6, %v3072_v9, %v2824_v23  ;;  %v1782_v59 = vld [vmem:[#allocation2 + $0xb6] sm:$0x3]  ;;  %1709 = vst.msk [vmem:[#allocation2 + $0x148] sm:$0x3] %vm590_vm0, %v1382_v27  ;;  %v2964_v7 = vsel %vm2956_vm5, %v2927_v40, %v8498_v22  ;;  %v1967_v22 = vld [vmem:[#allocation2 + $0xf0] sm:$0x3] }
 0x206   :  { %v8633_v11 = vpop.permute.xlu1 %2393  ;;  %v3326_v28 = vcombine.low %v2999_v19, %v3107_v24  ;;  %v3000_v23 = vsel %vm2993_vm6, %v2963_v13, %v8381_v47  ;;  %v1819_v24 = vld [vmem:[#allocation2 + $0xb8] sm:$0x3] }
 0x207   :  { %2563 = vrot.lane.b32.xlu0 %v1928_v50, %s7343_s12  ;;  %v1367_v50 = vcombine.high %v586_v54, %v586_v54  ;;  %v3342_v49 = vcombine.low %v3000_v23, %v3108_v60  ;;  %v3001_v12 = vsel %vm2993_vm6, %v2964_v7, %v8633_v11  ;;  %v1854_v60 = vld [vmem:[#allocation2 + $0xc8] sm:$0x3]  ;;  %v1857_v7 = vld [vmem:[#allocation2 + $0xd4] sm:$0x3] }
 0x208   :  { %2137 = vrot.lane.b32.xlu1 %v1784_v34, %s7343_s12  ;;  %v1930_v34 = vld [vmem:[#allocation2 + $0xd8] sm:$0x3]  ;;  %v3333_v58 = vrot.slane %v3326_v28, %v8043_v2 }
 0x209   :  { %v8645_v10 = vpop.permute.xlu0 %2115  ;;  %v1381_v44 = vrot.slane %v1367_v50, %v8043_v2  ;;  %v3349_v29 = vrot.slane %v3342_v49, %v8043_v2 }
 0x20a   :  { %v8643_v41 = vpop.permute.xlu1 %2541  ;;  %v6672_v54 = vcombine.low %v3317_v32, %v3333_v58 }
 0x20b   :  { %2559 = vrot.lane.b32.xlu0 %v1926_v39, %s7343_s12  ;;  %v1383_v48 = vcombine.high %v1381_v44, %v1381_v44  ;;  %1710 = vst.msk [vmem:[#allocation2 + $0x14a] sm:$0x3] %vm590_vm0, %v1381_v44 }
 0x20c   :  { %2697 = vrot.lane.b32.xlu1 %v1960_v14, %s7344_s17  ;;  %v1878_v14 = vld [vmem:[#allocation2 + $0x5a] sm:$0x3] }
 0x20d   :  { %v8659_v62 = vpop.permute.xlu0 %2395  ;;  %1711 = vst.msk [vmem:[#allocation2 + $0x14c] sm:$0x3] %vm590_vm0, %v1383_v48 }
 0x20e   :  { %v2538_v31 = vpop.permute.xlu1 %2537 }
 0x20f   :  { %2847 = vrot.lane.b32.xlu0 %v2000_v8, %s7345_s24  ;;  %v3037_v25 = vsel %vm2919_vm4, %v1878_v14, %v2538_v31 }
 0x210   :  { %2841 = vrot.lane.b32.xlu1 %v1997_v21, %s7345_s24 }
 0x211   :  { %v8681_v39 = vpop.permute.xlu0 %2259 }
 0x212   :  { %v2682_v56 = vpop.permute.xlu1 %2681 }
 0x213   :  { %2567 = vrot.lane.b32.xlu0 %v1930_v34, %s7343_s12  ;;  %v3073_v8 = vsel %vm2956_vm5, %v3037_v25, %v2682_v56  ;;  %v3910_v34 = vrot.slane %v6672_v54, %v8043_v2 }
 0x214   :  { %2133 = vrot.lane.b32.xlu1 %v1782_v59, %s7343_s12 }
 0x215   :  { %v8699_v3 = vpop.permute.xlu0 %2543  ;;  %v7031_v53 = vpop.f32.mrf.mxu0 }
 0x216   :  { %v2826_v42 = vpop.permute.xlu1 %2825  ;;  %v551_v11 = vadd.f32 %v8435_v37, %v7031_v53 }
 0x217   :  { %v3109_v47 = vsel %vm2993_vm6, %v3073_v8, %v2826_v42  ;;  %2707 = vrot.lane.b32.xlu0 %v1965_v15, %s7344_s17  ;;  %v545_v50 = vpop.f32.mrf.mxu0  ;;  %v1929_v15 = vld [vmem:[#allocation2 + $0xd4] sm:$0x3]  ;;  %v2002_v42 = vld [vmem:[#allocation2 + $0xea] sm:$0x3] }
 0x218   :  { %v3358_v31 = vcombine.low %v3001_v12, %v3109_v47  ;;  %2281 = vrot.lane.b32.xlu1 %v1821_v43, %s7344_s17  ;;  %v589_v5 = vmax.f32 %v551_v11, 0.0  ;;  %v546_v13 = vadd.f32 %v8435_v37, %v545_v50  ;;  %v1927_v43 = vld [vmem:[#allocation2 + $0xcc] sm:$0x3]  ;;  %v2001_v11 = vld [vmem:[#allocation2 + $0xe6] sm:$0x3] }
 0x219   :  { %v8712_v21 = vpop.permute.xlu0 %2683  ;;  %v1787_v50 = vld [vmem:[#allocation2 + $0xea] sm:$0x3] }
 0x21a   :  { %v3365_v20 = vrot.slane %v3358_v31, %v8043_v2  ;;  %v8710_v30 = vpop.permute.xlu1 %2117  ;;  %v1418_v44 = vcombine.high %v589_v5, %v589_v5  ;;  %v1425_v27 = vrot.slane %v589_v5, %v8043_v2  ;;  %v588_v28 = vmax.f32 %v546_v13, 0.0  ;;  %v1964_v31 = vld [vmem:[#allocation2 + $0xe4] sm:$0x3] }
 0x21b   :  { %2711 = vrot.lane.b32.xlu0 %v1967_v22, %s7344_s17  ;;  %v2004_v22 = vld [vmem:[#allocation2 + $0xf2] sm:$0x3] }
 0x21c   :  { %v6674_v35 = vcombine.low %v3349_v29, %v3365_v20  ;;  %2277 = vrot.lane.b32.xlu1 %v1819_v24, %s7344_s17  ;;  %v1432_v6 = vrot.slane %v1418_v44, %v8043_v2  ;;  %1720 = vst.msk [vmem:[#allocation2 + $0x162] sm:$0x3] %vm590_vm0, %v1425_v27  ;;  %v1433_v14 = vcombine.high %v1425_v27, %v1425_v27  ;;  %v1785_v24 = vld [vmem:[#allocation2 + $0xe2] sm:$0x3]  ;;  %v1735_v27 = vld [vmem:[#allocation2 + $0x4c] sm:$0x3] }
 0x21d   :  { %v8721_v9 = vpop.permute.xlu0 %2831  ;;  %v1401_v48 = vcombine.high %v588_v28, %v588_v28  ;;  %v1408_v40 = vrot.slane %v588_v28, %v8043_v2  ;;  %v1732_v28 = vld [vmem:[#allocation2 + $0x40] sm:$0x3] }
 0x21e   :  { %v8719_v19 = vpop.permute.xlu1 %2401  ;;  %v3924_v56 = vrot.slane %v6674_v35, %v8043_v2  ;;  %v1434_v25 = vcombine.high %v1432_v6, %v1432_v6  ;;  %1722 = vst.msk [vmem:[#allocation2 + $0x166] sm:$0x3] %vm590_vm0, %v1432_v6  ;;  %1721 = vst.msk [vmem:[#allocation2 + $0x164] sm:$0x3] %vm590_vm0, %v1433_v14  ;;  %v1882_v35 = vld [vmem:[#allocation2 + $0x6a] sm:$0x3]  ;;  %v2928_v6 = vsel %vm2919_vm4, %v1732_v28, %v8562_v38 }
 0x21f   :  { %2419 = vrot.lane.b32.xlu0 %v1855_v46, %s7345_s24  ;;  %v1415_v49 = vrot.slane %v1401_v48, %v8043_v2  ;;  %v1416_v8 = vcombine.high %v1408_v40, %v1408_v40  ;;  %1716 = vst.msk [vmem:[#allocation2 + $0x15a] sm:$0x3] %vm590_vm0, %v1408_v40  ;;  %v1734_v46 = vld [vmem:[#allocation2 + $0x48] sm:$0x3]  ;;  %v1881_v48 = vld [vmem:[#allocation2 + $0x66] sm:$0x3] }
 0x220   :  { %2417 = vrot.lane.b32.xlu1 %v1854_v60, %s7345_s24  ;;  %v3933_v59 = vcombine.high %v3910_v34, %v3924_v56  ;;  %v3932_v37 = vcombine.low %v3910_v34, %v3924_v56  ;;  %1723 = vst.msk [vmem:[#allocation2 + $0x168] sm:$0x3] %vm590_vm0, %v1434_v25  ;;  %v1931_v56 = vld [vmem:[#allocation2 + $0xdc] sm:$0x3]  ;;  %v2930_v44 = vsel %vm2919_vm4, %v1734_v46, %v8541_v52  ;;  %v1879_v60 = vld [vmem:[#allocation2 + $0x5e] sm:$0x3] }
 0x221   :  { %v8732_v23 = vpop.permute.xlu0 %2123  ;;  %v1417_v58 = vcombine.high %v1415_v49, %v1415_v49  ;;  %1717 = vst.msk [vmem:[#allocation2 + $0x15c] sm:$0x3] %vm590_vm0, %v1416_v8  ;;  %1718 = vst.msk [vmem:[#allocation2 + $0x15e] sm:$0x3] %vm590_vm0, %v1415_v49  ;;  %v3038_v14 = vsel %vm2919_vm4, %v1879_v60, %v8619_v4  ;;  %v1932_v40 = vld [vmem:[#allocation2 + $0x100] sm:$0x3]  ;;  %v2967_v25 = vsel %vm2956_vm5, %v2930_v44, %v8584_v17 }
 0x222   :  { %v8730_v32 = vpop.permute.xlu1 %2261  ;;  %4285 = vmatprep.mubr.f32.mxu1 %v3933_v59  ;;  %v2965_v4 = vsel %vm2956_vm5, %v2928_v6, %v8603_v45  ;;  %v1856_v44 = vld [vmem:[#allocation2 + $0xd0] sm:$0x3] }
 0x223   :  { %4286 = vmatmul.mubr.f32.gmra.mxu1 %v3932_v37  ;;  %2423 = vrot.lane.b32.xlu0 %v1857_v7, %s7345_s24  ;;  %1719 = vst.msk [vmem:[#allocation2 + $0x160] sm:$0x3] %vm590_vm0, %v1417_v58  ;;  %v2931_v37 = vsel %vm2919_vm4, %v1735_v27, %v8560_v36  ;;  %v3040_v7 = vsel %vm2919_vm4, %v1881_v48, %v8699_v3  ;;  %v1966_v58 = vld [vmem:[#allocation2 + $0xec] sm:$0x3]  ;;  %v1822_v27 = vld [vmem:[#allocation2 + $0xe4] sm:$0x3] }
 0x224   :  { %2565 = vrot.lane.b32.xlu1 %v1929_v15, %s7343_s12  ;;  %v2968_v15 = vsel %vm2956_vm5, %v2931_v37, %v8617_v57  ;;  %v3074_v36 = vsel %vm2956_vm5, %v3038_v14, %v8712_v21  ;;  %v1733_v57 = vld [vmem:[#allocation2 + $0x44] sm:$0x3]  ;;  %v3004_v3 = vsel %vm2993_vm6, %v2967_v25, %v8635_v33  ;;  %v1934_v33 = vld [vmem:[#allocation2 + $0x108] sm:$0x3]  ;;  %v1858_v14 = vld [vmem:[#allocation2 + $0xd8] sm:$0x3] }
 0x225   :  { %v2828_v47 = vpop.permute.xlu0 %2827  ;;  %v3005_v8 = vsel %vm2993_vm6, %v2968_v15, %v8719_v19  ;;  %v2929_v45 = vsel %vm2919_vm4, %v1733_v57, %v8613_v1  ;;  %v1824_v48 = vld [vmem:[#allocation2 + $0xec] sm:$0x3]  ;;  %v1969_v25 = vld [vmem:[#allocation2 + $0x118] sm:$0x3]  ;;  %v1786_v57 = vld [vmem:[#allocation2 + $0xe6] sm:$0x3] }
 0x226   :  { %v2546_v12 = vpop.permute.xlu1 %2545 }
 0x227   :  { %2851 = vrot.lane.b32.xlu0 %v2002_v42, %s7345_s24  ;;  %v3041_v34 = vsel %vm2919_vm4, %v1882_v35, %v2546_v12  ;;  %v3110_v42 = vsel %vm2993_vm6, %v3074_v36, %v2828_v47  ;;  %v1880_v12 = vld [vmem:[#allocation2 + $0x62] sm:$0x3]  ;;  %v3002_v47 = vsel %vm2993_vm6, %v2965_v4, %v8659_v62  ;;  %v2003_v36 = vld [vmem:[#allocation2 + $0xee] sm:$0x3] }
 0x228   :  { %2561 = vrot.lane.b32.xlu1 %v1927_v43, %s7343_s12  ;;  %v3039_v19 = vsel %vm2919_vm4, %v1880_v12, %v8643_v41 }
 0x229   :  { %v8746_v53 = vpop.permute.xlu0 %2119 }
 0x22a   :  { %v2690_v54 = vpop.permute.xlu1 %2689 }
 0x22b   :  { %2855 = vrot.lane.b32.xlu0 %v2004_v22, %s7345_s24  ;;  %v3077_v59 = vsel %vm2956_vm5, %v3041_v34, %v2690_v54  ;;  %v2966_v22 = vsel %vm2956_vm5, %v2929_v45, %v8625_v18  ;;  %v3374_v54 = vcombine.low %v3002_v47, %v3110_v42  ;;  %v1859_v42 = vld [vmem:[#allocation2 + $0xfc] sm:$0x3]  ;;  %v2006_v45 = vld [vmem:[#allocation2 + $0x11a] sm:$0x3] }
 0x22c   :  { %2705 = vrot.lane.b32.xlu1 %v1964_v31, %s7344_s17  ;;  %v3003_v1 = vsel %vm2993_vm6, %v2966_v22, %v8629_v55 }
 0x22d   :  { %v8750_v20 = vpop.permute.xlu0 %2267  ;;  %v3381_v18 = vrot.slane %v3374_v54, %v8043_v2 }
 0x22e   :  { %v2834_v29 = vpop.permute.xlu1 %2833 }
 0x22f   :  { %2139 = vrot.lane.b32.xlu0 %v1785_v24, %s7343_s12  ;;  %v3113_v52 = vsel %vm2993_vm6, %v3077_v59, %v2834_v29 }
 0x230   :  { %2849 = vrot.lane.b32.xlu1 %v2001_v11, %s7345_s24  ;;  %v3422_v43 = vcombine.low %v3005_v8, %v3113_v52  ;;  %v2005_v8 = vld [vmem:[#allocation2 + $0xf6] sm:$0x3] }
 0x231   :  { %v8756_v13 = vpop.permute.xlu0 %2263 }
 0x232   :  { %v8754_v5 = vpop.permute.xlu1 %2125  ;;  %v3429_v62 = vrot.slane %v3422_v43, %v8043_v2 }
 0x233   :  { %2143 = vrot.lane.b32.xlu0 %v1787_v50, %s7343_s12  ;;  %v1968_v50 = vld [vmem:[#allocation2 + $0xf4] sm:$0x3] }
 0x234   :  { %2569 = vrot.lane.b32.xlu1 %v1931_v56, %s7343_s12 }
 0x235   :  { %v2688_v49 = vpop.permute.xlu0 %2687 }
 0x236   :  { %v2686_v38 = vpop.permute.xlu1 %2685  ;;  %v3076_v17 = vsel %vm2956_vm5, %v3040_v7, %v2688_v49 }
 0x237   :  { %v3112_v21 = vsel %vm2993_vm6, %v3076_v17, %v8721_v9  ;;  %2571 = vrot.lane.b32.xlu0 %v1932_v40, %s7343_s12  ;;  %v3075_v9 = vsel %vm2956_vm5, %v3039_v19, %v2686_v38  ;;  %v1971_v38 = vld [vmem:[#allocation2 + $0x120] sm:$0x3] }
 0x238   :  { %2709 = vrot.lane.b32.xlu1 %v1966_v58, %s7344_s17  ;;  %v3406_v31 = vcombine.low %v3004_v3, %v3112_v21  ;;  %v1861_v3 = vld [vmem:[#allocation2 + $0x104] sm:$0x3]  ;;  %v1788_v21 = vld [vmem:[#allocation2 + $0xee] sm:$0x3] }
 0x239   :  { %v8800_v11 = vpop.permute.xlu0 %2551 }
 0x23a   :  { %v2830_v29 = vpop.permute.xlu1 %2829  ;;  %v3413_v24 = vrot.slane %v3406_v31, %v8043_v2  ;;  %v1933_v31 = vld [vmem:[#allocation2 + $0x104] sm:$0x3] }
 0x23b   :  { %v3111_v41 = vsel %vm2993_vm6, %v3075_v9, %v2830_v29  ;;  %2575 = vrot.lane.b32.xlu0 %v1934_v33, %s7343_s12  ;;  %v2008_v33 = vld [vmem:[#allocation2 + $0x122] sm:$0x3]  ;;  %v1935_v9 = vld [vmem:[#allocation2 + $0x10c] sm:$0x3] }
 0x23c   :  { %v3390_v35 = vcombine.low %v3003_v1, %v3111_v41  ;;  %2713 = vrot.lane.b32.xlu1 %v1968_v50, %s7344_s17  ;;  %v6678_v55 = vcombine.low %v3413_v24, %v3429_v62  ;;  %v1823_v24 = vld [vmem:[#allocation2 + $0xe8] sm:$0x3]  ;;  %v1789_v41 = vld [vmem:[#allocation2 + $0xf2] sm:$0x3]  ;;  %v1791_v50 = vld [vmem:[#allocation2 + $0x11a] sm:$0x3] }
 0x23d   :  { %v8813_v56 = vpop.permute.xlu0 %2547 }
 0x23e   :  { %v3397_v46 = vrot.slane %v3390_v35, %v8043_v2  ;;  %v8811_v34 = vpop.permute.xlu1 %2121  ;;  %v3959_v6 = vrot.slane %v6678_v55, %v8043_v2 }
 0x23f   :  { %2283 = vrot.lane.b32.xlu0 %v1822_v27, %s7344_s17  ;;  %v1936_v27 = vld [vmem:[#allocation2 + $0x110] sm:$0x3] }
 0x240   :  { %v6676_v28 = vcombine.low %v3381_v18, %v3397_v46  ;;  %2421 = vrot.lane.b32.xlu1 %v1856_v44, %s7345_s24  ;;  %v1825_v18 = vld [vmem:[#allocation2 + $0xf0] sm:$0x3]  ;;  %v1970_v44 = vld [vmem:[#allocation2 + $0x11c] sm:$0x3] }
 0x241   :  { %v8819_v59 = vpop.permute.xlu0 %2835 }
 0x242   :  { %v8817_v60 = vpop.permute.xlu1 %2269  ;;  %v3945_v37 = vrot.slane %v6676_v28, %v8043_v2  ;;  %v1938_v28 = vld [vmem:[#allocation2 + $0x138] sm:$0x3] }
 0x243   :  { %2287 = vrot.lane.b32.xlu0 %v1824_v48, %s7344_s17 }
 0x244   :  { %2425 = vrot.lane.b32.xlu1 %v1858_v14, %s7345_s24  ;;  %v3968_v52 = vcombine.high %v3945_v37, %v3959_v6  ;;  %v3967_v40 = vcombine.low %v3945_v37, %v3959_v6  ;;  %v1972_v14 = vld [vmem:[#allocation2 + $0x124] sm:$0x3] }
 0x245   :  { %v8827_v7 = vpop.permute.xlu0 %2127 }
 0x246   :  { %v8825_v15 = vpop.permute.xlu1 %2265  ;;  %4290 = vmatprep.mubr.f32.mxu1 %v3968_v52 }
 0x247   :  { %4291 = vmatmul.mubr.f32.gmra.mxu1 %v3967_v40  ;;  %2715 = vrot.lane.b32.xlu0 %v1969_v25, %s7344_s17  ;;  %v1860_v40 = vld [vmem:[#allocation2 + $0x100] sm:$0x3]  ;;  %v1826_v25 = vld [vmem:[#allocation2 + $0xf4] sm:$0x3] }
 0x248   :  { %2853 = vrot.lane.b32.xlu1 %v2003_v36, %s7345_s24 }
 0x249   :  { %v8833_v4 = vpop.permute.xlu0 %2411 }
 0x24a   :  { %v8831_v49 = vpop.permute.xlu1 %2409 }
 0x24b   :  { %2719 = vrot.lane.b32.xlu0 %v1971_v38, %s7344_s17 }
 0x24c   :  { %2857 = vrot.lane.b32.xlu1 %v2005_v8, %s7345_s24  ;;  %v1862_v8 = vld [vmem:[#allocation2 + $0x108] sm:$0x3] }
 0x24d   :  { %v8839_v58 = vpop.permute.xlu0 %2407 }
 0x24e   :  { %v8837_v17 = vpop.permute.xlu1 %2553 }
 0x24f   :  { %2427 = vrot.lane.b32.xlu0 %v1859_v42, %s7345_s24  ;;  %v1828_v42 = vld [vmem:[#allocation2 + $0x11c] sm:$0x3] }
 0x250   :  { %2141 = vrot.lane.b32.xlu1 %v1786_v57, %s7343_s12  ;;  %v1736_v57 = vld [vmem:[#allocation2 + $0x70] sm:$0x3] }
 0x251   :  { %v8845_v43 = vpop.permute.xlu0 %2271 }
 0x252   :  { %v8843_v12 = vpop.permute.xlu1 %2405 }
 0x253   :  { %2431 = vrot.lane.b32.xlu0 %v1861_v3, %s7345_s24 }
 0x254   :  { %2145 = vrot.lane.b32.xlu1 %v1788_v21, %s7343_s12 }
 0x255   :  { %v8849_v47 = vpop.permute.xlu0 %2695 }
 0x256   :  { %v2550_v19 = vpop.permute.xlu1 %2549 }
 0x257   :  { %2859 = vrot.lane.b32.xlu0 %v2006_v45, %s7345_s24  ;;  %v2007_v45 = vld [vmem:[#allocation2 + $0x11e] sm:$0x3] }
 0x258   :  { %2573 = vrot.lane.b32.xlu1 %v1933_v31, %s7343_s12  ;;  %v1973_v31 = vld [vmem:[#allocation2 + $0x128] sm:$0x3] }
 0x259   :  { %v8853_v54 = vpop.permute.xlu0 %2555 }
 0x25a   :  { %v2694_v22 = vpop.permute.xlu1 %2693 }
 0x25b   :  { %2863 = vrot.lane.b32.xlu0 %v2008_v33, %s7345_s24  ;;  %v1883_v33 = vld [vmem:[#allocation2 + $0x8e] sm:$0x3] }
 0x25c   :  { %2577 = vrot.lane.b32.xlu1 %v1935_v9, %s7343_s12  ;;  %v1884_v9 = vld [vmem:[#allocation2 + $0x92] sm:$0x3] }
 0x25d   :  { %v8857_v1 = vpop.permute.xlu0 %2843 }
 0x25e   :  { %v2838_v29 = vpop.permute.xlu1 %2837 }
 0x25f   :  { %2147 = vrot.lane.b32.xlu0 %v1789_v41, %s7343_s12  ;;  %v3042_v41 = vsel %vm2919_vm4, %v1883_v33, %v8813_v56 }
 0x260   :  { %2285 = vrot.lane.b32.xlu1 %v1823_v24, %s7344_s17  ;;  %v2932_v24 = vsel %vm2919_vm4, %v1736_v57, %v8645_v10 }
 0x261   :  { %v8863_v35 = vpop.permute.xlu0 %2135  ;;  %v2969_v10 = vsel %vm2956_vm5, %v2932_v24, %v8681_v39  ;;  %v1739_v24 = vld [vmem:[#allocation2 + $0x7c] sm:$0x3] }
 0x262   :  { %v8861_v62 = vpop.permute.xlu1 %2129 }
 0x263   :  { %2151 = vrot.lane.b32.xlu0 %v1791_v50, %s7343_s12  ;;  %v3043_v50 = vsel %vm2919_vm4, %v1884_v9, %v2550_v19  ;;  %v1885_v19 = vld [vmem:[#allocation2 + $0x96] sm:$0x3]  ;;  %v1863_v9 = vld [vmem:[#allocation2 + $0x10c] sm:$0x3] }
 0x264   :  { %2289 = vrot.lane.b32.xlu1 %v1825_v18, %s7344_s17  ;;  %v1975_v18 = vld [vmem:[#allocation2 + $0x150] sm:$0x3] }
 0x265   :  { %v2840_v55 = vpop.permute.xlu0 %2839 }
 0x266   :  { %v8867_v46 = vpop.permute.xlu1 %2273 }
 0x267   :  { %2579 = vrot.lane.b32.xlu0 %v1936_v27, %s7343_s12  ;;  %v3079_v27 = vsel %vm2956_vm5, %v3043_v50, %v2694_v22  ;;  %v3078_v22 = vsel %vm2956_vm5, %v3042_v41, %v8387_v51  ;;  %v1865_v50 = vld [vmem:[#allocation2 + $0x134] sm:$0x3] }
 0x268   :  { %2717 = vrot.lane.b32.xlu1 %v1970_v44, %s7344_s17  ;;  %v1737_v44 = vld [vmem:[#allocation2 + $0x74] sm:$0x3] }
 0x269   :  { %v8873_v6 = vpop.permute.xlu0 %2131 }
 0x26a   :  { %v8871_v37 = vpop.permute.xlu1 %2413 }
 0x26b   :  { %2583 = vrot.lane.b32.xlu0 %v1938_v28, %s7343_s12 }
 0x26c   :  { %2721 = vrot.lane.b32.xlu1 %v1972_v14, %s7344_s17 }
 0x26d   :  { %v8879_v52 = vpop.permute.xlu0 %2279 }
 0x26e   :  { %v8877_v48 = vpop.permute.xlu1 %2557 }
 0x26f   :  { %2291 = vrot.lane.b32.xlu0 %v1826_v25, %s7344_s17  ;;  %v3115_v25 = vsel %vm2993_vm6, %v3079_v27, %v2838_v29  ;;  %v3114_v29 = vsel %vm2993_vm6, %v3078_v22, %v8819_v59  ;;  %v1790_v59 = vld [vmem:[#allocation2 + $0xf6] sm:$0x3] }
 0x270   :  { %2429 = vrot.lane.b32.xlu1 %v1860_v40, %s7345_s24  ;;  %v2933_v40 = vsel %vm2919_vm4, %v1737_v44, %v8710_v30  ;;  %v3044_v30 = vsel %vm2919_vm4, %v1885_v19, %v8800_v11  ;;  %v3006_v11 = vsel %vm2993_vm6, %v2969_v10, %v8396_v63 }
 0x271   :  { %v8885_v38 = vpop.permute.xlu0 %2275  ;;  %v2970_v56 = vsel %vm2956_vm5, %v2933_v40, %v8730_v32  ;;  %v3080_v32 = vsel %vm2956_vm5, %v3044_v30, %v8849_v47  ;;  %v3438_v41 = vcombine.low %v3006_v11, %v3114_v29  ;;  %v1886_v47 = vld [vmem:[#allocation2 + $0x9a] sm:$0x3]  ;;  %v2010_v29 = vld [vmem:[#allocation2 + $0x12a] sm:$0x3]  ;;  %v1939_v11 = vld [vmem:[#allocation2 + $0x13c] sm:$0x3] }
 0x272   :  { %v8883_v36 = vpop.permute.xlu1 %2701  ;;  %v3007_v39 = vsel %vm2993_vm6, %v2970_v56, %v8843_v12  ;;  %v3116_v33 = vsel %vm2993_vm6, %v3080_v32, %v2840_v55  ;;  %v3045_v63 = vsel %vm2919_vm4, %v1886_v47, %v8837_v17 }
 0x273   :  { %2295 = vrot.lane.b32.xlu0 %v1828_v42, %s7344_s17  ;;  %v1738_v42 = vld [vmem:[#allocation2 + $0x78] sm:$0x3]  ;;  %v3454_v57 = vcombine.low %v3007_v39, %v3115_v25 }
 0x274   :  { %2433 = vrot.lane.b32.xlu1 %v1862_v8, %s7345_s24  ;;  %v2009_v8 = vld [vmem:[#allocation2 + $0x126] sm:$0x3] }
 0x275   :  { %v8891_v21 = vpop.permute.xlu0 %2699 }
 0x276   :  { %v8889_v3 = vpop.permute.xlu1 %2845 }
 0x277   :  { %2723 = vrot.lane.b32.xlu0 %v1973_v31, %s7344_s17  ;;  %v2934_v31 = vsel %vm2919_vm4, %v1738_v42, %v8746_v53  ;;  %v2935_v53 = vsel %vm2919_vm4, %v1739_v24, %v8811_v34  ;;  %v2012_v42 = vld [vmem:[#allocation2 + $0x152] sm:$0x3]  ;;  %v1827_v24 = vld [vmem:[#allocation2 + $0xf8] sm:$0x3] }
 0x278   :  { %2861 = vrot.lane.b32.xlu1 %v2007_v45, %s7345_s24  ;;  %v2971_v12 = vsel %vm2956_vm5, %v2934_v31, %v8756_v13  ;;  %v2972_v13 = vsel %vm2956_vm5, %v2935_v53, %v8825_v15 }
 0x279   :  { %v8903_v14 = vpop.permute.xlu0 %2563  ;;  %v3008_v55 = vsel %vm2993_vm6, %v2971_v12, %v8839_v58  ;;  %v3009_v34 = vsel %vm2993_vm6, %v2972_v13, %v8831_v49  ;;  %v3445_v58 = vrot.slane %v3438_v41, %v8043_v2  ;;  %v1937_v49 = vld [vmem:[#allocation2 + $0x114] sm:$0x3]  ;;  %v1793_v41 = vld [vmem:[#allocation2 + $0x122] sm:$0x3] }
 0x27a   :  { %v8901_v28 = vpop.permute.xlu1 %2137  ;;  %v3470_v44 = vcombine.low %v3008_v55, %v3116_v33  ;;  %v1795_v55 = vld [vmem:[#allocation2 + $0x12a] sm:$0x3] }
 0x27b   :  { %2727 = vrot.lane.b32.xlu0 %v1975_v18, %s7344_s17  ;;  %v3461_v18 = vrot.slane %v3454_v57, %v8043_v2 }
 0x27c   :  { %2865 = vrot.lane.b32.xlu1 %v2009_v8, %s7345_s24  ;;  %v1792_v8 = vld [vmem:[#allocation2 + $0x11e] sm:$0x3]  ;;  %v3477_v56 = vrot.slane %v3470_v44, %v8043_v2 }
 0x27d   :  { %v8924_v51 = vpop.permute.xlu0 %2559  ;;  %v6680_v15 = vcombine.low %v3445_v58, %v3461_v18 }
 0x27e   :  { %v2698_v45 = vpop.permute.xlu1 %2697 }
 0x27f   :  { %2435 = vrot.lane.b32.xlu0 %v1863_v9, %s7345_s24  ;;  %v3081_v27 = vsel %vm2956_vm5, %v3045_v63, %v2698_v45  ;;  %v3980_v45 = vrot.slane %v6680_v15, %v8043_v2  ;;  %v1829_v63 = vld [vmem:[#allocation2 + $0x120] sm:$0x3] }
 0x280   :  { %2149 = vrot.lane.b32.xlu1 %v1790_v59, %s7343_s12 }
 0x281   :  { %v8945_v25 = vpop.permute.xlu0 %2847 }
 0x282   :  { %v2842_v40 = vpop.permute.xlu1 %2841 }
 0x283   :  { %v3117_v17 = vsel %vm2993_vm6, %v3081_v27, %v2842_v40  ;;  %2439 = vrot.lane.b32.xlu0 %v1865_v50, %s7345_s24  ;;  %v1887_v50 = vld [vmem:[#allocation2 + $0x9e] sm:$0x3]  ;;  %v1974_v27 = vld [vmem:[#allocation2 + $0x12c] sm:$0x3]  ;;  %v1940_v40 = vld [vmem:[#allocation2 + $0x140] sm:$0x3] }
 0x284   :  { %v3486_v10 = vcombine.low %v3009_v34, %v3117_v17  ;;  %2153 = vrot.lane.b32.xlu1 %v1792_v8, %s7343_s12  ;;  %v3046_v44 = vsel %vm2919_vm4, %v1887_v50, %v8853_v54  ;;  %v1740_v34 = vld [vmem:[#allocation2 + $0x80] sm:$0x3]  ;;  %v1742_v17 = vld [vmem:[#allocation2 + $0xa8] sm:$0x3]  ;;  %v1888_v8 = vld [vmem:[#allocation2 + $0xa2] sm:$0x3] }
 0x285   :  { %v8957_v30 = vpop.permute.xlu0 %2567  ;;  %v3082_v58 = vsel %vm2956_vm5, %v3046_v44, %v8891_v21  ;;  %v3047_v15 = vsel %vm2919_vm4, %v1888_v8, %v8877_v48  ;;  %v2936_v54 = vsel %vm2919_vm4, %v1740_v34, %v8732_v23  ;;  %v1889_v21 = vld [vmem:[#allocation2 + $0xc6] sm:$0x3]  ;;  %v1832_v8 = vld [vmem:[#allocation2 + $0x12c] sm:$0x3] }
 0x286   :  { %v3493_v19 = vrot.slane %v3486_v10, %v8043_v2  ;;  %v8955_v22 = vpop.permute.xlu1 %2133  ;;  %v1741_v10 = vld [vmem:[#allocation2 + $0x84] sm:$0x3]  ;;  %v3048_v23 = vsel %vm2919_vm4, %v1889_v21, %v8924_v51 }
 0x287   :  { %2867 = vrot.lane.b32.xlu0 %v2010_v29, %s7345_s24  ;;  %v3083_v29 = vsel %vm2956_vm5, %v3047_v15, %v8883_v36 }
 0x288   :  { %v6682_v39 = vcombine.low %v3477_v56, %v3493_v19  ;;  %2581 = vrot.lane.b32.xlu1 %v1937_v49, %s7343_s12  ;;  %v1976_v56 = vld [vmem:[#allocation2 + $0x154] sm:$0x3]  ;;  %v1942_v19 = vld [vmem:[#allocation2 + $0x148] sm:$0x3]  ;;  %v2937_v49 = vsel %vm2919_vm4, %v1741_v10, %v8754_v5  ;;  %v3119_v48 = vsel %vm2993_vm6, %v3083_v29, %v8889_v3  ;;  %v2973_v5 = vsel %vm2956_vm5, %v2936_v54, %v8750_v20  ;;  %v2011_v54 = vld [vmem:[#allocation2 + $0x12e] sm:$0x3] }
 0x289   :  { %v8963_v57 = vpop.permute.xlu0 %2707  ;;  %v2974_v36 = vsel %vm2956_vm5, %v2937_v49, %v8817_v60  ;;  %v3084_v20 = vsel %vm2956_vm5, %v3048_v23, %v8406_v16  ;;  %v1979_v29 = vld [vmem:[#allocation2 + $0x160] sm:$0x3] }
 0x28a   :  { %v8961_v32 = vpop.permute.xlu1 %2281  ;;  %v3994_v31 = vrot.slane %v6682_v39, %v8043_v2  ;;  %v3011_v3 = vsel %vm2993_vm6, %v2974_v36, %v8871_v37 }
 0x28b   :  { %2871 = vrot.lane.b32.xlu0 %v2012_v42, %s7345_s24  ;;  %v3518_v51 = vcombine.low %v3011_v3, %v3119_v48  ;;  %v1794_v3 = vld [vmem:[#allocation2 + $0x126] sm:$0x3] }
 0x28c   :  { %2585 = vrot.lane.b32.xlu1 %v1939_v11, %s7343_s12  ;;  %v4003_v33 = vcombine.high %v3980_v45, %v3994_v31  ;;  %v4002_v59 = vcombine.low %v3980_v45, %v3994_v31  ;;  %v2938_v45 = vsel %vm2919_vm4, %v1742_v17, %v8827_v7  ;;  %v3118_v31 = vsel %vm2993_vm6, %v3082_v58, %v8857_v1 }
 0x28d   :  { %v8971_v12 = vpop.permute.xlu0 %2711  ;;  %v3010_v7 = vsel %vm2993_vm6, %v2973_v5, %v8833_v4  ;;  %v2975_v1 = vsel %vm2956_vm5, %v2938_v45, %v8845_v43  ;;  %v1830_v4 = vld [vmem:[#allocation2 + $0x124] sm:$0x3] }
 0x28e   :  { %v8969_v9 = vpop.permute.xlu1 %2277  ;;  %4295 = vmatprep.mubr.f32.mxu1 %v4003_v33  ;;  %v3502_v11 = vcombine.low %v3010_v7, %v3118_v31  ;;  %v3012_v43 = vsel %vm2993_vm6, %v2975_v1, %v8422_v26  ;;  %v2013_v31 = vld [vmem:[#allocation2 + $0x156] sm:$0x3]  ;;  %v1867_v1 = vld [vmem:[#allocation2 + $0x13c] sm:$0x3] }
 0x28f   :  { %4296 = vmatmul.mubr.f32.gmra.mxu1 %v4002_v59  ;;  %2155 = vrot.lane.b32.xlu0 %v1793_v41, %s7343_s12  ;;  %v1743_v59 = vld [vmem:[#allocation2 + $0xac] sm:$0x3]  ;;  %v1864_v41 = vld [vmem:[#allocation2 + $0x110] sm:$0x3] }
 0x290   :  { %2293 = vrot.lane.b32.xlu1 %v1827_v24, %s7344_s17  ;;  %v3120_v24 = vsel %vm2993_vm6, %v3084_v20, %v8945_v25  ;;  %v2939_v37 = vsel %vm2919_vm4, %v1743_v59, %v8861_v62  ;;  %v3525_v25 = vrot.slane %v3518_v51, %v8043_v2  ;;  %v3509_v50 = vrot.slane %v3502_v11, %v8043_v2  ;;  %v1796_v20 = vld [vmem:[#allocation2 + $0x12e] sm:$0x3]  ;;  %v2014_v59 = vld [vmem:[#allocation2 + $0x15a] sm:$0x3] }
 0x291   :  { %v8975_v53 = vpop.permute.xlu0 %2419  ;;  %v2976_v16 = vsel %vm2956_vm5, %v2939_v37, %v8867_v46  ;;  %v3534_v44 = vcombine.low %v3012_v43, %v3120_v24  ;;  %v1866_v46 = vld [vmem:[#allocation2 + $0x138] sm:$0x3]  ;;  %v1891_v24 = vld [vmem:[#allocation2 + $0xce] sm:$0x3]  ;;  %v1941_v43 = vld [vmem:[#allocation2 + $0x144] sm:$0x3] }
 0x292   :  { %v2418_v47 = vpop.permute.xlu1 %2417  ;;  %v1746_v37 = vld [vmem:[#allocation2 + $0xb8] sm:$0x3] }
 0x293   :  { %2159 = vrot.lane.b32.xlu0 %v1795_v55, %s7343_s12  ;;  %v3013_v34 = vsel %vm2993_vm6, %v2976_v16, %v2418_v47  ;;  %v3541_v26 = vrot.slane %v3534_v44, %v8043_v2  ;;  %v1977_v47 = vld [vmem:[#allocation2 + $0x158] sm:$0x3]  ;;  %v3050_v16 = vsel %vm2919_vm4, %v1891_v24, %v8903_v14  ;;  %v1893_v44 = vld [vmem:[#allocation2 + $0xd6] sm:$0x3] }
 0x294   :  { %2297 = vrot.lane.b32.xlu1 %v1829_v63, %s7344_s17  ;;  %v1890_v63 = vld [vmem:[#allocation2 + $0xca] sm:$0x3] }
 0x295   :  { %v8981_v18 = vpop.permute.xlu0 %2423 }
 0x296   :  { %v8979_v13 = vpop.permute.xlu1 %2565 }
 0x297   :  { %2587 = vrot.lane.b32.xlu0 %v1940_v40, %s7343_s12 }
 0x298   :  { %2725 = vrot.lane.b32.xlu1 %v1974_v27, %s7344_s17 }
 0x299   :  { %v8997_v42 = vpop.permute.xlu0 %2851 }
 0x29a   :  { %v2562_v39 = vpop.permute.xlu1 %2561 }
 0x29b   :  { %2591 = vrot.lane.b32.xlu0 %v1942_v19, %s7343_s12  ;;  %v3049_v55 = vsel %vm2919_vm4, %v1890_v63, %v2562_v39  ;;  %v6684_v19 = vcombine.low %v3509_v50, %v3525_v25  ;;  %v1744_v63 = vld [vmem:[#allocation2 + $0xb0] sm:$0x3]  ;;  %v1745_v50 = vld [vmem:[#allocation2 + $0xb4] sm:$0x3] }
 0x29c   :  { %2729 = vrot.lane.b32.xlu1 %v1976_v56, %s7344_s17  ;;  %v2940_v25 = vsel %vm2919_vm4, %v1744_v63, %v8873_v6  ;;  %v2941_v14 = vsel %vm2919_vm4, %v1745_v50, %v8955_v22 }
 0x29d   :  { %v9021_v60 = vpop.permute.xlu0 %2855  ;;  %v4015_v45 = vrot.slane %v6684_v19, %v8043_v2  ;;  %v1747_v19 = vld [vmem:[#allocation2 + $0xbc] sm:$0x3] }
 0x29e   :  { %v2706_v33 = vpop.permute.xlu1 %2705 }
 0x29f   :  { %2299 = vrot.lane.b32.xlu0 %v1830_v4, %s7344_s17  ;;  %v3085_v62 = vsel %vm2956_vm5, %v3049_v55, %v2706_v33  ;;  %v1869_v33 = vld [vmem:[#allocation2 + $0x144] sm:$0x3]  ;;  %v2942_v55 = vsel %vm2919_vm4, %v1746_v37, %v8863_v35 }
 0x2a0   :  { %2437 = vrot.lane.b32.xlu1 %v1864_v41, %s7345_s24 }
 0x2a1   :  { %v9037_v40 = vpop.permute.xlu0 %2139 }
 0x2a2   :  { %v2850_v27 = vpop.permute.xlu1 %2849 }
 0x2a3   :  { %v3121_v17 = vsel %vm2993_vm6, %v3085_v62, %v2850_v27  ;;  %2303 = vrot.lane.b32.xlu0 %v1832_v8, %s7344_s17  ;;  %v3086_v62 = vsel %vm2956_vm5, %v3050_v16, %v8963_v57  ;;  %v1892_v27 = vld [vmem:[#allocation2 + $0xd2] sm:$0x3]  ;;  %v2977_v57 = vsel %vm2956_vm5, %v2940_v25, %v8885_v38 }
 0x2a4   :  { %v3550_v58 = vcombine.low %v3013_v34, %v3121_v17  ;;  %2441 = vrot.lane.b32.xlu1 %v1866_v46, %s7345_s24  ;;  %v3052_v34 = vsel %vm2919_vm4, %v1893_v44, %v8957_v30  ;;  %v3051_v35 = vsel %vm2919_vm4, %v1892_v27, %v8979_v13  ;;  %v3122_v6 = vsel %vm2993_vm6, %v3086_v62, %v8997_v42  ;;  %v2016_v17 = vld [vmem:[#allocation2 + $0x162] sm:$0x3]  ;;  %v1980_v62 = vld [vmem:[#allocation2 + $0x164] sm:$0x3] }
 0x2a5   :  { %v9047_v56 = vpop.permute.xlu0 %2143  ;;  %v2978_v46 = vsel %vm2956_vm5, %v2941_v14, %v8969_v9  ;;  %v3088_v8 = vsel %vm2956_vm5, %v3052_v34, %v8971_v12  ;;  %v3014_v13 = vsel %vm2993_vm6, %v2977_v57, %v8975_v53  ;;  %v3857_v9 = vld [vmem:[%s9580_s3 + $0x118] sm:$0xff]  ;;  %v2979_v12 = vsel %vm2956_vm5, %v2942_v55, %v8879_v52  ;;  %v1868_v34 = vld [vmem:[#allocation2 + $0x140] sm:$0x3]  ;;  %v1870_v57 = vld [vmem:[#allocation2 + $0x148] sm:$0x3] }
 0x2a6   :  { %v3557_v10 = vrot.slane %v3550_v58, %v8043_v2  ;;  %v9045_v15 = vpop.permute.xlu1 %2569  ;;  %v3124_v42 = vsel %vm2993_vm6, %v3088_v8, %v9021_v60  ;;  %v2943_v53 = vsel %vm2919_vm4, %v1747_v19, %v8901_v28  ;;  %v3016_v60 = vsel %vm2993_vm6, %v2979_v12, %v8981_v18  ;;  %7033 = vmatpush3.msra.mxu1 %v3857_v9  ;;  %v1748_v19 = vld [vmem:[#allocation2 + $0xe0] sm:$0x3] }
 0x2a7   :  { %2731 = vrot.lane.b32.xlu0 %v1977_v47, %s7344_s17  ;;  %v1894_v47 = vld [vmem:[#allocation2 + $0xda] sm:$0x3]  ;;  %v2980_v52 = vsel %vm2956_vm5, %v2943_v53, %v8961_v32  ;;  %7034 = vmatprep.subr.mxu1 %v7342_v0  ;;  %v1750_v53 = vld [vmem:[#allocation2 + $0xe8] sm:$0x3] }
 0x2a8   :  { %v6686_v49 = vcombine.low %v3541_v26, %v3557_v10  ;;  %2869 = vrot.lane.b32.xlu1 %v2011_v54, %s7345_s24  ;;  %v1943_v10 = vld [vmem:[#allocation2 + $0x14c] sm:$0x3]  ;;  %v3566_v54 = vcombine.low %v3014_v13, %v3122_v6 }
 0x2a9   :  { %v9051_v39 = vpop.permute.xlu0 %2571 }
 0x2aa   :  { %v2710_v21 = vpop.permute.xlu1 %2709  ;;  %v4029_v48 = vrot.slane %v6686_v49, %v8043_v2 }
 0x2ab   :  { %2735 = vrot.lane.b32.xlu0 %v1979_v29, %s7344_s17  ;;  %v3087_v22 = vsel %vm2956_vm5, %v3051_v35, %v2710_v21  ;;  %v3053_v29 = vsel %vm2919_vm4, %v1894_v47, %v9045_v15  ;;  %v3598_v21 = vcombine.low %v3016_v60, %v3124_v42  ;;  %v3573_v15 = vrot.slane %v3566_v54, %v8043_v2  ;;  %v3855_v35 = vld [vmem:[%s9580_s3 + $0x108] sm:$0xff]  ;;  %v1895_v54 = vld [vmem:[#allocation2 + $0xfe] sm:$0x3] }
 0x2ac   :  { %2873 = vrot.lane.b32.xlu1 %v2013_v31, %s7345_s24  ;;  %v4038_v23 = vcombine.high %v4015_v45, %v4029_v48  ;;  %v4037_v5 = vcombine.low %v4015_v45, %v4029_v48  ;;  %v3054_v60 = vsel %vm2919_vm4, %v1895_v54, %v9051_v39 }
 0x2ad   :  { %v9057_v7 = vpop.permute.xlu0 %2575  ;;  %v3605_v32 = vrot.slane %v3598_v21, %v8043_v2  ;;  %v1897_v21 = vld [vmem:[#allocation2 + $0x106] sm:$0x3] }
 0x2ae   :  { %v2714_v36 = vpop.permute.xlu1 %2713  ;;  %4300 = vmatprep.mubr.f32.mxu1 %v4038_v23 }
 0x2af   :  { %4301 = vmatmul.mubr.f32.gmra.mxu1 %v4037_v5  ;;  %2443 = vrot.lane.b32.xlu0 %v1867_v1, %s7345_s24  ;;  %v3089_v45 = vsel %vm2956_vm5, %v3053_v29, %v2714_v36  ;;  %v1831_v5 = vld [vmem:[#allocation2 + $0x128] sm:$0x3]  ;;  %v2944_v29 = vsel %vm2919_vm4, %v1748_v19, %v9037_v40 }
 0x2b0   :  { %2157 = vrot.lane.b32.xlu1 %v1794_v3, %s7343_s12 }
 0x2b1   :  { %v9061_v11 = vpop.permute.xlu0 %2283 }
 0x2b2   :  { %v2422_v51 = vpop.permute.xlu1 %2421  ;;  %v2981_v40 = vsel %vm2956_vm5, %v2944_v29, %v9061_v11 }
 0x2b3   :  { %2447 = vrot.lane.b32.xlu0 %v1869_v33, %s7345_s24  ;;  %v3015_v26 = vsel %vm2993_vm6, %v2978_v46, %v2422_v51  ;;  %v1833_v33 = vld [vmem:[#allocation2 + $0x130] sm:$0x3]  ;;  %v3854_v46 = vld [vmem:[%s9580_s3 + $0x100] sm:$0xff] }
 0x2b4   :  { %2161 = vrot.lane.b32.xlu1 %v1796_v20, %s7343_s12 }
 0x2b5   :  { %v9065_v4 = vpop.permute.xlu0 %2287 }
 0x2b6   :  { %v2426_v41 = vpop.permute.xlu1 %2425 }
 0x2b7   :  { %2875 = vrot.lane.b32.xlu0 %v2014_v59, %s7345_s24  ;;  %v3017_v28 = vsel %vm2993_vm6, %v2980_v52, %v2426_v41  ;;  %v3856_v59 = vld [vmem:[%s9580_s3 + $0x110] sm:$0xff]  ;;  %v2946_v52 = vsel %vm2919_vm4, %v1750_v53, %v9047_v56  ;;  %s7348_s3 = smov [#allocation19]  }
 0x2b8   :  { %2589 = vrot.lane.b32.xlu1 %v1941_v43, %s7343_s12  ;;  %7035 = vmatpush3.msra.mxu1 %v3856_v59  ;;  %v1978_v43 = vld [vmem:[#allocation2 + $0x15c] sm:$0x3]  ;;  %v2983_v11 = vsel %vm2956_vm5, %v2946_v52, %v9065_v4  ;;  %v1898_v59 = vld [vmem:[#allocation2 + $0x10a] sm:$0x3] }
 0x2b9   :  { %v9092_v30 = vpop.permute.xlu0 %2715  ;;  %7036 = vmatprep.subr.mxu1 %v7342_v0 }
 0x2ba   :  { %v2854_v58 = vpop.permute.xlu1 %2853  ;;  %7037 = vmatpush3.msra.mxu1 %v3855_v35 }
 0x2bb   :  { %v3123_v38 = vsel %vm2993_vm6, %v3087_v22, %v2854_v58  ;;  %2879 = vrot.lane.b32.xlu0 %v2016_v17, %s7345_s24  ;;  %7038 = vmatprep.subr.mxu1 %v7342_v0  ;;  %v2015_v58 = vld [vmem:[#allocation2 + $0x15e] sm:$0x3] }
 0x2bc   :  { %v3582_v49 = vcombine.low %v3015_v26, %v3123_v38  ;;  %2593 = vrot.lane.b32.xlu1 %v1943_v10, %s7343_s12  ;;  %7039 = vmatpush3.msra.mxu1 %v3854_v46  ;;  %v2017_v26 = vld [vmem:[#allocation2 + $0x166] sm:$0x3] }
 0x2bd   :  { %v9117_v23 = vpop.permute.xlu0 %2719 }
 0x2be   :  { %v3589_v48 = vrot.slane %v3582_v49, %v8043_v2  ;;  %v2858_v31 = vpop.permute.xlu1 %2857 }
 0x2bf   :  { %v3125_v18 = vsel %vm2993_vm6, %v3089_v45, %v2858_v31  ;;  %v3090_v45 = vsel %vm2956_vm5, %v3054_v60, %v9092_v30  ;;  %v1896_v31 = vld [vmem:[#allocation2 + $0x102] sm:$0x3] }
 0x2c0   :  { %v3614_v3 = vcombine.low %v3017_v28, %v3125_v18  ;;  %2301 = vrot.lane.b32.xlu1 %v1831_v5, %s7344_s17  ;;  %v6688_v36 = vcombine.low %v3573_v15, %v3589_v48  ;;  %v1749_v48 = vld [vmem:[#allocation2 + $0xe4] sm:$0x3]  ;;  %v3056_v28 = vsel %vm2919_vm4, %v1897_v21, %v9057_v7 }
 0x2c1   :  { %v9126_v20 = vpop.permute.xlu0 %2427  ;;  %v3092_v56 = vsel %vm2956_vm5, %v3056_v28, %v9117_v23 }
 0x2c2   :  { %v3621_v1 = vrot.slane %v3614_v3, %v8043_v2  ;;  %v2142_v51 = vpop.permute.xlu1 %2141  ;;  %v4050_v63 = vrot.slane %v6688_v36, %v8043_v2  ;;  %v3018_v7 = vsel %vm2993_vm6, %v2981_v40, %v9126_v20  ;;  %v1752_v40 = vld [vmem:[#allocation2 + $0xf0] sm:$0x3] }
 0x2c3   :  { %v2945_v18 = vsel %vm2919_vm4, %v1749_v48, %v2142_v51 }
 0x2c4   :  { %v6690_v24 = vcombine.low %v3605_v32, %v3621_v1  ;;  %2305 = vrot.lane.b32.xlu1 %v1833_v33, %s7344_s17  ;;  %v1751_v33 = vld [vmem:[#allocation2 + $0xec] sm:$0x3] }
 0x2c5   :  { %v9135_v37 = vpop.permute.xlu0 %2431 }
 0x2c6   :  { %v9133_v41 = vpop.permute.xlu1 %2145  ;;  %v4064_v16 = vrot.slane %v6690_v24, %v8043_v2 }
 0x2c8   :  { %2733 = vrot.lane.b32.xlu1 %v1978_v43, %s7344_s17  ;;  %v4073_v55 = vcombine.high %v4050_v63, %v4064_v16  ;;  %v4072_v25 = vcombine.low %v4050_v63, %v4064_v16  ;;  %v2947_v63 = vsel %vm2919_vm4, %v1751_v33, %v9133_v41  ;;  %v3020_v16 = vsel %vm2993_vm6, %v2983_v11, %v9135_v37 }
 0x2c9   :  { %v2860_v44 = vpop.permute.xlu0 %2859 }
 0x2ca   :  { %v2574_v50 = vpop.permute.xlu1 %2573  ;;  %4305 = vmatprep.mubr.f32.mxu1 %v4073_v55  ;;  %v3126_v39 = vsel %vm2993_vm6, %v3090_v45, %v2860_v44 }
 0x2cb   :  { %4306 = vmatmul.mubr.f32.gmra.mxu1 %v4072_v25  ;;  %v3055_v5 = vsel %vm2919_vm4, %v1896_v31, %v2574_v50  ;;  %v3630_v23 = vcombine.low %v3018_v7, %v3126_v39 }
 0x2cc   :  { %2737 = vrot.lane.b32.xlu1 %v1980_v62, %s7344_s17 }
 0x2cd   :  { %v2864_v14 = vpop.permute.xlu0 %2863  ;;  %v3637_v41 = vrot.slane %v3630_v23, %v8043_v2 }
 0x2ce   :  { %v2578_v27 = vpop.permute.xlu1 %2577  ;;  %v3128_v36 = vsel %vm2993_vm6, %v3092_v56, %v2864_v14 }
 0x2cf   :  { %v3057_v20 = vsel %vm2919_vm4, %v1898_v59, %v2578_v27  ;;  %v3662_v43 = vcombine.low %v3020_v16, %v3128_v36  ;;  %v1753_v36 = vld [vmem:[#allocation2 + $0xf4] sm:$0x3] }
 0x2d0   :  { %2445 = vrot.lane.b32.xlu1 %v1868_v34, %s7345_s24 }
 0x2d1   :  { %v9145_v17 = vpop.permute.xlu0 %2147  ;;  %v3669_v37 = vrot.slane %v3662_v43, %v8043_v2 }
 0x2d2   :  { %v2286_v6 = vpop.permute.xlu1 %2285 }
 0x2d3   :  { %v2982_v15 = vsel %vm2956_vm5, %v2945_v18, %v2286_v6  ;;  %v1754_v18 = vld [vmem:[#allocation2 + $0x118] sm:$0x3] }
 0x2d4   :  { %2449 = vrot.lane.b32.xlu1 %v1870_v57, %s7345_s24 }
 0x2d5   :  { %v9152_v22 = vpop.permute.xlu0 %2151 }
 0x2d6   :  { %v2290_v8 = vpop.permute.xlu1 %2289 }
 0x2d7   :  { %v2984_v55 = vsel %vm2956_vm5, %v2947_v63, %v2290_v8 }
 0x2d8   :  { %2877 = vrot.lane.b32.xlu1 %v2015_v58, %s7345_s24 }
 0x2d9   :  { %v9155_v42 = vpop.permute.xlu0 %2579 }
 0x2da   :  { %v2718_v13 = vpop.permute.xlu1 %2717 }
 0x2db   :  { %v3091_v30 = vsel %vm2956_vm5, %v3055_v5, %v2718_v13  ;;  %v1899_v5 = vld [vmem:[#allocation2 + $0x10e] sm:$0x3] }
 0x2dc   :  { %2881 = vrot.lane.b32.xlu1 %v2017_v26, %s7345_s24  ;;  %v3058_v56 = vsel %vm2919_vm4, %v1899_v5, %v9155_v42 }
 0x2dd   :  { %v9158_v10 = vpop.permute.xlu0 %2583 }
 0x2de   :  { %v2722_v38 = vpop.permute.xlu1 %2721 }
 0x2df   :  { %v3093_v25 = vsel %vm2956_vm5, %v3057_v20, %v2722_v38 }
 0x2e1   :  { %v9160_v12 = vpop.permute.xlu0 %2291 }
 0x2e2   :  { %v2430_v9 = vpop.permute.xlu1 %2429 }
 0x2e3   :  { %v3019_v1 = vsel %vm2993_vm6, %v2982_v15, %v2430_v9  ;;  %v2948_v15 = vsel %vm2919_vm4, %v1752_v40, %v9145_v17 }
 0x2e4   :  { %v2985_v17 = vsel %vm2956_vm5, %v2948_v15, %v9160_v12 }
 0x2e5   :  { %v9162_v49 = vpop.permute.xlu0 %2295 }
 0x2e6   :  { %v2434_v47 = vpop.permute.xlu1 %2433 }
 0x2e7   :  { %v3021_v62 = vsel %vm2993_vm6, %v2984_v55, %v2434_v47  ;;  %v1755_v55 = vld [vmem:[#allocation2 + $0x11c] sm:$0x3] }
 0x2e9   :  { %v2724_v32 = vpop.permute.xlu0 %2723 }
 0x2ea   :  { %v2862_v3 = vpop.permute.xlu1 %2861  ;;  %v3094_v7 = vsel %vm2956_vm5, %v3058_v56, %v2724_v32 }
 0x2eb   :  { %v3127_v51 = vsel %vm2993_vm6, %v3091_v30, %v2862_v3  ;;  %v2950_v30 = vsel %vm2919_vm4, %v1754_v18, %v9152_v22  ;;  %v1901_v3 = vld [vmem:[#allocation2 + $0x136] sm:$0x3] }
 0x2ec   :  { %v3646_v24 = vcombine.low %v3019_v1, %v3127_v51  ;;  %v1900_v1 = vld [vmem:[#allocation2 + $0x112] sm:$0x3]  ;;  %v3060_v11 = vsel %vm2919_vm4, %v1901_v3, %v9158_v10  ;;  %v2987_v43 = vsel %vm2956_vm5, %v2950_v30, %v9162_v49  ;;  %v4756_v30 = vld [vmem:[#allocation3 + $0x6] sm:$0x3]  ;;  %v4755_v3 = vld [vmem:[#allocation3 + $0x2] sm:$0x3] }
 0x2ed   :  { %v2728_v44 = vpop.permute.xlu0 %2727  ;;  %4844 = vrot.lane.b32.xlu1 %v4756_v30, %s7344_s17  ;;  %4842 = vrot.lane.b32.xlu0 %v4755_v3, %s7344_s17  ;;  %v6636_v30 = vld.sshfl [vmem:[#allocation2 + $0x50] sm:$0x3 pattern:$0x76325410] }
 0x2ee   :  { %v3653_v50 = vrot.slane %v3646_v24, %v8043_v2  ;;  %v2866_v4 = vpop.permute.xlu1 %2865  ;;  %v3096_v22 = vsel %vm2956_vm5, %v3060_v11, %v2728_v44  ;;  %v6637_v3 = vld.sshfl [vmem:[#allocation2 + $0x74] sm:$0x3 pattern:$0x76325410] }
 0x2ef   :  { %v3129_v14 = vsel %vm2993_vm6, %v3093_v25, %v2866_v4  ;;  %v1902_v25 = vld [vmem:[#allocation2 + $0x13a] sm:$0x3] }
 0x2f0   :  { %v3678_v34 = vcombine.low %v3021_v62, %v3129_v14  ;;  %v6692_v35 = vcombine.low %v3637_v41, %v3653_v50 }
 0x2f1   :  { %v2436_v57 = vpop.permute.xlu0 %2435 }
 0x2f2   :  { %v3685_v27 = vrot.slane %v3678_v34, %v8043_v2  ;;  %v2150_v6 = vpop.permute.xlu1 %2149  ;;  %v4085_v13 = vrot.slane %v6692_v35, %v8043_v2  ;;  %v3022_v63 = vsel %vm2993_vm6, %v2985_v17, %v2436_v57  ;;  %v1756_v17 = vld [vmem:[#allocation2 + $0x120] sm:$0x3] }
 0x2f3   :  { %v2949_v33 = vsel %vm2919_vm4, %v1753_v36, %v2150_v6  ;;  %v4757_v36 = vld [vmem:[#allocation3 + $0xa] sm:$0x3] }
 0x2f4   :  { %v6694_v46 = vcombine.low %v3669_v37, %v3685_v27  ;;  %4846 = vrot.lane.b32.xlu0 %v4757_v36, %s7344_s17 }
 0x2f5   :  { %v2440_v58 = vpop.permute.xlu0 %2439 }
 0x2f6   :  { %v2154_v8 = vpop.permute.xlu1 %2153  ;;  %v4099_v26 = vrot.slane %v6694_v46, %v8043_v2  ;;  %v3024_v44 = vsel %vm2993_vm6, %v2987_v43, %v2440_v58 }
 0x2f7   :  { %v2951_v4 = vsel %vm2919_vm4, %v1755_v55, %v2154_v8  ;;  %v4781_v55 = vld [vmem:[#allocation3 + $0x50] sm:$0x3] }
 0x2f8   :  { %v4108_v38 = vcombine.high %v4085_v13, %v4099_v26  ;;  %v4107_v9 = vcombine.low %v4085_v13, %v4099_v26 }
 0x2f9   :  { %v2868_v54 = vpop.permute.xlu0 %2867 }
 0x2fa   :  { %v2582_v19 = vpop.permute.xlu1 %2581  ;;  %4310 = vmatprep.mubr.f32.mxu1 %v4108_v38  ;;  %v3130_v23 = vsel %vm2993_vm6, %v3094_v7, %v2868_v54  ;;  %v4778_v7 = vld [vmem:[#allocation3 + $0x30] sm:$0x3] }
 0x2fb   :  { %4311 = vmatmul.mubr.f32.gmra.mxu1 %v4107_v9  ;;  %v3059_v42 = vsel %vm2919_vm4, %v1900_v1, %v2582_v19  ;;  %v3694_v12 = vcombine.low %v3022_v63, %v3130_v23  ;;  %4884 = vrot.lane.b32.xlu1 %v4778_v7, %s7344_s17 }
 0x2fd   :  { %v2872_v53 = vpop.permute.xlu0 %2871  ;;  %v3701_v57 = vrot.slane %v3694_v12, %v8043_v2 }
 0x2fe   :  { %v2586_v47 = vpop.permute.xlu1 %2585  ;;  %v3132_v10 = vsel %vm2993_vm6, %v3096_v22, %v2872_v53  ;;  %v1758_v22 = vld [vmem:[#allocation2 + $0x128] sm:$0x3] }
 0x2ff   :  { %v3061_v62 = vsel %vm2919_vm4, %v1902_v25, %v2586_v47  ;;  %v3726_v14 = vcombine.low %v3024_v44, %v3132_v10  ;;  %v1905_v10 = vld [vmem:[#allocation2 + $0x146] sm:$0x3] }
 0x301   :  { %v9205_v29 = vpop.permute.xlu0 %2155  ;;  %v3733_v8 = vrot.slane %v3726_v14, %v8043_v2 }
 0x302   :  { %v2294_v60 = vpop.permute.xlu1 %2293 }
 0x303   :  { %v2986_v32 = vsel %vm2956_vm5, %v2949_v33, %v2294_v60  ;;  %v4775_v33 = vld [vmem:[#allocation3 + $0x10] sm:$0x3] }
 0x304   :  { %4878 = vrot.lane.b32.xlu0 %v4775_v33, %s7344_s17 }
 0x305   :  { %v9207_v45 = vpop.permute.xlu0 %2159 }
 0x306   :  { %v2298_v52 = vpop.permute.xlu1 %2297  ;;  %v2954_v63 = vsel %vm2919_vm4, %v1758_v22, %v9207_v45  ;;  %v6640_v22 = vld.sshfl [vmem:[#allocation2 + $0x80] sm:$0x3 pattern:$0x76325410] }
 0x307   :  { %v2988_v41 = vsel %vm2956_vm5, %v2951_v4, %v2298_v52 }
 0x308   :  { %4890 = vrot.lane.b32.xlu0 %v4781_v55, %s7344_s17 }
 0x309   :  { %v9209_v31 = vpop.permute.xlu0 %2587 }
 0x30a   :  { %v2726_v21 = vpop.permute.xlu1 %2725 }
 0x30b   :  { %v3095_v59 = vsel %vm2956_vm5, %v3059_v42, %v2726_v21  ;;  %v1903_v42 = vld [vmem:[#allocation2 + $0x13e] sm:$0x3] }
 0x30d   :  { %v9218_v51 = vpop.permute.xlu0 %2591 }
 0x30e   :  { %v2730_v48 = vpop.permute.xlu1 %2729  ;;  %v3064_v12 = vsel %vm2919_vm4, %v1905_v10, %v9218_v51  ;;  %v6643_v10 = vld.sshfl [vmem:[#allocation2 + $0xac] sm:$0x3 pattern:$0x76325410] }
 0x30f   :  { %v3097_v34 = vsel %vm2956_vm5, %v3061_v62, %v2730_v48 }
 0x311   :  { %v2300_v37 = vpop.permute.xlu0 %2299 }
 0x312   :  { %v2438_v28 = vpop.permute.xlu1 %2437 }
 0x313   :  { %v3023_v16 = vsel %vm2993_vm6, %v2986_v32, %v2438_v28  ;;  %v3062_v32 = vsel %vm2919_vm4, %v1903_v42, %v9209_v31 }
 0x315   :  { %v2304_v38 = vpop.permute.xlu0 %2303 }
 0x316   :  { %v2442_v39 = vpop.permute.xlu1 %2441 }
 0x317   :  { %v3025_v49 = vsel %vm2993_vm6, %v2988_v41, %v2442_v39 }
 0x319   :  { %v2732_v52 = vpop.permute.xlu0 %2731 }
 0x31a   :  { %v2870_v24 = vpop.permute.xlu1 %2869 }
 0x31b   :  { %v3131_v20 = vsel %vm2993_vm6, %v3095_v59, %v2870_v24  ;;  %v1757_v59 = vld [vmem:[#allocation2 + $0x124] sm:$0x3]  ;;  %v2952_v24 = vsel %vm2919_vm4, %v1756_v17, %v9205_v29  ;;  %v6639_v17 = vld.sshfl [vmem:[#allocation2 + $0x7c] sm:$0x3 pattern:$0x76325410] }
 0x31c   :  { %v3710_v50 = vcombine.low %v3023_v16, %v3131_v20  ;;  %v3098_v16 = vsel %vm2956_vm5, %v3062_v32, %v2732_v52  ;;  %v1904_v20 = vld [vmem:[#allocation2 + $0x142] sm:$0x3]  ;;  %v2989_v29 = vsel %vm2956_vm5, %v2952_v24, %v2300_v37  ;;  %v1759_v37 = vld [vmem:[#allocation2 + $0x12c] sm:$0x3] }
 0x31d   :  { %v2736_v28 = vpop.permute.xlu0 %2735  ;;  %v6641_v24 = vld.sshfl [vmem:[#allocation2 + $0x84] sm:$0x3 pattern:$0x76325410] }
 0x31e   :  { %v3717_v35 = vrot.slane %v3710_v50, %v8043_v2  ;;  %v2874_v27 = vpop.permute.xlu1 %2873  ;;  %v3100_v4 = vsel %vm2956_vm5, %v3064_v12, %v2736_v28  ;;  %v6634_v28 = vld.sshfl [vmem:[#allocation2 + $0x48] sm:$0x3 pattern:$0x76325410] }
 0x31f   :  { %v3133_v6 = vsel %vm2993_vm6, %v3097_v34, %v2874_v27 }
 0x320   :  { %v3742_v46 = vcombine.low %v3025_v49, %v3133_v6  ;;  %v6696_v58 = vcombine.low %v3701_v57, %v3717_v35  ;;  %v2991_v35 = vsel %vm2956_vm5, %v2954_v63, %v2304_v38  ;;  %v1906_v49 = vld [vmem:[#allocation2 + $0x14a] sm:$0x3]  ;;  %v6642_v63 = vld.sshfl [vmem:[#allocation2 + $0x88] sm:$0x3 pattern:$0x76325410] }
 0x321   :  { %v2444_v5 = vpop.permute.xlu0 %2443 }
 0x322   :  { %v3749_v13 = vrot.slane %v3742_v46, %v8043_v2  ;;  %v2158_v26 = vpop.permute.xlu1 %2157  ;;  %v4120_v54 = vrot.slane %v6696_v58, %v8043_v2  ;;  %v3026_v14 = vsel %vm2993_vm6, %v2989_v29, %v2444_v5 }
 0x323   :  { %v2953_v31 = vsel %vm2919_vm4, %v1757_v59, %v2158_v26 }
 0x324   :  { %v6698_v9 = vcombine.low %v3733_v8, %v3749_v13 }
 0x325   :  { %v2448_v56 = vpop.permute.xlu0 %2447 }
 0x326   :  { %v2162_v19 = vpop.permute.xlu1 %2161  ;;  %v4134_v47 = vrot.slane %v6698_v9, %v8043_v2  ;;  %v3028_v46 = vsel %vm2993_vm6, %v2991_v35, %v2448_v56 }
 0x327   :  { %v2955_v57 = vsel %vm2919_vm4, %v1759_v37, %v2162_v19 }
 0x328   :  { %v4143_v53 = vcombine.high %v4120_v54, %v4134_v47  ;;  %v4142_v60 = vcombine.low %v4120_v54, %v4134_v47 }
 0x329   :  { %v2876_v1 = vpop.permute.xlu0 %2875 }
 0x32a   :  { %v2590_v21 = vpop.permute.xlu1 %2589  ;;  %4315 = vmatprep.mubr.f32.mxu1 %v4143_v53  ;;  %v3134_v50 = vsel %vm2993_vm6, %v3098_v16, %v2876_v1  ;;  %v6631_v53 = vld.sshfl [vmem:[#allocation2 + $0x3c] sm:$0x3 pattern:$0x76325410] }
 0x32b   :  { %4316 = vmatmul.mubr.f32.gmra.mxu1 %v4142_v60  ;;  %v3063_v25 = vsel %vm2919_vm4, %v1904_v20, %v2590_v21  ;;  %v3758_v27 = vcombine.low %v3026_v14, %v3134_v50  ;;  %v6632_v60 = vld.sshfl [vmem:[#allocation2 + $0x40] sm:$0x3 pattern:$0x76325410] }
 0x32c   :  { %v6633_v21 = vld.sshfl [vmem:[#allocation2 + $0x44] sm:$0x3 pattern:$0x76325410] }
 0x32d   :  { %v2880_v43 = vpop.permute.xlu0 %2879  ;;  %v3765_v19 = vrot.slane %v3758_v27, %v8043_v2  ;;  %v6671_v56 = vcombine.low %v6633_v21, %v6634_v28  ;;  %v6638_v1 = vld.sshfl [vmem:[#allocation2 + $0x78] sm:$0x3 pattern:$0x76325410] }
 0x32e   :  { %v2594_v48 = vpop.permute.xlu1 %2593  ;;  %v3136_v41 = vsel %vm2993_vm6, %v3100_v4, %v2880_v43  ;;  %v6675_v59 = vcombine.low %v6637_v3, %v6638_v1  ;;  %v6644_v16 = vld.sshfl [vmem:[#allocation2 + $0xb0] sm:$0x3 pattern:$0x76325410] }
 0x32f   :  { %v3065_v8 = vsel %vm2919_vm4, %v1906_v49, %v2594_v48  ;;  %v3790_v58 = vcombine.low %v3028_v46, %v3136_v41  ;;  %v6645_v43 = vld.sshfl [vmem:[#allocation2 + $0xb4] sm:$0x3 pattern:$0x76325410]  ;;  %v6681_v29 = vcombine.low %v6643_v10, %v6644_v16 }
 0x330   :  { %v3931_v12 = vrot.slane %v6675_v59, %v8043_v2  ;;  %v6646_v50 = vld.sshfl [vmem:[#allocation2 + $0xb8] sm:$0x3 pattern:$0x76325410] }
 0x331   :  { %v3797_v48 = vrot.slane %v3790_v58, %v8043_v2  ;;  %v6683_v4 = vcombine.low %v6645_v43, %v6646_v50  ;;  %v3987_v35 = vrot.slane %v6681_v29, %v8043_v2  ;;  %v6651_v27 = vld.sshfl [vmem:[#allocation2 + $0xec] sm:$0x3 pattern:$0x76325410]  ;;  %v5305_v43 = vld [vmem:[#allocation10 + $0xf8] sm:$0xff]  ;;  %v5303_v50 = vld [vmem:[#allocation10 + $0xe8] sm:$0xff] }
 0x332   :  { %v2302_v18 = vpop.permute.xlu1 %2301  ;;  %v6652_v49 = vld.sshfl [vmem:[#allocation2 + $0xf0] sm:$0x3 pattern:$0x76325410]  ;;  %6846 = vmatprep.subr.mxu0 %v5305_v43  ;;  %v5287_v29 = vld [vmem:[#allocation10 + $0x68] sm:$0xff] }
 0x333   :  { %v2990_v45 = vsel %vm2956_vm5, %v2953_v31, %v2302_v18  ;;  %v6677_v31 = vcombine.low %v6639_v17, %v6640_v22  ;;  %v4001_v37 = vrot.slane %v6683_v4, %v8043_v2  ;;  %v6654_v58 = vld.sshfl [vmem:[#allocation2 + $0xf8] sm:$0x3 pattern:$0x76325410] }
 0x334   :  { %v6659_v28 = vld.sshfl [vmem:[#allocation2 + $0x12c] sm:$0x3 pattern:$0x76325410] }
 0x335   :  { %v3952_v14 = vrot.slane %v6677_v31, %v8043_v2  ;;  %v6663_v3 = vld.sshfl [vmem:[#allocation2 + $0x15c] sm:$0x3 pattern:$0x76325410]  ;;  %v5288_v31 = vld [vmem:[#allocation10 + $0x70] sm:$0xff] }
 0x336   :  { %v2306_v39 = vpop.permute.xlu1 %2305 }
 0x337   :  { %v2992_v13 = vsel %vm2956_vm5, %v2955_v57, %v2306_v39 }
 0x33a   :  { %v2734_v40 = vpop.permute.xlu1 %2733 }
 0x33b   :  { %v3099_v44 = vsel %vm2956_vm5, %v3063_v25, %v2734_v40  ;;  %v6669_v40 = vcombine.low %v6631_v53, %v6632_v60  ;;  %v6679_v25 = vcombine.low %v6641_v24, %v6642_v63  ;;  %v6689_v53 = vcombine.low %v6651_v27, %v6652_v49 }
 0x33d   :  { %v3882_v42 = vrot.slane %v6669_v40, %v8043_v2  ;;  %v3966_v41 = vrot.slane %v6679_v25, %v8043_v2  ;;  %v6661_v40 = vld.sshfl [vmem:[#allocation2 + $0x154] sm:$0x3 pattern:$0x76325410] }
 0x33e   :  { %v2738_v15 = vpop.permute.xlu1 %2737 }
 0x33f   :  { %v3101_v26 = vsel %vm2956_vm5, %v3065_v8, %v2738_v15  ;;  %v6635_v15 = vld.sshfl [vmem:[#allocation2 + $0x4c] sm:$0x3 pattern:$0x76325410] }
 0x340   :  { %v6673_v32 = vcombine.low %v6635_v15, %v6636_v30  ;;  %v6653_v8 = vld.sshfl [vmem:[#allocation2 + $0xf4] sm:$0x3 pattern:$0x76325410] }
 0x341   :  { %v6691_v60 = vcombine.low %v6653_v8, %v6654_v58 }
 0x342   :  { %v2446_v11 = vpop.permute.xlu1 %2445  ;;  %v3917_v55 = vrot.slane %v6673_v32, %v8043_v2 }
 0x343   :  { %v3027_v51 = vsel %vm2993_vm6, %v2990_v45, %v2446_v11  ;;  %v6647_v45 = vld.sshfl [vmem:[#allocation2 + $0xbc] sm:$0x3 pattern:$0x76325410] }
 0x346   :  { %v2450_v23 = vpop.permute.xlu1 %2449 }
 0x347   :  { %v3029_v38 = vsel %vm2993_vm6, %v2992_v13, %v2450_v23  ;;  %v3896_v23 = vrot.slane %v6671_v56, %v8043_v2  ;;  %v6655_v13 = vld.sshfl [vmem:[#allocation2 + $0x11c] sm:$0x3 pattern:$0x76325410] }
 0x348   :  { %v6662_v56 = vld.sshfl [vmem:[#allocation2 + $0x158] sm:$0x3 pattern:$0x76325410] }
 0x349   :  { %v3899_v20 = vcombine.low %v3882_v42, %v3896_v23  ;;  %v6666_v42 = vld.sshfl [vmem:[#allocation2 + $0x168] sm:$0x3 pattern:$0x76325410] }
 0x34a   :  { %v2878_v62 = vpop.permute.xlu1 %2877 }
 0x34b   :  { %v3135_v34 = vsel %vm2993_vm6, %v3099_v44, %v2878_v62  ;;  %v6648_v44 = vld.sshfl [vmem:[#allocation2 + $0xc0] sm:$0x3 pattern:$0x76325410]  ;;  %v3934_v62 = vcombine.low %v3917_v55, %v3931_v12  ;;  %v5289_v55 = vld [vmem:[#allocation10 + $0x78] sm:$0xff]  ;;  %v5304_v12 = vld [vmem:[#allocation10 + $0xf0] sm:$0xff] }
 0x34c   :  { %v3774_v6 = vcombine.low %v3027_v51, %v3135_v34  ;;  %v6649_v51 = vld.sshfl [vmem:[#allocation2 + $0xe4] sm:$0x3 pattern:$0x76325410]  ;;  %v6685_v57 = vcombine.low %v6647_v45, %v6648_v44  ;;  %6847 = vmatpush3.msra.mxu0 %v5289_v55  ;;  %v5302_v45 = vld [vmem:[#allocation10 + $0xe0] sm:$0xff] }
 0x34d   :  { %v6650_v34 = vld.sshfl [vmem:[#allocation2 + $0xe8] sm:$0x3 pattern:$0x76325410]  ;;  %6848 = vmatprep.subr.mxu0 %v5304_v12  ;;  %v5286_v44 = vld [vmem:[#allocation10 + $0x60] sm:$0xff] }
 0x34e   :  { %v3781_v9 = vrot.slane %v3774_v6, %v8043_v2  ;;  %v2882_v54 = vpop.permute.xlu1 %2881  ;;  %v3969_v6 = vcombine.low %v3952_v14, %v3966_v41  ;;  %v6687_v46 = vcombine.low %v6649_v51, %v6650_v34  ;;  %6849 = vmatpush3.msra.mxu0 %v5288_v31  ;;  %v5285_v14 = vld [vmem:[#allocation10 + $0x58] sm:$0xff]  ;;  %v5300_v51 = vld [vmem:[#allocation10 + $0xd0] sm:$0xff] }
 0x34f   :  { %v3137_v47 = vsel %vm2993_vm6, %v3101_v26, %v2882_v54  ;;  %v6656_v26 = vld.sshfl [vmem:[#allocation2 + $0x120] sm:$0x3 pattern:$0x76325410]  ;;  %6850 = vmatprep.subr.mxu0 %v5303_v50  ;;  %v5284_v34 = vld [vmem:[#allocation10 + $0x50] sm:$0xff]  ;;  %v5297_v31 = vld [vmem:[#allocation10 + $0xb8] sm:$0xff] }
 0x350   :  { %v3806_v52 = vcombine.low %v3029_v38, %v3137_v47  ;;  %v6700_v18 = vcombine.low %v3765_v19, %v3781_v9  ;;  %v4004_v9 = vcombine.low %v3987_v35, %v4001_v37  ;;  %v6657_v54 = vld.sshfl [vmem:[#allocation2 + $0x124] sm:$0x3 pattern:$0x76325410]  ;;  %v4022_v38 = vrot.slane %v6685_v57, %v8043_v2  ;;  %6851 = vmatpush3.msra.mxu0 %v5287_v29  ;;  %v5281_v50 = vld [vmem:[#allocation10 + $0x38] sm:$0xff] }
 0x351   :  { %v4036_v47 = vrot.slane %v6687_v46, %v8043_v2  ;;  %v6658_v19 = vld.sshfl [vmem:[#allocation2 + $0x128] sm:$0x3 pattern:$0x76325410]  ;;  %6852 = vmatprep.subr.mxu0 %v5302_v45 }
 0x352   :  { %v3813_v5 = vrot.slane %v3806_v52, %v8043_v2  ;;  %v4155_v7 = vrot.slane %v6700_v18, %v8043_v2  ;;  %v6693_v52 = vcombine.low %v6655_v13, %v6656_v26  ;;  %v6695_v21 = vcombine.low %v6657_v54, %v6658_v19  ;;  %6853 = vmatpush3.msra.mxu0 %v5286_v44  ;;  %v5299_v37 = vld [vmem:[#allocation10 + $0xc8] sm:$0xff] }
 0x353   :  { %v4039_v18 = vcombine.low %v4022_v38, %v4036_v47 }
 0x354   :  { %v6702_v39 = vcombine.low %v3797_v48, %v3813_v5  ;;  %v6660_v48 = vld.sshfl [vmem:[#allocation2 + $0x130] sm:$0x3 pattern:$0x76325410]  ;;  %v4057_v5 = vrot.slane %v6689_v53, %v8043_v2  ;;  %v4092_v15 = vrot.slane %v6693_v52, %v8043_v2  ;;  %v4106_v30 = vrot.slane %v6695_v21, %v8043_v2  ;;  %v9344_v53 = vld [vmem:[#allocation9] ss:$0 sm:$0xff] }
 0x355   :  { %v6697_v1 = vcombine.low %v6659_v28, %v6660_v48 }
 0x356   :  { %v4169_v36 = vrot.slane %v6702_v39, %v8043_v2  ;;  %v4071_v39 = vrot.slane %v6691_v60, %v8043_v2  ;;  %v4109_v23 = vcombine.low %v4092_v15, %v4106_v30 }
 0x357   :  { %v4127_v17 = vrot.slane %v6697_v1, %v8043_v2 }
 0x358   :  { %v4178_v11 = vcombine.high %v4155_v7, %v4169_v36  ;;  %v4177_v33 = vcombine.low %v4155_v7, %v4169_v36  ;;  %v6664_v7 = vld.sshfl [vmem:[#allocation2 + $0x160] sm:$0x3 pattern:$0x76325410]  ;;  %v4074_v36 = vcombine.low %v4057_v5, %v4071_v39 }
 0x359   :  { %v6701_v32 = vcombine.low %v6663_v3, %v6664_v7 }
 0x35a   :  { %4320 = vmatprep.mubr.f32.mxu1 %v4178_v11  ;;  %v6699_v11 = vcombine.low %v6661_v40, %v6662_v56 }
 0x35b   :  { %4321 = vmatmul.mubr.f32.gmra.mxu1 %v4177_v33  ;;  %v6665_v33 = vld.sshfl [vmem:[#allocation2 + $0x164] sm:$0x3 pattern:$0x76325410]  ;;  %v4162_v63 = vrot.slane %v6701_v32, %v8043_v2 }
 0x35c   :  { %7040 = vmatprep.mubr.msk.f32.mxu1 %vm7347_vm7, %v7342_v0  ;;  %v4141_v22 = vrot.slane %v6699_v11, %v8043_v2  ;;  %v6703_v59 = vcombine.low %v6665_v33, %v6666_v42 }
 0x35e   :  { %v4144_v24 = vcombine.low %v4127_v17, %v4141_v22  ;;  %v4176_v10 = vrot.slane %v6703_v59, %v8043_v2 }
 0x35f   :  { %7041 = vmatmul.mubr.msk.f32.vlgmr.msra.gmra.mxu1 %vm2919_vm4, %v3899_v20  ;;  %v6806_v20 = vpop.f32.mrf.mxu1 }
 0x360   :  { %7043 = vmatprep.mubr.msk.f32.mxu1 %vm7347_vm7, %v7342_v0  ;;  %v4179_v16 = vcombine.low %v4162_v63, %v4176_v10  ;;  %v5283_v63 = vld [vmem:[#allocation10 + $0x48] sm:$0xff]  ;;  %v5298_v10 = vld [vmem:[#allocation10 + $0xc0] sm:$0xff] }
 0x361   :  { %v6807_v25 = vpop.f32.mrf.mxu1 }
 0x362   :  { %v6808_v38 = vadd.f32 %v6807_v25, %v6806_v20 }
 0x363   :  { %7044 = vmatmul.mubr.msk.f32.gmra.mxu1 %vm2919_vm4, %v3934_v62  ;;  %v6809_v4 = vpop.f32.mrf.mxu1  ;;  %v5301_v62 = vld [vmem:[#allocation10 + $0xd8] sm:$0xff] }
 0x364   :  { %7046 = vmatprep.mubr.msk.f32.mxu1 %vm7347_vm7, %v7342_v0  ;;  %6854 = vmatprep.subr.mxu0 %v5301_v62  ;;  %v4283_v52 = vadd.f32 %v6808_v38, %v9344_v53  ;;  %v5296_v62 = vld [vmem:[#allocation10 + $0xb0] sm:$0xff] }
 0x365   :  { %v6810_v41 = vpop.f32.mrf.mxu1  ;;  %6855 = vmatpush3.msra.mxu0 %v5285_v14 }
 0x366   :  { %6856 = vmatprep.subr.mxu0 %v5300_v51  ;;  %v6811_v19 = vadd.f32 %v6810_v41, %v6809_v4 }
 0x367   :  { %7047 = vmatmul.mubr.msk.f32.gmra.mxu1 %vm2919_vm4, %v3969_v6  ;;  %v6812_v35 = vpop.f32.mrf.mxu1  ;;  %6857 = vmatpush3.msra.mxu0 %v5284_v34 }
 0x368   :  { %7049 = vmatprep.mubr.msk.f32.mxu1 %vm7347_vm7, %v7342_v0  ;;  %6858 = vmatprep.subr.mxu0 %v5299_v37  ;;  %v4288_v39 = vadd.f32 %v6811_v19, %v9344_v53 }
 0x369   :  { %v6813_v27 = vpop.f32.mrf.mxu1  ;;  %6859 = vmatpush3.msra.mxu0 %v5283_v63 }
 0x36a   :  { %6860 = vmatprep.subr.mxu0 %v5298_v10 }
 0x36b   :  { %7050 = vmatmul.mubr.msk.f32.gmra.mxu1 %vm2919_vm4, %v4004_v9  ;;  %v6815_v49 = vpop.f32.mrf.mxu1 }
 0x36c   :  { %7052 = vmatprep.mubr.msk.f32.mxu1 %vm7347_vm7, %v7342_v0 }
 0x36d   :  { %v6816_v6 = vpop.f32.mrf.mxu1 }
 0x36e   :  { %v6817_v3 = vadd.f32 %v6816_v6, %v6815_v49 }
 0x36f   :  { %7053 = vmatmul.mubr.msk.f32.gmra.mxu1 %vm2919_vm4, %v4039_v18  ;;  %v6818_v57 = vpop.f32.mrf.mxu1  ;;  %v6814_v18 = vadd.f32 %v6813_v27, %v6812_v35  ;;  %v5280_v27 = vld [vmem:[#allocation10 + $0x30] sm:$0xff] }
 0x370   :  { %7055 = vmatprep.mubr.msk.f32.mxu1 %vm7347_vm7, %v7342_v0 }
 0x371   :  { %v6819_v46 = vpop.f32.mrf.mxu1  ;;  %v4293_v33 = vadd.f32 %v6814_v18, %v9344_v53 }
 0x372   :  { %v6820_v20 = vadd.f32 %v6819_v46, %v6818_v57 }
 0x373   :  { %7056 = vmatmul.mubr.msk.f32.gmra.mxu1 %vm2919_vm4, %v4074_v36 }
 0x374   :  { %7058 = vmatprep.mubr.msk.f32.mxu1 %vm7347_vm7, %v7342_v0  ;;  %v4303_v37 = vadd.f32 %v6820_v20, %v9344_v53 }
 0x377   :  { %7059 = vmatmul.mubr.msk.f32.gmra.mxu1 %vm2919_vm4, %v4109_v23 }
 0x378   :  { %7061 = vmatprep.mubr.msk.f32.mxu1 %vm7347_vm7, %v7342_v0 }
 0x37b   :  { %7062 = vmatmul.mubr.msk.f32.gmra.mxu1 %vm2919_vm4, %v4144_v24  ;;  %v4298_v24 = vadd.f32 %v6817_v3, %v9344_v53 }
 0x37c   :  { %7064 = vmatprep.mubr.msk.f32.mxu1 %vm7347_vm7, %v7342_v0 }
 0x37f   :  { %7065 = vmatmul.mubr.msk.f32.gmra.mxu1 %vm2919_vm4, %v4179_v16  ;;  %v5282_v16 = vld [vmem:[#allocation10 + $0x40] sm:$0xff] }
 0x380   :  { %6861 = vmatpush3.msra.mxu0 %v5282_v16 }
 0x381   :  { %6862 = vmatprep.subr.mxu0 %v5297_v31  ;;  %v5277_v31 = vld [vmem:[#allocation10 + $0x18] sm:$0xff] }
 0x382   :  { %6863 = vmatpush3.msra.mxu0 %v5281_v50 }
 0x383   :  { %6864 = vmatprep.subr.mxu0 %v5296_v62 }
 0x384   :  { %6865 = vmatpush3.msra.mxu0 %v5280_v27 }
 0x38b   :  { %v6821_v8 = vpop.f32.mrf.mxu1 }
 0x38d   :  { %v6822_v58 = vpop.f32.mrf.mxu1 }
 0x38e   :  { %v6823_v14 = vadd.f32 %v6822_v58, %v6821_v8 }
 0x3bb   :  { %v9334_v13 = vpop.f32.mrf.mxu1 }
 0x3bd   :  { %v9336_v26 = vpop.f32.mrf.mxu1 }
 0x3eb   :  { %v9338_v9 = vpop.f32.mrf.mxu1 }
 0x3ed   :  { %v9340_v54 = vpop.f32.mrf.mxu1 }
 0x41b   :  { %v9342_v47 = vpop.f32.mrf.mxu1 }
 0x41d   :  { %v9346_v60 = vpop.f32.mrf.mxu1 }
 0x41f   :  { %v4392_v21 = vpop.f32.mrf.mxu1 }
 0x420   :  { %v4393_v28 = vadd.f32 %v4392_v21, %v4283_v52  ;;  %v4308_v52 = vadd.f32 %v6823_v14, %v9344_v53  ;;  %v6826_v21 = vadd.f32 %v9336_v26, %v9334_v13  ;;  %v5292_v14 = vld [vmem:[#allocation10 + $0x90] sm:$0xff] }
 0x421   :  { %v7042_v48 = vpop.f32.mrf.mxu1 }
 0x422   :  { %v4436_v5 = vmax.f32 %v4393_v28, 0.0 }
 0x423   :  { %v4397_v40 = vpop.f32.mrf.mxu1 }
 0x424   :  { %v4519_v56 = vcombine.high %v4436_v5, %v4436_v5  ;;  %v4526_v15 = vrot.slane %v4436_v5, %v8043_v2  ;;  %v4398_v30 = vadd.f32 %v4397_v40, %v4288_v39  ;;  %v5295_v5 = vld [vmem:[#allocation10 + $0xa8] sm:$0xff]  ;;  %v5337_v39 = vld [vmem:[#allocation10 + $0x1f8] sm:$0xff] }
 0x425   :  { %v7045_v7 = vpop.f32.mrf.mxu1  ;;  %v5279_v40 = vld [vmem:[#allocation10 + $0x28] sm:$0xff]  ;;  %6866 = vmatprep.subr.mxu0 %v5295_v5  ;;  %6887 = vmatprep.subr.mxu1 %v5337_v39 }
 0x426   :  { %v4533_v36 = vrot.slane %v4519_v56, %v8043_v2  ;;  %v4534_v1 = vcombine.high %v4526_v15, %v4526_v15  ;;  %4709 = vst.msk [vmem:[#allocation3 + $0x12] sm:$0x3] %vm4445_vm1, %v4526_v15  ;;  %v4437_v11 = vmax.f32 %v4398_v30, 0.0  ;;  %6867 = vmatpush3.msra.mxu0 %v5279_v40 }
 0x427   :  { %v4402_v42 = vpop.f32.mrf.mxu1 }
 0x428   :  { %v4535_v23 = vcombine.high %v4533_v36, %v4533_v36  ;;  %4710 = vst.msk [vmem:[#allocation3 + $0x14] sm:$0x3] %vm4445_vm1, %v4534_v1  ;;  %4711 = vst.msk [vmem:[#allocation3 + $0x16] sm:$0x3] %vm4445_vm1, %v4533_v36  ;;  %v4536_v17 = vcombine.high %v4437_v11, %v4437_v11  ;;  %v4543_v22 = vrot.slane %v4437_v11, %v8043_v2  ;;  %v5321_v36 = vld [vmem:[#allocation10 + $0x178] sm:$0xff]  ;;  %v5294_v1 = vld [vmem:[#allocation10 + $0xa0] sm:$0xff] }
 0x429   :  { %v4403_v32 = vadd.f32 %v4402_v42, %v4293_v33  ;;  %v7048_v59 = vpop.f32.mrf.mxu1  ;;  %v5336_v11 = vld [vmem:[#allocation10 + $0x1f0] sm:$0xff]  ;;  %v6829_v33 = vadd.f32 %v9340_v54, %v9338_v9  ;;  %6888 = vmatpush3.msra.mxu1 %v5321_v36  ;;  %6868 = vmatprep.subr.mxu0 %v5294_v1 }
 0x42a   :  { %4712 = vst.msk [vmem:[#allocation3 + $0x18] sm:$0x3] %vm4445_vm1, %v4535_v23  ;;  %v4550_v43 = vrot.slane %v4536_v17, %v8043_v2  ;;  %v4551_v55 = vcombine.high %v4543_v22, %v4543_v22  ;;  %4713 = vst.msk [vmem:[#allocation3 + $0x1a] sm:$0x3] %vm4445_vm1, %v4543_v22  ;;  %v5278_v59 = vld [vmem:[#allocation10 + $0x20] sm:$0xff]  ;;  %6889 = vmatprep.subr.mxu1 %v5336_v11  ;;  %v5316_v1 = vld [vmem:[#allocation10 + $0x150] sm:$0xff] }
 0x42b   :  { %v4438_v12 = vmax.f32 %v4403_v32, 0.0  ;;  %v4407_v25 = vpop.f32.mrf.mxu1  ;;  %v4313_v32 = vadd.f32 %v6826_v21, %v9344_v53  ;;  %6869 = vmatpush3.msra.mxu0 %v5278_v59  ;;  %v4318_v50 = vadd.f32 %v6829_v33, %v9344_v53  ;;  %v5331_v33 = vld [vmem:[#allocation10 + $0x1c8] sm:$0xff]  ;;  %v5330_v59 = vld [vmem:[#allocation10 + $0x1c0] sm:$0xff] }
 0x42c   :  { %v4552_v29 = vcombine.high %v4550_v43, %v4550_v43  ;;  %4714 = vst.msk [vmem:[#allocation3 + $0x1c] sm:$0x3] %vm4445_vm1, %v4551_v55  ;;  %4715 = vst.msk [vmem:[#allocation3 + $0x22] sm:$0x3] %vm4445_vm1, %v4550_v43  ;;  %v4408_v44 = vadd.f32 %v4407_v25, %v4298_v24  ;;  %v5320_v24 = vld [vmem:[#allocation10 + $0x170] sm:$0xff]  ;;  %v5293_v55 = vld [vmem:[#allocation10 + $0x98] sm:$0xff] }
 0x42d   :  { %v4553_v4 = vcombine.high %v4438_v12, %v4438_v12  ;;  %v4560_v45 = vrot.slane %v4438_v12, %v8043_v2  ;;  %v7051_v41 = vpop.f32.mrf.mxu1  ;;  %v5335_v12 = vld [vmem:[#allocation10 + $0x1e8] sm:$0xff]  ;;  %6890 = vmatpush3.msra.mxu1 %v5320_v24  ;;  %6870 = vmatprep.subr.mxu0 %v5293_v55  ;;  %v5328_v55 = vld [vmem:[#allocation10 + $0x1b0] sm:$0xff] }
 0x42e   :  { %4716 = vst.msk [vmem:[#allocation3 + $0x24] sm:$0x3] %vm4445_vm1, %v4552_v29  ;;  %v4439_v35 = vmax.f32 %v4408_v44, 0.0  ;;  %v5319_v29 = vld [vmem:[#allocation10 + $0x168] sm:$0xff]  ;;  %6891 = vmatprep.subr.mxu1 %v5335_v12  ;;  %6871 = vmatpush3.msra.mxu0 %v5277_v31  ;;  %v5312_v12 = vld [vmem:[#allocation10 + $0x130] sm:$0xff] }
 0x42f   :  { %v4567_v51 = vrot.slane %v4553_v4, %v8043_v2  ;;  %v4568_v34 = vcombine.high %v4560_v45, %v4560_v45  ;;  %4717 = vst.msk [vmem:[#allocation3 + $0x26] sm:$0x3] %vm4445_vm1, %v4560_v45  ;;  %v4412_v49 = vpop.f32.mrf.mxu1  ;;  %v4794_v6 = vld [vmem:[#allocation3 + $0x14] sm:$0x3]  ;;  %v6832_v4 = vadd.f32 %v9346_v60, %v9342_v47  ;;  %6892 = vmatpush3.msra.mxu1 %v5319_v29  ;;  %v5311_v29 = vld [vmem:[#allocation10 + $0x128] sm:$0xff] }
 0x430   :  { %v4776_v57 = vld [vmem:[#allocation3 + $0x14] sm:$0x3]  ;;  %v4570_v8 = vcombine.high %v4439_v35, %v4439_v35  ;;  %v4577_v58 = vrot.slane %v4439_v35, %v8043_v2  ;;  %v4413_v38 = vadd.f32 %v4412_v49, %v4303_v37  ;;  %4914 = vrot.lane.b32.xlu0 %v4794_v6, %s7344_s17  ;;  %v5276_v35 = vld [vmem:[#allocation10 + $0x10] sm:$0xff]  ;;  %6872 = vmatprep.subr.mxu0 %v5292_v14 }
 0x431   :  { %v4569_v46 = vcombine.high %v4567_v51, %v4567_v51  ;;  %4718 = vst.msk [vmem:[#allocation3 + $0x28] sm:$0x3] %vm4445_vm1, %v4568_v34  ;;  %4719 = vst.msk [vmem:[#allocation3 + $0x2a] sm:$0x3] %vm4445_vm1, %v4567_v51  ;;  %4880 = vrot.lane.b32.xlu1 %v4776_v57, %s7344_s17  ;;  %v7054_v19 = vpop.f32.mrf.mxu1  ;;  %v4795_v15 = vld [vmem:[#allocation3 + $0x18] sm:$0x3]  ;;  %6873 = vmatpush3.msra.mxu0 %v5276_v35 }
 0x432   :  { %v4584_v28 = vrot.slane %v4570_v8, %v8043_v2  ;;  %v4585_v48 = vcombine.high %v4577_v58, %v4577_v58  ;;  %4721 = vst.msk [vmem:[#allocation3 + $0x32] sm:$0x3] %vm4445_vm1, %v4577_v58  ;;  %v4440_v18 = vmax.f32 %v4413_v38, 0.0  ;;  %v4777_v30 = vld [vmem:[#allocation3 + $0x18] sm:$0x3]  ;;  %v5291_v57 = vld [vmem:[#allocation10 + $0x88] sm:$0xff]  ;;  %v4323_v19 = vadd.f32 %v6832_v4, %v9344_v53 }
 0x433   :  { %4720 = vst.msk [vmem:[#allocation3 + $0x2c] sm:$0x3] %vm4445_vm1, %v4569_v46  ;;  %v4417_v56 = vpop.f32.mrf.mxu1  ;;  %v4796_v9 = vld [vmem:[#allocation3 + $0x1c] sm:$0x3]  ;;  %v4758_v54 = vld [vmem:[#allocation3 + $0x22] sm:$0x3]  ;;  %6874 = vmatprep.subr.mxu0 %v5291_v57 }
 0x434   :  { %v4586_v3 = vcombine.high %v4584_v28, %v4584_v28  ;;  %4722 = vst.msk [vmem:[#allocation3 + $0x34] sm:$0x3] %vm4445_vm1, %v4585_v48  ;;  %4723 = vst.msk [vmem:[#allocation3 + $0x36] sm:$0x3] %vm4445_vm1, %v4584_v28  ;;  %v4587_v13 = vcombine.high %v4440_v18, %v4440_v18  ;;  %v4594_v26 = vrot.slane %v4440_v18, %v8043_v2  ;;  %4882 = vrot.lane.b32.xlu0 %v4777_v30, %s7344_s17  ;;  %v4814_v51 = vld [vmem:[#allocation3 + $0x22] sm:$0x3] }
 0x435   :  { %v4418_v7 = vadd.f32 %v4417_v56, %v4308_v52  ;;  %4916 = vrot.lane.b32.xlu1 %v4795_v15, %s7344_s17  ;;  %v7057_v42 = vpop.f32.mrf.mxu1  ;;  %v5334_v34 = vld [vmem:[#allocation10 + $0x1e0] sm:$0xff]  ;;  %v5333_v52 = vld [vmem:[#allocation10 + $0x1d8] sm:$0xff]  ;;  %v5275_v48 = vld [vmem:[#allocation10 + $0x8] sm:$0xff] }
 0x436   :  { %4724 = vst.msk [vmem:[#allocation3 + $0x38] sm:$0x3] %vm4445_vm1, %v4586_v3  ;;  %v4601_v23 = vrot.slane %v4587_v13, %v8043_v2  ;;  %v4602_v17 = vcombine.high %v4594_v26, %v4594_v26  ;;  %4725 = vst.msk [vmem:[#allocation3 + $0x3a] sm:$0x3] %vm4445_vm1, %v4594_v26  ;;  %v4815_v49 = vld [vmem:[#allocation3 + $0x26] sm:$0x3]  ;;  %6893 = vmatprep.subr.mxu1 %v5334_v34  ;;  %6875 = vmatpush3.msra.mxu0 %v5275_v48 }
 0x437   :  { %v4441_v22 = vmax.f32 %v4418_v7, 0.0  ;;  %v4422_v63 = vpop.f32.mrf.mxu1  ;;  %v5318_v6 = vld [vmem:[#allocation10 + $0x160] sm:$0xff]  ;;  %v4759_v28 = vld [vmem:[#allocation3 + $0x26] sm:$0x3]  ;;  %v5317_v18 = vld [vmem:[#allocation10 + $0x158] sm:$0xff] }
 0x438   :  { %v4603_v10 = vcombine.high %v4601_v23, %v4601_v23  ;;  %4726 = vst.msk [vmem:[#allocation3 + $0x3c] sm:$0x3] %vm4445_vm1, %v4602_v17  ;;  %4727 = vst.msk [vmem:[#allocation3 + $0x42] sm:$0x3] %vm4445_vm1, %v4601_v23  ;;  %v4423_v43 = vadd.f32 %v4422_v63, %v4313_v32  ;;  %4918 = vrot.lane.b32.xlu0 %v4796_v9, %s7344_s17  ;;  %6894 = vmatpush3.msra.mxu1 %v5318_v6  ;;  %v4760_v53 = vld [vmem:[#allocation3 + $0x2a] sm:$0x3] }
 0x439   :  { %v4604_v16 = vcombine.high %v4441_v22, %v4441_v22  ;;  %v4611_v20 = vrot.slane %v4441_v22, %v8043_v2  ;;  %4848 = vrot.lane.b32.xlu1 %v4758_v54, %s7344_s17  ;;  %v7060_v25 = vpop.f32.mrf.mxu1  ;;  %v5290_v15 = vld [vmem:[#allocation10 + $0x80] sm:$0xff]  ;;  %v5332_v30 = vld [vmem:[#allocation10 + $0x1d0] sm:$0xff]  ;;  %6895 = vmatprep.subr.mxu1 %v5333_v52  ;;  %v5315_v32 = vld [vmem:[#allocation10 + $0x148] sm:$0xff] }
 0x43a   :  { %4728 = vst.msk [vmem:[#allocation3 + $0x44] sm:$0x3] %vm4445_vm1, %v4603_v10  ;;  %v4442_v62 = vmax.f32 %v4423_v43, 0.0  ;;  %v5274_v13 = vld [vmem:[#allocation10] sm:$0xff]  ;;  %6896 = vmatpush3.msra.mxu1 %v5317_v18  ;;  %v4816_v11 = vld [vmem:[#allocation3 + $0x2a] sm:$0x3]  ;;  %6876 = vmatprep.subr.mxu0 %v5290_v15  ;;  %v4843_v18 = vpop.permute.xlu0 %4842 }
 0x43b   :  { %v4618_v45 = vrot.slane %v4604_v16, %v8043_v2  ;;  %v4619_v44 = vcombine.high %v4611_v20, %v4611_v20  ;;  %4729 = vst.msk [vmem:[#allocation3 + $0x46] sm:$0x3] %vm4445_vm1, %v4611_v20  ;;  %v4427_v41 = vpop.f32.mrf.mxu1  ;;  %6897 = vmatprep.subr.mxu1 %v5332_v30  ;;  %v4797_v22 = vld [vmem:[#allocation3 + $0x34] sm:$0x3]  ;;  %6877 = vmatpush3.msra.mxu0 %v5274_v13  ;;  %v5329_v10 = vld [vmem:[#allocation10 + $0x1b8] sm:$0xff]  ;;  %v5327_v25 = vld [vmem:[#allocation10 + $0x1a8] sm:$0xff] }
 0x43c   :  { %v4621_v47 = vcombine.high %v4442_v62, %v4442_v62  ;;  %v4628_v60 = vrot.slane %v4442_v62, %v8043_v2  ;;  %v4428_v27 = vadd.f32 %v4427_v41, %v4318_v50  ;;  %4950 = vrot.lane.b32.xlu0 %v4814_v51, %s7344_s17  ;;  %6898 = vmatpush3.msra.mxu1 %v5316_v1  ;;  %v5314_v9 = vld [vmem:[#allocation10 + $0x140] sm:$0xff]  ;;  %v5313_v43 = vld [vmem:[#allocation10 + $0x138] sm:$0xff]  ;;  %v5324_v51 = vld [vmem:[#allocation10 + $0x190] sm:$0xff] }
 0x43d   :  { %v4620_v37 = vcombine.high %v4618_v45, %v4618_v45  ;;  %4730 = vst.msk [vmem:[#allocation3 + $0x48] sm:$0x3] %vm4445_vm1, %v4619_v44  ;;  %4731 = vst.msk [vmem:[#allocation3 + $0x4a] sm:$0x3] %vm4445_vm1, %v4618_v45  ;;  %4952 = vrot.lane.b32.xlu1 %v4815_v49, %s7344_s17  ;;  %v7063_v46 = vpop.f32.mrf.mxu1  ;;  %6899 = vmatprep.subr.mxu1 %v5331_v33  ;;  %v4779_v54 = vld [vmem:[#allocation3 + $0x34] sm:$0x3] }
 0x43e   :  { %v4635_v8 = vrot.slane %v4621_v47, %v8043_v2  ;;  %v4636_v58 = vcombine.high %v4628_v60, %v4628_v60  ;;  %4733 = vst.msk [vmem:[#allocation3 + $0x52] sm:$0x3] %vm4445_vm1, %v4628_v60  ;;  %v4443_v38 = vmax.f32 %v4428_v27, 0.0  ;;  %7067 = vmatprep.subr.mxu0 %v7342_v0  ;;  %6900 = vmatpush3.msra.mxu1 %v5315_v32  ;;  %v4780_v20 = vld [vmem:[#allocation3 + $0x38] sm:$0x3]  ;;  %v5325_v62 = vld [vmem:[#allocation10 + $0x198] sm:$0xff] }
 0x43f   :  { %4732 = vst.msk [vmem:[#allocation3 + $0x4c] sm:$0x3] %vm4445_vm1, %v4620_v37  ;;  %v4432_v21 = vpop.f32.mrf.mxu1  ;;  %6901 = vmatprep.subr.mxu1 %v5330_v59  ;;  %v4761_v31 = vld [vmem:[#allocation3 + $0x42] sm:$0x3]  ;;  %v5326_v4 = vld [vmem:[#allocation10 + $0x1a0] sm:$0xff]  ;;  %v5309_v41 = vld [vmem:[#allocation10 + $0x118] sm:$0xff] }
 0x440   :  { %v4637_v5 = vcombine.high %v4635_v8, %v4635_v8  ;;  %4734 = vst.msk [vmem:[#allocation3 + $0x54] sm:$0x3] %vm4445_vm1, %v4636_v58  ;;  %4735 = vst.msk [vmem:[#allocation3 + $0x56] sm:$0x3] %vm4445_vm1, %v4635_v8  ;;  %v4638_v39 = vcombine.high %v4443_v38, %v4443_v38  ;;  %v4645_v40 = vrot.slane %v4443_v38, %v8043_v2  ;;  %4850 = vrot.lane.b32.xlu0 %v4759_v28, %s7344_s17  ;;  %v4817_v50 = vld [vmem:[#allocation3 + $0x42] sm:$0x3] }
 0x441   :  { %v4433_v56 = vadd.f32 %v4432_v21, %v4323_v19  ;;  %4852 = vrot.lane.b32.xlu1 %v4760_v53, %s7344_s17  ;;  %v7066_v3 = vpop.f32.mrf.mxu1  ;;  %6902 = vmatpush3.msra.mxu1 %v5314_v9  ;;  %v5310_v45 = vld [vmem:[#allocation10 + $0x120] sm:$0xff]  ;;  %v5308_v34 = vld [vmem:[#allocation10 + $0x110] sm:$0xff]  ;;  %v5323_v37 = vld [vmem:[#allocation10 + $0x188] sm:$0xff] }
 0x442   :  { %4736 = vst.msk [vmem:[#allocation3 + $0x58] sm:$0x3] %vm4445_vm1, %v4637_v5  ;;  %v4652_v26 = vrot.slane %v4638_v39, %v8043_v2  ;;  %v4653_v7 = vcombine.high %v4645_v40, %v4645_v40  ;;  %4737 = vst.msk [vmem:[#allocation3 + $0x5a] sm:$0x3] %vm4445_vm1, %v4645_v40  ;;  %6903 = vmatprep.subr.mxu1 %v5329_v10  ;;  %v4762_v14 = vld [vmem:[#allocation3 + $0x46] sm:$0x3]  ;;  %v4847_v5 = vpop.permute.xlu0 %4846  ;;  %v4845_v40 = vpop.permute.xlu1 %4844 }
 0x443   :  { %v4444_v36 = vmax.f32 %v4433_v56, 0.0  ;;  %6904 = vmatpush3.msra.mxu1 %v5313_v43  ;;  %v5307_v60 = vld [vmem:[#allocation10 + $0x108] sm:$0xff]  ;;  %v5322_v27 = vld [vmem:[#allocation10 + $0x180] sm:$0xff]  ;;  %v4818_v58 = vld [vmem:[#allocation3 + $0x46] sm:$0x3] }
 0x444   :  { %v4654_v42 = vcombine.high %v4652_v26, %v4652_v26  ;;  %4738 = vst.msk [vmem:[#allocation3 + $0x5c] sm:$0x3] %vm4445_vm1, %v4653_v7  ;;  %4739 = vst.msk [vmem:[#allocation3 + $0x62] sm:$0x3] %vm4445_vm1, %v4652_v26  ;;  %4954 = vrot.lane.b32.xlu0 %v4816_v11, %s7344_s17  ;;  %6905 = vmatprep.subr.mxu1 %v5328_v55  ;;  %v4763_v44 = vld [vmem:[#allocation3 + $0x4a] sm:$0x3] }
 0x445   :  { %v4655_v23 = vcombine.high %v4444_v36, %v4444_v36  ;;  %v4662_v17 = vrot.slane %v4444_v36, %v8043_v2  ;;  %4920 = vrot.lane.b32.xlu1 %v4797_v22, %s7344_s17  ;;  %6906 = vmatpush3.msra.mxu1 %v5312_v12  ;;  %v5306_v49 = vld [vmem:[#allocation10 + $0x100] sm:$0xff]  ;;  %v4799_v38 = vld [vmem:[#allocation3 + $0x3c] sm:$0x3]  ;;  %v4819_v21 = vld [vmem:[#allocation3 + $0x4a] sm:$0x3] }
 0x446   :  { %4740 = vst.msk [vmem:[#allocation3 + $0x64] sm:$0x3] %vm4445_vm1, %v4654_v42  ;;  %6907 = vmatprep.subr.mxu1 %v5327_v25  ;;  %v4798_v6 = vld [vmem:[#allocation3 + $0x38] sm:$0x3]  ;;  %v5892_v48 = vld [vmem:[#allocation13 + $0x2f8] sm:$0xff]  ;;  %v4879_v39 = vpop.permute.xlu0 %4878  ;;  %v4885_v53 = vpop.permute.xlu1 %4884 }
 0x447   :  { %v4669_v24 = vrot.slane %v4655_v23, %v8043_v2  ;;  %v4670_v63 = vcombine.high %v4662_v17, %v4662_v17  ;;  %4741 = vst.msk [vmem:[#allocation3 + $0x66] sm:$0x3] %vm4445_vm1, %v4662_v17  ;;  %6908 = vmatpush3.msra.mxu1 %v5311_v29  ;;  %v4782_v47 = vld [vmem:[#allocation3 + $0x54] sm:$0x3]  ;;  %v4766_v15 = vld [vmem:[#allocation3 + $0x8] sm:$0x3] }
 0x448   :  { %4886 = vrot.lane.b32.xlu0 %v4779_v54, %s7344_s17  ;;  %6909 = vmatprep.subr.mxu1 %v5326_v4  ;;  %v4800_v46 = vld [vmem:[#allocation3 + $0x54] sm:$0x3]  ;;  %v4746_v3 = vld [vmem:[#allocation3 + $0x4] sm:$0x3]  ;;  %v4745_v13 = vld [vmem:[#allocation3] sm:$0x3] }
 0x449   :  { %v4671_v16 = vcombine.high %v4669_v24, %v4669_v24  ;;  %4742 = vst.msk [vmem:[#allocation3 + $0x68] sm:$0x3] %vm4445_vm1, %v4670_v63  ;;  %4743 = vst.msk [vmem:[#allocation3 + $0x6a] sm:$0x3] %vm4445_vm1, %v4669_v24  ;;  %4888 = vrot.lane.b32.xlu1 %v4780_v20, %s7344_s17  ;;  %6910 = vmatpush3.msra.mxu1 %v5310_v45  ;;  %v4783_v57 = vld [vmem:[#allocation3 + $0x58] sm:$0x3]  ;;  %v4978_v11 = vsel %vm2956_vm5, %v4746_v3, %v4845_v40 }
 0x44a   :  { %6911 = vmatprep.subr.mxu1 %v5325_v62  ;;  %v4801_v52 = vld [vmem:[#allocation3 + $0x58] sm:$0x3]  ;;  %v9448_v56 = vpop.permute.xlu0 %4890  ;;  %v4765_v26 = vld [vmem:[#allocation3 + $0x4] sm:$0x3]  ;;  %v4767_v1 = vld [vmem:[#allocation3 + $0xc] sm:$0x3]  ;;  %v4977_v33 = vsel %vm2956_vm5, %v4745_v13, %v4843_v18 }
 0x44b   :  { %4744 = vst.msk [vmem:[#allocation3 + $0x6c] sm:$0x3] %vm4445_vm1, %v4671_v16  ;;  %v4802_v35 = vld [vmem:[#allocation3 + $0x5c] sm:$0x3]  ;;  %6912 = vmatpush3.msra.mxu1 %v5309_v41  ;;  %v4820_v19 = vld [vmem:[#allocation3 + $0x62] sm:$0x3]  ;;  %v4986_v42 = vsel %vm2956_vm5, %v4765_v26, %v4879_v39 }
 0x44c   :  { %4854 = vrot.lane.b32.xlu0 %v4761_v31, %s7344_s17  ;;  %6913 = vmatprep.subr.mxu1 %v5324_v51  ;;  %v4747_v17 = vld [vmem:[#allocation3 + $0x8] sm:$0x3]  ;;  %v4768_v24 = vld [vmem:[#allocation3 + $0x24] sm:$0x3]  ;;  %v5058_v63 = vcombine.low %v4977_v33, %v4986_v42  ;;  %v4748_v9 = vld [vmem:[#allocation3 + $0x20] sm:$0x3] }
 0x44d   :  { %4956 = vrot.lane.b32.xlu1 %v4817_v50, %s7344_s17  ;;  %6914 = vmatpush3.msra.mxu1 %v5308_v34  ;;  %v4979_v54 = vsel %vm2956_vm5, %v4747_v17, %v4847_v5  ;;  %v4989_v55 = vsel %vm2956_vm5, %v4768_v24, %v4885_v53  ;;  %v5343_v18 = vld [vmem:[#allocation10 + $0x228] sm:$0xff]  ;;  %v4806_v5 = vld [vmem:[#allocation3 + $0x28] sm:$0x3]  ;;  %v5342_v53 = vld [vmem:[#allocation10 + $0x220] sm:$0xff] }
 0x44e   :  { %6915 = vmatprep.subr.mxu1 %v5323_v37  ;;  %v4821_v28 = vld [vmem:[#allocation3 + $0x66] sm:$0x3]  ;;  %v5066_v31 = vrot.slane %v5058_v63, %v8043_v2  ;;  %v4807_v3 = vld [vmem:[#allocation3 + $0x40] sm:$0x3]  ;;  %v4770_v33 = vld [vmem:[#allocation3 + $0x2c] sm:$0x3] }
 0x44f   :  { %6916 = vmatpush3.msra.mxu1 %v5307_v60  ;;  %v4805_v60 = vld [vmem:[#allocation3 + $0x24] sm:$0x3]  ;;  %v4769_v42 = vld [vmem:[#allocation3 + $0x28] sm:$0x3] }
 0x450   :  { %4858 = vrot.lane.b32.xlu0 %v4763_v44, %s7344_s17  ;;  %6917 = vmatprep.subr.mxu1 %v5322_v27  ;;  %v4822_v8 = vld [vmem:[#allocation3 + $0x6a] sm:$0x3]  ;;  %v4750_v63 = vld [vmem:[#allocation3 + $0x28] sm:$0x3] }
 0x451   :  { %4856 = vrot.lane.b32.xlu1 %v4762_v14, %s7344_s17  ;;  %6918 = vmatpush3.msra.mxu1 %v5306_v49  ;;  %v5345_v49 = vld [vmem:[#allocation10 + $0x238] sm:$0xff]  ;;  %v5340_v24 = vld [vmem:[#allocation10 + $0x210] sm:$0xff] }
 0x452   :  { %6168 = vmatprep.subr.mxu1 %v5892_v48 }
 0x454   :  { %4930 = vrot.lane.b32.xlu0 %v4802_v35, %s7344_s17  ;;  %v4804_v35 = vld [vmem:[#allocation3 + $0x20] sm:$0x3] }
 0x455   :  { %4892 = vrot.lane.b32.xlu1 %v4782_v47, %s7344_s17 }
 0x458   :  { %4922 = vrot.lane.b32.xlu0 %v4798_v6, %s7344_s17 }
 0x459   :  { %4894 = vrot.lane.b32.xlu1 %v4783_v57, %s7344_s17 }
 0x45c   :  { %4926 = vrot.lane.b32.xlu0 %v4800_v46, %s7344_s17 }
 0x45d   :  { %4966 = vrot.lane.b32.xlu1 %v4822_v8, %s7344_s17  ;;  %v4784_v8 = vld [vmem:[#allocation3 + $0x12] sm:$0x3] }
 0x460   :  { %4958 = vrot.lane.b32.xlu0 %v4818_v58, %s7344_s17  ;;  %v4785_v58 = vld [vmem:[#allocation3 + $0x16] sm:$0x3] }
 0x461   :  { %4924 = vrot.lane.b32.xlu1 %v4799_v38, %s7344_s17  ;;  %v5344_v38 = vld [vmem:[#allocation10 + $0x230] sm:$0xff] }
 0x464   :  { %4962 = vrot.lane.b32.xlu0 %v4820_v19, %s7344_s17 }
 0x465   :  { %4928 = vrot.lane.b32.xlu1 %v4801_v52, %s7344_s17 }
 0x469   :  { %4960 = vrot.lane.b32.xlu1 %v4819_v21, %s7344_s17 }
 0x46d   :  { %4964 = vrot.lane.b32.xlu1 %v4821_v28, %s7344_s17  ;;  %s6580_s17 = sshll.u32 %s7348_s3, 4  ;;  %s6581_s17 = int_to_ptr.vmem [resolvable:$true] %s6580_s17 }
 0x46e   :  { %s7297_s24 = scalar_lea.vmem %s6581_s17, 32  ;;  %p7302_p4 = scmp.lt.s32.totalorder %s6581_s17, %s6581_s17 }
 0x46f   :  { %p7298_p3 = scmp.ne.s32.totalorder %s6581_s17, %s7297_s24  ;;  %p7303_p5 = scmp.lt.s32.totalorder %s7297_s24, %s7297_s24 }
 0x471   :  { %p7304_p6 = por %p7303_p5, %p7302_p4 }
 0x473   :  { %p7305_p7 = pnand %p7304_p6, %p7298_p3 }
 0x4a2   :  { %v4915_v30 = vpop.permute.xlu0 %4914 }
 0x4a3   :  { %v4881_v7 = vpop.permute.xlu1 %4880  ;;  %v4995_v19 = vsel %vm2956_vm5, %v4784_v8, %v4915_v30 }
 0x4a4   :  { %v4987_v36 = vsel %vm2956_vm5, %v4766_v15, %v4881_v7  ;;  %v4786_v15 = vld [vmem:[#allocation3 + $0x1a] sm:$0x3] }
 0x4a5   :  { %v5082_v22 = vcombine.low %v4978_v11, %v4987_v36  ;;  %v5341_v36 = vld [vmem:[#allocation10 + $0x218] sm:$0xff] }
 0x4a6   :  { %v4883_v23 = vpop.permute.xlu0 %4882 }
 0x4a7   :  { %v4917_v32 = vpop.permute.xlu1 %4916  ;;  %v4988_v59 = vsel %vm2956_vm5, %v4767_v1, %v4883_v23  ;;  %v5090_v16 = vrot.slane %v5082_v22, %v8043_v2  ;;  %v4787_v1 = vld [vmem:[#allocation3 + $0x32] sm:$0x3] }
 0x4a8   :  { %v5106_v20 = vcombine.low %v4979_v54, %v4988_v59  ;;  %v4996_v52 = vsel %vm2956_vm5, %v4785_v58, %v4917_v32 }
 0x4a9   :  { %v6723_v29 = vcombine.low %v5066_v31, %v5090_v16  ;;  %v4771_v31 = vld [vmem:[#allocation3 + $0x44] sm:$0x3] }
 0x4aa   :  { %v4919_v10 = vpop.permute.xlu0 %4918  ;;  %v5114_v4 = vrot.slane %v5106_v20, %v8043_v2 }
 0x4ab   :  { %v4849_v43 = vpop.permute.xlu1 %4848  ;;  %v5363_v51 = vrot.slane %v6723_v29, %v8043_v2  ;;  %v4997_v30 = vsel %vm2956_vm5, %v4786_v15, %v4919_v10  ;;  %v4751_v10 = vld [vmem:[#allocation3 + $0x40] sm:$0x3]  ;;  %v4753_v15 = vld [vmem:[#allocation3 + $0x48] sm:$0x3] }
 0x4ac   :  { %v4980_v12 = vsel %vm2956_vm5, %v4748_v9, %v4849_v43  ;;  %v4749_v9 = vld [vmem:[#allocation3 + $0x24] sm:$0x3] }
 0x4ad   :  { %v5130_v25 = vcombine.low %v4980_v12, %v4989_v55  ;;  %v5339_v12 = vld [vmem:[#allocation10 + $0x208] sm:$0xff] }
 0x4ae   :  { %v4951_v50 = vpop.permute.xlu0 %4950 }
 0x4af   :  { %v5138_v45 = vrot.slane %v5130_v25, %v8043_v2  ;;  %v4953_v44 = vpop.permute.xlu1 %4952  ;;  %v5004_v57 = vsel %vm2956_vm5, %v4804_v35, %v4951_v50 }
 0x4b0   :  { %v5005_v6 = vsel %vm2956_vm5, %v4805_v60, %v4953_v44  ;;  %v5059_v28 = vcombine.low %v4995_v19, %v5004_v57 }
 0x4b1   :  { %v6725_v62 = vcombine.low %v5114_v4, %v5138_v45  ;;  %v5083_v21 = vcombine.low %v4996_v52, %v5005_v6  ;;  %v5891_v52 = vld [vmem:[#allocation13 + $0x2f0] sm:$0xff] }
 0x4b2   :  { %v4851_v14 = vpop.permute.xlu0 %4850  ;;  %v5073_v26 = vrot.slane %v5059_v28, %v8043_v2 }
 0x4b3   :  { %v4853_v41 = vpop.permute.xlu1 %4852  ;;  %v5377_v34 = vrot.slane %v6725_v62, %v8043_v2  ;;  %v5097_v13 = vrot.slane %v5083_v21, %v8043_v2  ;;  %v4981_v43 = vsel %vm2956_vm5, %v4749_v9, %v4851_v14  ;;  %v5338_v62 = vld [vmem:[#allocation10 + $0x200] sm:$0xff] }
 0x4b4   :  { %v4982_v20 = vsel %vm2956_vm5, %v4750_v63, %v4853_v41  ;;  %v5828_v14 = vld [vmem:[#allocation13 + $0xf8] sm:$0xff] }
 0x4b5   :  { %v5385_v37 = vcombine.low %v5363_v51, %v5377_v34  ;;  %v5386_v47 = vcombine.high %v5363_v51, %v5377_v34  ;;  %v6724_v16 = vcombine.low %v5073_v26, %v5097_v13  ;;  %v4992_v51 = vsel %vm2956_vm5, %v4771_v31, %v9448_v56  ;;  %v5882_v31 = vld [vmem:[#allocation13 + $0x2a8] sm:$0xff] }
 0x4b6   :  { %v4955_v27 = vpop.permute.xlu0 %4954 }
 0x4b7   :  { %v4921_v46 = vpop.permute.xlu1 %4920  ;;  %5565 = vmatprep.mubr.f32.mxu0 %v5386_v47  ;;  %v5006_v40 = vsel %vm2956_vm5, %v4806_v5, %v4955_v27  ;;  %v5370_v35 = vrot.slane %v6724_v16, %v8043_v2  ;;  %v4752_v27 = vld [vmem:[#allocation3 + $0x44] sm:$0x3] }
 0x4b8   :  { %5566 = vmatmul.mubr.f32.vlgmr.msra.gmra.mxu0 %v5385_v37  ;;  %v5107_v11 = vcombine.low %v4997_v30, %v5006_v40  ;;  %v4998_v17 = vsel %vm2956_vm5, %v4787_v1, %v4921_v46  ;;  %v5888_v30 = vld [vmem:[#allocation13 + $0x2d8] sm:$0xff] }
 0x4b9   :  { %7068 = vmatpush3.msra.mxu0 %v5345_v49  ;;  %v4772_v49 = vld [vmem:[#allocation3 + $0x48] sm:$0x3] }
 0x4ba   :  { %v4887_v48 = vpop.permute.xlu0 %4886  ;;  %7069 = vmatprep.subr.mxu0 %v7342_v0  ;;  %v5121_v25 = vrot.slane %v5107_v11, %v8043_v2  ;;  %v4812_v11 = vld [vmem:[#allocation3 + $0x68] sm:$0x3] }
 0x4bb   :  { %v4889_v39 = vpop.permute.xlu1 %4888  ;;  %7070 = vmatpush3.msra.mxu0 %v5344_v38  ;;  %v4990_v32 = vsel %vm2956_vm5, %v4769_v42, %v4887_v48 }
 0x4bc   :  { %7071 = vmatprep.subr.mxu0 %v7342_v0  ;;  %v4991_v22 = vsel %vm2956_vm5, %v4770_v33, %v4889_v39  ;;  %v5154_v29 = vcombine.low %v4981_v43, %v4990_v32  ;;  %v5890_v39 = vld [vmem:[#allocation13 + $0x2e8] sm:$0xff] }
 0x4bd   :  { %7072 = vmatpush3.msra.mxu0 %v5343_v18  ;;  %v5178_v50 = vcombine.low %v4982_v20, %v4991_v22  ;;  %v4773_v18 = vld [vmem:[#allocation3 + $0x4c] sm:$0x3] }
 0x4be   :  { %v4855_v7 = vpop.permute.xlu0 %4854  ;;  %7073 = vmatprep.subr.mxu0 %v7342_v0  ;;  %v5162_v47 = vrot.slane %v5154_v29, %v8043_v2 }
 0x4bf   :  { %v4957_v23 = vpop.permute.xlu1 %4956  ;;  %7074 = vmatpush3.msra.mxu0 %v5342_v53  ;;  %v4983_v44 = vsel %vm2956_vm5, %v4751_v10, %v4855_v7  ;;  %v5186_v37 = vrot.slane %v5178_v50, %v8043_v2  ;;  %v5889_v53 = vld [vmem:[#allocation13 + $0x2e0] sm:$0xff]  ;;  %v5887_v7 = vld [vmem:[#allocation13 + $0x2d0] sm:$0xff] }
 0x4c0   :  { %v5007_v59 = vsel %vm2956_vm5, %v4807_v3, %v4957_v23  ;;  %7075 = vmatprep.subr.mxu0 %v7342_v0  ;;  %v5202_v60 = vcombine.low %v4983_v44, %v4992_v51  ;;  %v5883_v10 = vld [vmem:[#allocation13 + $0x2b0] sm:$0xff]  ;;  %v5881_v50 = vld [vmem:[#allocation13 + $0x2a0] sm:$0xff]  ;;  %v6713_v44 = vld.sshfl [vmem:[#allocation3 + $0x24] sm:$0x3 pattern:$0x76325410] }
 0x4c1   :  { %v5131_v54 = vcombine.low %v4998_v17, %v5007_v59  ;;  %7076 = vmatpush3.msra.mxu0 %v5341_v36  ;;  %v6727_v21 = vcombine.low %v5162_v47, %v5186_v37  ;;  %v4792_v36 = vld [vmem:[#allocation3 + $0x5a] sm:$0x3]  ;;  %v5886_v17 = vld [vmem:[#allocation13 + $0x2c8] sm:$0xff] }
 0x4c2   :  { %v4859_v55 = vpop.permute.xlu0 %4858  ;;  %7077 = vmatprep.subr.mxu0 %v7342_v0  ;;  %v5210_v28 = vrot.slane %v5202_v60, %v8043_v2  ;;  %v5885_v59 = vld [vmem:[#allocation13 + $0x2c0] sm:$0xff]  ;;  %v6718_v37 = vld.sshfl [vmem:[#allocation3 + $0x4c] sm:$0x3 pattern:$0x76325410] }
 0x4c3   :  { %v5145_v4 = vrot.slane %v5131_v54, %v8043_v2  ;;  %v4857_v45 = vpop.permute.xlu1 %4856  ;;  %7078 = vmatpush3.msra.mxu0 %v5340_v24  ;;  %v4985_v13 = vsel %vm2956_vm5, %v4753_v15, %v4859_v55  ;;  %v5416_v42 = vrot.slane %v6727_v21, %v8043_v2  ;;  %v5884_v54 = vld [vmem:[#allocation13 + $0x2b8] sm:$0xff]  ;;  %v4810_v47 = vld [vmem:[#allocation3 + $0x60] sm:$0x3] }
 0x4c4   :  { %7079 = vmatprep.subr.mxu0 %v7342_v0  ;;  %v4984_v46 = vsel %vm2956_vm5, %v4752_v27, %v4857_v45  ;;  %v5880_v45 = vld [vmem:[#allocation13 + $0x298] sm:$0xff] }
 0x4c5   :  { %v6726_v41 = vcombine.low %v5121_v25, %v5145_v4  ;;  %7080 = vmatpush3.msra.mxu0 %v5339_v12  ;;  %v6716_v12 = vld.sshfl [vmem:[#allocation3 + $0x44] sm:$0x3 pattern:$0x76325410] }
 0x4c6   :  { %v4931_v34 = vpop.permute.xlu0 %4930  ;;  %7081 = vmatprep.subr.mxu0 %v7342_v0  ;;  %v6714_v25 = vld.sshfl [vmem:[#allocation3 + $0x28] sm:$0x3 pattern:$0x76325410] }
 0x4c7   :  { %v4893_v6 = vpop.permute.xlu1 %4892  ;;  %v5384_v57 = vrot.slane %v6726_v41, %v8043_v2  ;;  %7082 = vmatpush3.msra.mxu0 %v5338_v62  ;;  %v5003_v22 = vsel %vm2956_vm5, %v4792_v36, %v4931_v34  ;;  %v6715_v4 = vld.sshfl [vmem:[#allocation3 + $0x2c] sm:$0x3 pattern:$0x76325410]  ;;  %v5389_v51 = vcombine.low %v6713_v44, %v6714_v25 }
 0x4c8   :  { %v4993_v56 = vsel %vm2956_vm5, %v4772_v49, %v4893_v6  ;;  %6097 = vmatprep.subr.mxu0 %v5828_v14  ;;  %v5390_v62 = vcombine.low %v6715_v4, %v6716_v12  ;;  %v6720_v34 = vld.sshfl [vmem:[#allocation3 + $0x68] sm:$0x3 pattern:$0x76325410]  ;;  %v5822_v12 = vld [vmem:[#allocation13 + $0xc8] sm:$0xff] }
 0x4c9   :  { %v5226_v8 = vcombine.low %v4984_v46, %v4993_v56  ;;  %v5387_v58 = vcombine.low %v5370_v35, %v5384_v57  ;;  %v5388_v38 = vcombine.high %v5370_v35, %v5384_v57  ;;  %v4808_v35 = vld [vmem:[#allocation3 + $0x44] sm:$0x3]  ;;  %v6717_v46 = vld.sshfl [vmem:[#allocation3 + $0x48] sm:$0x3 pattern:$0x76325410]  ;;  %v5397_v21 = vrot.slane %v5389_v51, %v8043_v2 }
 0x4ca   :  { %v9496_v19 = vpop.permute.xlu0 %4922  ;;  %v6719_v49 = vld.sshfl [vmem:[#allocation3 + $0x64] sm:$0x3 pattern:$0x76325410]  ;;  %v5404_v57 = vrot.slane %v5390_v62, %v8043_v2 }
 0x4cb   :  { %v5234_v48 = vrot.slane %v5226_v8, %v8043_v2  ;;  %v4895_v5 = vpop.permute.xlu1 %4894  ;;  %5645 = vmatprep.mubr.f32.mxu1 %v5388_v38  ;;  %v5443_v56 = vcombine.low %v6719_v49, %v6720_v34  ;;  %v4788_v8 = vld [vmem:[#allocation3 + $0x36] sm:$0x3]  ;;  %v4809_v38 = vld [vmem:[#allocation3 + $0x48] sm:$0x3]  ;;  %v5818_v62 = vld [vmem:[#allocation13 + $0xa8] sm:$0xff] }
 0x4cc   :  { %v4994_v40 = vsel %vm2956_vm5, %v4773_v18, %v4895_v5  ;;  %5646 = vmatmul.mubr.f32.vlgmr.msra.gmra.mxu1 %v5387_v58  ;;  %v4789_v58 = vld [vmem:[#allocation3 + $0x3a] sm:$0x3]  ;;  %v5816_v34 = vld [vmem:[#allocation13 + $0x98] sm:$0xff] }
 0x4cd   :  { %v6729_v3 = vcombine.low %v5210_v28, %v5234_v48  ;;  %6169 = vmatpush1.msra.mxu1 %v5891_v52  ;;  %v5250_v1 = vcombine.low %v4985_v13, %v4994_v40  ;;  %v5442_v28 = vcombine.low %v6717_v46, %v6718_v37  ;;  %v4999_v48 = vsel %vm2956_vm5, %v4788_v8, %v9496_v19  ;;  %v4790_v40 = vld [vmem:[#allocation3 + $0x52] sm:$0x3]  ;;  %v5827_v19 = vld [vmem:[#allocation13 + $0xf0] sm:$0xff]  ;;  %v5877_v46 = vld [vmem:[#allocation13 + $0x280] sm:$0xff] }
 0x4ce   :  { %v9502_v26 = vpop.permute.xlu0 %4926  ;;  %6170 = vmatprep.subr.mxu1 %v5890_v39  ;;  %v5457_v13 = vrot.slane %v5443_v56, %v8043_v2  ;;  %v5812_v49 = vld [vmem:[#allocation13 + $0x78] sm:$0xff]  ;;  %v5810_v56 = vld [vmem:[#allocation13 + $0x68] sm:$0xff] }
 0x4cf   :  { %v4967_v33 = vpop.permute.xlu1 %4966  ;;  %v5430_v23 = vrot.slane %v6729_v3, %v8043_v2  ;;  %6171 = vmatpush1.msra.mxu1 %v5889_v53  ;;  %v5258_v16 = vrot.slane %v5250_v1, %v8043_v2  ;;  %v5001_v3 = vsel %vm2956_vm5, %v4790_v40, %v9502_v26  ;;  %v5825_v26 = vld [vmem:[#allocation13 + $0xe0] sm:$0xff]  ;;  %v5876_v8 = vld [vmem:[#allocation13 + $0x278] sm:$0xff]  ;;  %v5871_v40 = vld [vmem:[#allocation13 + $0x250] sm:$0xff] }
 0x4d0   :  { %v5012_v32 = vsel %vm2956_vm5, %v4812_v11, %v4967_v33  ;;  %6172 = vmatprep.subr.mxu1 %v5888_v30  ;;  %v5405_v30 = vcombine.low %v5397_v21, %v5404_v57  ;;  %v4811_v11 = vld [vmem:[#allocation3 + $0x64] sm:$0x3]  ;;  %v5811_v57 = vld [vmem:[#allocation13 + $0x70] sm:$0xff] }
 0x4d1   :  { %v5251_v24 = vcombine.low %v5003_v22, %v5012_v32  ;;  %v5439_v63 = vcombine.high %v5416_v42, %v5430_v23  ;;  %v5438_v9 = vcombine.low %v5416_v42, %v5430_v23  ;;  %6173 = vmatpush1.msra.mxu1 %v5887_v7  ;;  %v4791_v7 = vld [vmem:[#allocation3 + $0x56] sm:$0x3]  ;;  %v5826_v42 = vld [vmem:[#allocation13 + $0xe8] sm:$0xff]  ;;  %v5450_v22 = vrot.slane %v5442_v28, %v8043_v2  ;;  %v5807_v28 = vld [vmem:[#allocation13 + $0x50] sm:$0xff] }
 0x4d2   :  { %6174 = vmatprep.subr.mxu1 %v5886_v17  ;;  %v4959_v55 = vpop.permute.xlu0 %4958  ;;  %v5874_v21 = vld [vmem:[#allocation13 + $0x268] sm:$0xff] }
 0x4d3   :  { %v9510_v20 = vrot.slane %v5251_v24, %v8043_v2  ;;  %v4925_v43 = vpop.permute.xlu1 %4924  ;;  %5570 = vmatprep.mubr.f32.mxu0 %v5439_v63  ;;  %6175 = vmatpush1.msra.mxu1 %v5885_v59  ;;  %v5008_v6 = vsel %vm2956_vm5, %v4808_v35, %v4959_v55  ;;  %v5824_v24 = vld [vmem:[#allocation13 + $0xd8] sm:$0xff]  ;;  %v5458_v63 = vcombine.low %v5450_v22, %v5457_v13  ;;  %v6721_v55 = vld.sshfl [vmem:[#allocation3 + $0x6c] sm:$0x3 pattern:$0x76325410]  ;;  %v5802_v13 = vld [vmem:[#allocation13 + $0x28] sm:$0xff] }
 0x4d4   :  { %5571 = vmatmul.mubr.f32.gmra.mxu0 %v5438_v9  ;;  %6176 = vmatprep.subr.mxu1 %v5884_v54  ;;  %v5000_v18 = vsel %vm2956_vm5, %v4789_v58, %v4925_v43  ;;  %v5155_v53 = vcombine.low %v4999_v48, %v5008_v6  ;;  %v5823_v9 = vld [vmem:[#allocation13 + $0xd0] sm:$0xff]  ;;  %v5878_v6 = vld [vmem:[#allocation13 + $0x288] sm:$0xff]  ;;  %v5809_v58 = vld [vmem:[#allocation13 + $0x60] sm:$0xff] }
 0x4d5   :  { %v5266_v29 = vcombine.low %v5258_v16, %v9510_v20  ;;  %6177 = vmatpush1.msra.mxu1 %v5883_v10  ;;  %v6731_v54 = vcombine.low %v9510_v20, %v9510_v20  ;;  %v5482_v20 = vrot.slane %v6721_v55, %v8043_v2  ;;  %v5815_v35 = vld [vmem:[#allocation13 + $0x90] sm:$0xff]  ;;  %v5873_v48 = vld [vmem:[#allocation13 + $0x260] sm:$0xff]  ;;  %v5922_v55 = vld [vmem:[#allocation13 + $0x3e8] sm:$0xff] }
 0x4d6   :  { %6178 = vmatprep.subr.mxu1 %v5882_v31  ;;  %v4963_v60 = vpop.permute.xlu0 %4962  ;;  %v5169_v32 = vrot.slane %v5155_v53, %v8043_v2  ;;  %v5821_v31 = vld [vmem:[#allocation13 + $0xc0] sm:$0xff]  ;;  %v5804_v53 = vld [vmem:[#allocation13 + $0x38] sm:$0xff] }
 0x4d7   :  { %v4929_v41 = vpop.permute.xlu1 %4928  ;;  %v5466_v14 = vrot.slane %v5266_v29, %v8043_v2  ;;  %6179 = vmatpush1.msra.mxu1 %v5881_v50  ;;  %v5010_v5 = vsel %vm2956_vm5, %v4810_v47, %v4963_v60  ;;  %v5820_v50 = vld [vmem:[#allocation13 + $0xb8] sm:$0xff]  ;;  %v5819_v29 = vld [vmem:[#allocation13 + $0xb0] sm:$0xff]  ;;  %v5473_v44 = vrot.slane %v6731_v54, %v8043_v2  ;;  %v5814_v47 = vld [vmem:[#allocation13 + $0x88] sm:$0xff] }
 0x4d8   :  { %6180 = vmatprep.subr.mxu1 %v5880_v45  ;;  %v5203_v36 = vcombine.low %v5001_v3, %v5010_v5  ;;  %v5002_v23 = vsel %vm2956_vm5, %v4791_v7, %v4929_v41  ;;  %v5817_v41 = vld [vmem:[#allocation13 + $0xa0] sm:$0xff]  ;;  %v5872_v5 = vld [vmem:[#allocation13 + $0x258] sm:$0xff]  ;;  %v5803_v3 = vld [vmem:[#allocation13 + $0x30] sm:$0xff] }
 0x4d9   :  { %v5474_v27 = vcombine.high %v5466_v14, %v5466_v14  ;;  %v5475_v37 = vcombine.high %v5473_v44, %v5473_v44  ;;  %v5813_v60 = vld [vmem:[#allocation13 + $0x80] sm:$0xff]  ;;  %v5924_v54 = vld [vmem:[#allocation13 + $0x3f8] sm:$0xff] }
 0x4da   :  { %v5217_v10 = vrot.slane %v5203_v36, %v8043_v2  ;;  %v5801_v7 = vld [vmem:[#allocation13 + $0x20] sm:$0xff]  ;;  %v5867_v36 = vld [vmem:[#allocation13 + $0x230] sm:$0xff] }
 0x4db   :  { %v4961_v52 = vpop.permute.xlu1 %4960  ;;  %5575 = vmatprep.mubr.f32.mxu0 %v5474_v27  ;;  %v5879_v27 = vld [vmem:[#allocation13 + $0x290] sm:$0xff]  ;;  %v5797_v22 = vld [vmem:[#allocation13] sm:$0xff] }
 0x4dc   :  { %v5009_v39 = vsel %vm2956_vm5, %v4809_v38, %v4961_v52  ;;  %5576 = vmatmul.mubr.f32.gmra.mxu0 %v5466_v14  ;;  %6181 = vmatpush1.msra.mxu1 %v5879_v27  ;;  %v5875_v38 = vld [vmem:[#allocation13 + $0x270] sm:$0xff]  ;;  %v5808_v52 = vld [vmem:[#allocation13 + $0x58] sm:$0xff]  ;;  %v5846_v27 = vld [vmem:[#allocation13 + $0x188] sm:$0xff] }
 0x4dd   :  { %v5179_v15 = vcombine.low %v5000_v18, %v5009_v39  ;;  %7083 = vmatprep.mubr.msk.f32.mxu0 %vm7347_vm7, %v7342_v0  ;;  %6182 = vmatprep.subr.mxu1 %v5878_v6  ;;  %v5806_v18 = vld [vmem:[#allocation13 + $0x48] sm:$0xff]  ;;  %v5805_v39 = vld [vmem:[#allocation13 + $0x40] sm:$0xff] }
 0x4de   :  { %6183 = vmatpush1.msra.mxu1 %v5877_v46  ;;  %v5845_v6 = vld [vmem:[#allocation13 + $0x180] sm:$0xff]  ;;  %v5844_v46 = vld [vmem:[#allocation13 + $0x178] sm:$0xff] }
 0x4df   :  { %v5193_v1 = vrot.slane %v5179_v15, %v8043_v2  ;;  %v4965_v33 = vpop.permute.xlu1 %4964  ;;  %6184 = vmatprep.subr.mxu1 %v5876_v8  ;;  %v5870_v15 = vld [vmem:[#allocation13 + $0x248] sm:$0xff]  ;;  %v5843_v8 = vld [vmem:[#allocation13 + $0x170] sm:$0xff] }
 0x4e0   :  { %v5011_v17 = vsel %vm2956_vm5, %v4811_v11, %v4965_v33  ;;  %7084 = vmatmul.mubr.msk.f32.vlgmr.msra.gmra.mxu0 %vm2956_vm5, %v5405_v30  ;;  %6185 = vmatpush1.msra.mxu1 %v5875_v38  ;;  %v5869_v30 = vld [vmem:[#allocation13 + $0x240] sm:$0xff]  ;;  %v5866_v11 = vld [vmem:[#allocation13 + $0x228] sm:$0xff]  ;;  %v5799_v33 = vld [vmem:[#allocation13 + $0x10] sm:$0xff] }
 0x4e1   :  { %v5227_v59 = vcombine.low %v5002_v23, %v5011_v17  ;;  %7086 = vmatprep.mubr.msk.f32.mxu0 %vm7347_vm7, %v7342_v0  ;;  %6098 = vmatpush1.msra.mxu0 %v5827_v19  ;;  %v6728_v16 = vcombine.low %v5169_v32, %v5193_v1  ;;  %v5868_v19 = vld [vmem:[#allocation13 + $0x238] sm:$0xff]  ;;  %v5798_v23 = vld [vmem:[#allocation13 + $0x8] sm:$0xff] }
 0x4e2   :  { %6099 = vmatprep.subr.mxu0 %v5826_v42  ;;  %6186 = vmatprep.subr.mxu1 %v5874_v21  ;;  %v5800_v1 = vld [vmem:[#allocation13 + $0x18] sm:$0xff]  ;;  %v5865_v42 = vld [vmem:[#allocation13 + $0x220] sm:$0xff]  ;;  %v5842_v38 = vld [vmem:[#allocation13 + $0x168] sm:$0xff] }
 0x4e3   :  { %v5241_v43 = vrot.slane %v5227_v59, %v8043_v2  ;;  %6100 = vmatpush1.msra.mxu0 %v5825_v26  ;;  %v5423_v4 = vrot.slane %v6728_v16, %v8043_v2  ;;  %6187 = vmatpush1.msra.mxu1 %v5873_v48  ;;  %v5864_v17 = vld [vmem:[#allocation13 + $0x218] sm:$0xff]  ;;  %v5863_v26 = vld [vmem:[#allocation13 + $0x210] sm:$0xff]  ;;  %v5862_v59 = vld [vmem:[#allocation13 + $0x208] sm:$0xff] }
 0x4e4   :  { %7087 = vmatmul.mubr.msk.f32.gmra.mxu0 %vm2956_vm5, %v5458_v63  ;;  %6101 = vmatprep.subr.mxu0 %v5824_v24  ;;  %v5860_v32 = vld [vmem:[#allocation13 + $0x1f8] sm:$0xff]  ;;  %v5859_v24 = vld [vmem:[#allocation13 + $0x1f0] sm:$0xff]  ;;  %v5861_v63 = vld [vmem:[#allocation13 + $0x200] sm:$0xff] }
 0x4e5   :  { %v6730_v25 = vcombine.low %v5217_v10, %v5241_v43  ;;  %7089 = vmatprep.mubr.msk.f32.mxu0 %vm7347_vm7, %v7342_v0  ;;  %6102 = vmatpush1.msra.mxu0 %v5823_v9  ;;  %v5858_v9 = vld [vmem:[#allocation13 + $0x1e8] sm:$0xff]  ;;  %v5857_v10 = vld [vmem:[#allocation13 + $0x1e0] sm:$0xff]  ;;  %v5923_v16 = vld [vmem:[#allocation13 + $0x3f0] sm:$0xff] }
 0x4e6   :  { %6103 = vmatprep.subr.mxu0 %v5822_v12  ;;  %6188 = vmatprep.subr.mxu1 %v5872_v5  ;;  %v5856_v43 = vld [vmem:[#allocation13 + $0x1d8] sm:$0xff]  ;;  %v5855_v12 = vld [vmem:[#allocation13 + $0x1d0] sm:$0xff]  ;;  %v5841_v21 = vld [vmem:[#allocation13 + $0x160] sm:$0xff] }
 0x4e7   :  { %v5437_v45 = vrot.slane %v6730_v25, %v8043_v2  ;;  %6104 = vmatpush1.msra.mxu0 %v5821_v31  ;;  %6189 = vmatpush1.msra.mxu1 %v5871_v40  ;;  %v5921_v31 = vld [vmem:[#allocation13 + $0x3e0] sm:$0xff]  ;;  %v5854_v25 = vld [vmem:[#allocation13 + $0x1c8] sm:$0xff]  ;;  %v5840_v48 = vld [vmem:[#allocation13 + $0x158] sm:$0xff] }
 0x4e8   :  { %7090 = vmatmul.mubr.msk.f32.gmra.mxu0 %vm2956_vm5, %v5482_v20  ;;  %6105 = vmatprep.subr.mxu0 %v5820_v50  ;;  %v5920_v50 = vld [vmem:[#allocation13 + $0x3d8] sm:$0xff]  ;;  %v5853_v20 = vld [vmem:[#allocation13 + $0x1c0] sm:$0xff]  ;;  %v5839_v5 = vld [vmem:[#allocation13 + $0x150] sm:$0xff] }
 0x4e9   :  { %v5441_v14 = vcombine.high %v5423_v4, %v5437_v45  ;;  %v5440_v51 = vcombine.low %v5423_v4, %v5437_v45  ;;  %6106 = vmatpush1.msra.mxu0 %v5819_v29  ;;  %6190 = vmatprep.subr.mxu1 %v5870_v15  ;;  %v5919_v29 = vld [vmem:[#allocation13 + $0x3d0] sm:$0xff]  ;;  %v5852_v4 = vld [vmem:[#allocation13 + $0x1b8] sm:$0xff]  ;;  %v5918_v45 = vld [vmem:[#allocation13 + $0x3c8] sm:$0xff] }
 0x4ea   :  { %6107 = vmatprep.subr.mxu0 %v5818_v62  ;;  %6191 = vmatpush1.msra.mxu1 %v5869_v30  ;;  %v5917_v62 = vld [vmem:[#allocation13 + $0x3c0] sm:$0xff]  ;;  %v5838_v40 = vld [vmem:[#allocation13 + $0x148] sm:$0xff]  ;;  %v5836_v30 = vld [vmem:[#allocation13 + $0x138] sm:$0xff] }
 0x4eb   :  { %5650 = vmatprep.mubr.f32.mxu1 %v5441_v14  ;;  %6108 = vmatpush1.msra.mxu0 %v5817_v41  ;;  %v5850_v41 = vld [vmem:[#allocation13 + $0x1a8] sm:$0xff]  ;;  %v5916_v14 = vld [vmem:[#allocation13 + $0x3b8] sm:$0xff]  ;;  %v5837_v15 = vld [vmem:[#allocation13 + $0x140] sm:$0xff] }
 0x4ec   :  { %5651 = vmatmul.mubr.f32.gmra.mxu1 %v5440_v51  ;;  %6109 = vmatprep.subr.mxu0 %v5816_v34  ;;  %v5849_v51 = vld [vmem:[#allocation13 + $0x1a0] sm:$0xff]  ;;  %v5915_v34 = vld [vmem:[#allocation13 + $0x3b0] sm:$0xff] }
 0x4ed   :  { %5655 = vmatprep.mubr.f32.mxu1 %v5475_v37  ;;  %6110 = vmatpush1.msra.mxu0 %v5815_v35  ;;  %v5848_v35 = vld [vmem:[#allocation13 + $0x198] sm:$0xff]  ;;  %v5914_v37 = vld [vmem:[#allocation13 + $0x3a8] sm:$0xff] }
 0x4ee   :  { %6111 = vmatprep.subr.mxu0 %v5814_v47  ;;  %6192 = vmatprep.subr.mxu1 %v5868_v19  ;;  %v5847_v47 = vld [vmem:[#allocation13 + $0x190] sm:$0xff] }
 0x4ef   :  { %6112 = vmatpush1.msra.mxu0 %v5813_v60  ;;  %6193 = vmatpush1.msra.mxu1 %v5867_v36  ;;  %v5913_v60 = vld [vmem:[#allocation13 + $0x3a0] sm:$0xff]  ;;  %v5835_v19 = vld [vmem:[#allocation13 + $0x130] sm:$0xff]  ;;  %v5834_v36 = vld [vmem:[#allocation13 + $0x128] sm:$0xff] }
 0x4f0   :  { %5656 = vmatmul.mubr.f32.gmra.mxu1 %v5473_v44  ;;  %6113 = vmatprep.subr.mxu0 %v5812_v49  ;;  %v5851_v44 = vld [vmem:[#allocation13 + $0x1b0] sm:$0xff]  ;;  %v5912_v49 = vld [vmem:[#allocation13 + $0x398] sm:$0xff] }
 0x4f1   :  { %6114 = vmatpush1.msra.mxu0 %v5811_v57  ;;  %6194 = vmatprep.subr.mxu1 %v5866_v11  ;;  %v5911_v57 = vld [vmem:[#allocation13 + $0x390] sm:$0xff]  ;;  %v5833_v11 = vld [vmem:[#allocation13 + $0x120] sm:$0xff] }
 0x4f2   :  { %6115 = vmatprep.subr.mxu0 %v5810_v56  ;;  %6195 = vmatpush1.msra.mxu1 %v5865_v42  ;;  %v5910_v56 = vld [vmem:[#allocation13 + $0x388] sm:$0xff]  ;;  %v5832_v42 = vld [vmem:[#allocation13 + $0x118] sm:$0xff] }
 0x4f3   :  { %6116 = vmatpush1.msra.mxu0 %v5809_v58  ;;  %6196 = vmatprep.subr.mxu1 %v5864_v17  ;;  %v5909_v58 = vld [vmem:[#allocation13 + $0x380] sm:$0xff]  ;;  %v5831_v17 = vld [vmem:[#allocation13 + $0x110] sm:$0xff] }
 0x4f4   :  { %6117 = vmatprep.subr.mxu0 %v5808_v52  ;;  %6197 = vmatpush1.msra.mxu1 %v5863_v26  ;;  %v5908_v52 = vld [vmem:[#allocation13 + $0x378] sm:$0xff]  ;;  %v5830_v26 = vld [vmem:[#allocation13 + $0x108] sm:$0xff] }
 0x4f5   :  { %6118 = vmatpush1.msra.mxu0 %v5807_v28  ;;  %6198 = vmatprep.subr.mxu1 %v5862_v59  ;;  %v5907_v28 = vld [vmem:[#allocation13 + $0x370] sm:$0xff]  ;;  %v5829_v59 = vld [vmem:[#allocation13 + $0x100] sm:$0xff] }
 0x4f6   :  { %6119 = vmatprep.subr.mxu0 %v5806_v18  ;;  %6199 = vmatpush1.msra.mxu1 %v5861_v63  ;;  %v5906_v18 = vld [vmem:[#allocation13 + $0x368] sm:$0xff] }
 0x4f7   :  { %6120 = vmatpush1.msra.mxu0 %v5805_v39  ;;  %6200 = vmatprep.subr.mxu1 %v5924_v54  ;;  %v5905_v39 = vld [vmem:[#allocation13 + $0x360] sm:$0xff]  ;;  %v5894_v63 = vld [vmem:[#allocation13 + $0x308] sm:$0xff] }
 0x4f8   :  { %6121 = vmatprep.subr.mxu0 %v5804_v53  ;;  %6201 = vmatpush2.msra.mxu1 %v5923_v16  ;;  %v5904_v53 = vld [vmem:[#allocation13 + $0x358] sm:$0xff]  ;;  %v5893_v54 = vld [vmem:[#allocation13 + $0x300] sm:$0xff] }
 0x4f9   :  { %6122 = vmatpush1.msra.mxu0 %v5803_v3  ;;  %6202 = vmatprep.subr.mxu1 %v5922_v55  ;;  %v5903_v3 = vld [vmem:[#allocation13 + $0x350] sm:$0xff] }
 0x4fa   :  { %6123 = vmatprep.subr.mxu0 %v5802_v13  ;;  %6203 = vmatpush2.msra.mxu1 %v5921_v31  ;;  %v5902_v13 = vld [vmem:[#allocation13 + $0x348] sm:$0xff] }
 0x4fb   :  { %6124 = vmatpush1.msra.mxu0 %v5801_v7  ;;  %6204 = vmatprep.subr.mxu1 %v5920_v50  ;;  %v5901_v7 = vld [vmem:[#allocation13 + $0x340] sm:$0xff]  ;;  %v6722_v50 = vld [vmem:[#allocation12] ss:$0 sm:$0xff] }
 0x4fc   :  { %6125 = vmatprep.subr.mxu0 %v5800_v1  ;;  %6205 = vmatpush2.msra.mxu1 %v5919_v29  ;;  %v5900_v1 = vld [vmem:[#allocation13 + $0x338] sm:$0xff] }
 0x4fd   :  { %6126 = vmatpush1.msra.mxu0 %v5799_v33  ;;  %6206 = vmatprep.subr.mxu1 %v5918_v45  ;;  %v5899_v33 = vld [vmem:[#allocation13 + $0x330] sm:$0xff] }
 0x4fe   :  { %6127 = vmatprep.subr.mxu0 %v5798_v23  ;;  %6207 = vmatpush2.msra.mxu1 %v5917_v62  ;;  %v5898_v23 = vld [vmem:[#allocation13 + $0x328] sm:$0xff] }
 0x4ff   :  { %6128 = vmatpush1.msra.mxu0 %v5797_v22  ;;  %6208 = vmatprep.subr.mxu1 %v5916_v14  ;;  %v5897_v22 = vld [vmem:[#allocation13 + $0x320] sm:$0xff] }
 0x500   :  { %6129 = vmatprep.subr.mxu0 %v5860_v32  ;;  %6209 = vmatpush2.msra.mxu1 %v5915_v34  ;;  %v5896_v32 = vld [vmem:[#allocation13 + $0x318] sm:$0xff] }
 0x501   :  { %6130 = vmatpush2.msra.mxu0 %v5859_v24  ;;  %6210 = vmatprep.subr.mxu1 %v5914_v37  ;;  %v5895_v24 = vld [vmem:[#allocation13 + $0x310] sm:$0xff] }
 0x502   :  { %6131 = vmatprep.subr.mxu0 %v5858_v9  ;;  %6211 = vmatpush2.msra.mxu1 %v5913_v60  ;;  %v5956_v9 = vld [vmem:[#allocation13 + $0x4f8] sm:$0xff] }
 0x503   :  { %6132 = vmatpush2.msra.mxu0 %v5857_v10  ;;  %6212 = vmatprep.subr.mxu1 %v5912_v49  ;;  %v6020_v10 = vld [vmem:[#allocation13 + $0x6f8] sm:$0xff] }
 0x504   :  { %6133 = vmatprep.subr.mxu0 %v5856_v43  ;;  %6213 = vmatpush2.msra.mxu1 %v5911_v57 }
 0x505   :  { %6134 = vmatpush2.msra.mxu0 %v5855_v12  ;;  %6214 = vmatprep.subr.mxu1 %v5910_v56  ;;  %v5955_v56 = vld [vmem:[#allocation13 + $0x4f0] sm:$0xff] }
 0x506   :  { %6135 = vmatprep.subr.mxu0 %v5854_v25  ;;  %6215 = vmatpush2.msra.mxu1 %v5909_v58  ;;  %v5954_v58 = vld [vmem:[#allocation13 + $0x4e8] sm:$0xff] }
 0x507   :  { %6136 = vmatpush2.msra.mxu0 %v5853_v20  ;;  %6216 = vmatprep.subr.mxu1 %v5908_v52  ;;  %v5953_v52 = vld [vmem:[#allocation13 + $0x4e0] sm:$0xff] }
 0x508   :  { %6137 = vmatprep.subr.mxu0 %v5852_v4  ;;  %6217 = vmatpush2.msra.mxu1 %v5907_v28 }
 0x509   :  { %6138 = vmatpush2.msra.mxu0 %v5851_v44  ;;  %6218 = vmatprep.subr.mxu1 %v5906_v18  ;;  %v6018_v18 = vld [vmem:[#allocation13 + $0x6e8] sm:$0xff] }
 0x50a   :  { %6139 = vmatprep.subr.mxu0 %v5850_v41  ;;  %6219 = vmatpush2.msra.mxu1 %v5905_v39  ;;  %v5951_v39 = vld [vmem:[#allocation13 + $0x4d0] sm:$0xff] }
 0x50b   :  { %6140 = vmatpush2.msra.mxu0 %v5849_v51  ;;  %6220 = vmatprep.subr.mxu1 %v5904_v53  ;;  %v5950_v53 = vld [vmem:[#allocation13 + $0x4c8] sm:$0xff] }
 0x50c   :  { %6141 = vmatprep.subr.mxu0 %v5848_v35  ;;  %6221 = vmatpush2.msra.mxu1 %v5903_v3 }
 0x50d   :  { %6142 = vmatpush2.msra.mxu0 %v5847_v47  ;;  %6222 = vmatprep.subr.mxu1 %v5902_v13  ;;  %v6015_v13 = vld [vmem:[#allocation13 + $0x6d0] sm:$0xff] }
 0x50e   :  { %6143 = vmatprep.subr.mxu0 %v5846_v27  ;;  %6223 = vmatpush2.msra.mxu1 %v5901_v7 }
 0x50f   :  { %6144 = vmatpush2.msra.mxu0 %v5845_v6  ;;  %6224 = vmatprep.subr.mxu1 %v5900_v1  ;;  %v6014_v1 = vld [vmem:[#allocation13 + $0x6c8] sm:$0xff] }
 0x510   :  { %6145 = vmatprep.subr.mxu0 %v5844_v46  ;;  %6225 = vmatpush2.msra.mxu1 %v5899_v33  ;;  %v5947_v33 = vld [vmem:[#allocation13 + $0x4b0] sm:$0xff] }
 0x511   :  { %6146 = vmatpush2.msra.mxu0 %v5843_v8  ;;  %6226 = vmatprep.subr.mxu1 %v5898_v23 }
 0x512   :  { %6147 = vmatprep.subr.mxu0 %v5842_v38  ;;  %6227 = vmatpush2.msra.mxu1 %v5897_v22  ;;  %v6012_v22 = vld [vmem:[#allocation13 + $0x6b8] sm:$0xff] }
 0x513   :  { %6148 = vmatpush2.msra.mxu0 %v5841_v21  ;;  %6228 = vmatprep.subr.mxu1 %v5896_v32  ;;  %v6019_v21 = vld [vmem:[#allocation13 + $0x6f0] sm:$0xff]  ;;  %v5945_v32 = vld [vmem:[#allocation13 + $0x4a0] sm:$0xff] }
 0x514   :  { %6149 = vmatprep.subr.mxu0 %v5840_v48  ;;  %6229 = vmatpush2.msra.mxu1 %v5895_v24  ;;  %v5952_v48 = vld [vmem:[#allocation13 + $0x4d8] sm:$0xff] }
 0x515   :  { %6150 = vmatpush2.msra.mxu0 %v5839_v5  ;;  %6230 = vmatprep.subr.mxu1 %v5894_v63 }
 0x516   :  { %6151 = vmatprep.subr.mxu0 %v5838_v40  ;;  %6231 = vmatpush2.msra.mxu1 %v5893_v54  ;;  %v6017_v40 = vld [vmem:[#allocation13 + $0x6e0] sm:$0xff]  ;;  %v6010_v54 = vld [vmem:[#allocation13 + $0x6a8] sm:$0xff] }
 0x517   :  { %6152 = vmatpush2.msra.mxu0 %v5837_v15  ;;  %6310 = vmatprep.subr.mxu1 %v6020_v10  ;;  %v6016_v15 = vld [vmem:[#allocation13 + $0x6d8] sm:$0xff]  ;;  %v5943_v10 = vld [vmem:[#allocation13 + $0x490] sm:$0xff] }
 0x518   :  { %6153 = vmatprep.subr.mxu0 %v5836_v30  ;;  %v5949_v30 = vld [vmem:[#allocation13 + $0x4c0] sm:$0xff] }
 0x519   :  { %6154 = vmatpush2.msra.mxu0 %v5835_v19 }
 0x51a   :  { %6155 = vmatprep.subr.mxu0 %v5834_v36  ;;  %v5948_v36 = vld [vmem:[#allocation13 + $0x4b8] sm:$0xff] }
 0x51b   :  { %6156 = vmatpush2.msra.mxu0 %v5833_v11 }
 0x51c   :  { %6157 = vmatprep.subr.mxu0 %v5832_v42  ;;  %v6013_v42 = vld [vmem:[#allocation13 + $0x6c0] sm:$0xff] }
 0x51d   :  { %6158 = vmatpush2.msra.mxu0 %v5831_v17  ;;  %v5946_v17 = vld [vmem:[#allocation13 + $0x4a8] sm:$0xff] }
 0x51e   :  { %6159 = vmatprep.subr.mxu0 %v5830_v26 }
 0x51f   :  { %6160 = vmatpush2.msra.mxu0 %v5829_v59  ;;  %v6011_v59 = vld [vmem:[#allocation13 + $0x6b0] sm:$0xff] }
 0x520   :  { %6239 = vmatprep.subr.mxu0 %v5956_v9  ;;  %v5944_v9 = vld [vmem:[#allocation13 + $0x498] sm:$0xff] }
 0x578   :  { %v6878_v16 = vpop.f32.mrf.mxu0 }
 0x57a   :  { %v6879_v43 = vpop.f32.mrf.mxu0 }
 0x57b   :  { %v6880_v25 = vadd.f32 %v6879_v43, %v6878_v16  ;;  %v6009_v16 = vld [vmem:[#allocation13 + $0x6a0] sm:$0xff] }
 0x57d   :  { %v5568_v45 = vadd.f32 %v6880_v25, %v6722_v50  ;;  %v5941_v25 = vld [vmem:[#allocation13 + $0x480] sm:$0xff] }
 0x58c   :  { %v6919_v55 = vpop.f32.mrf.mxu1 }
 0x58e   :  { %v6920_v31 = vpop.f32.mrf.mxu1 }
 0x58f   :  { %v6921_v29 = vadd.f32 %v6920_v31, %v6919_v55  ;;  %v6008_v31 = vld [vmem:[#allocation13 + $0x698] sm:$0xff] }
 0x591   :  { %v5648_v41 = vadd.f32 %v6921_v29, %v5568_v45  ;;  %v6006_v45 = vld [vmem:[#allocation13 + $0x688] sm:$0xff] }
 0x594   :  { %v6881_v12 = vpop.f32.mrf.mxu0 }
 0x596   :  { %v6882_v20 = vpop.f32.mrf.mxu0 }
 0x597   :  { %v6883_v28 = vadd.f32 %v6882_v20, %v6881_v12  ;;  %v5942_v12 = vld [vmem:[#allocation13 + $0x488] sm:$0xff] }
 0x599   :  { %v5573_v19 = vadd.f32 %v6883_v28, %v6722_v50  ;;  %v5997_v28 = vld [vmem:[#allocation13 + $0x640] sm:$0xff] }
 0x59c   :  { %v6884_v4 = vpop.f32.mrf.mxu0 }
 0x59e   :  { %v6885_v44 = vpop.f32.mrf.mxu0 }
 0x59f   :  { %v6886_v62 = vadd.f32 %v6885_v44, %v6884_v4  ;;  %v5940_v4 = vld [vmem:[#allocation13 + $0x478] sm:$0xff] }
 0x5a0   :  { %v5727_v14 = vpop.f32.mrf.mxu0 }
 0x5a1   :  { %v9547_v51 = vadd.f32 %v6886_v62, %v6722_v50  ;;  %v5728_v34 = vadd.f32 %v5727_v14, %v5648_v41  ;;  %v6007_v50 = vld [vmem:[#allocation13 + $0x690] sm:$0xff]  ;;  %v6005_v41 = vld [vmem:[#allocation13 + $0x680] sm:$0xff]  ;;  %v5938_v14 = vld [vmem:[#allocation13 + $0x468] sm:$0xff] }
 0x5a2   :  { %v7085_v35 = vpop.f32.mrf.mxu0  ;;  %v5939_v62 = vld [vmem:[#allocation13 + $0x470] sm:$0xff] }
 0x5a3   :  { %v5741_v37 = vmax.f32 %v5728_v34, 0.0  ;;  %v6004_v35 = vld [vmem:[#allocation13 + $0x678] sm:$0xff] }
 0x5a4   :  { %v5732_v47 = vpop.f32.mrf.mxu0 }
 0x5a5   :  { %v5747_v60 = vcombine.high %v5741_v37, %v5741_v37  ;;  %v5754_v27 = vrot.slane %v5741_v37, %v8043_v2  ;;  %v5937_v37 = vld [vmem:[#allocation13 + $0x460] sm:$0xff] }
 0x5a6   :  { %v7088_v49 = vpop.f32.mrf.mxu0 }
 0x5a7   :  { %v5761_v6 = vrot.slane %v5747_v60, %v8043_v2  ;;  %v5762_v57 = vcombine.high %v5754_v27, %v5754_v27  ;;  %v5936_v60 = vld [vmem:[#allocation13 + $0x458] sm:$0xff]  ;;  %v6002_v49 = vld [vmem:[#allocation13 + $0x668] sm:$0xff] }
 0x5a8   :  { %v9551_v46 = vpop.f32.mrf.mxu0 }
 0x5a9   :  { %6161 = vmatprep.mubr.f32.mxu0 %v5762_v57  ;;  %v5763_v8 = vcombine.high %v5761_v6, %v5761_v6  ;;  %v6001_v57 = vld [vmem:[#allocation13 + $0x660] sm:$0xff] }
 0x5aa   :  { %v7091_v38 = vpop.f32.mrf.mxu0  ;;  %6162 = vmatmul.mubr.f32.vlgmr.msra.gmra.mxu0 %v5754_v27 }
 0x5ab   :  { %6240 = vmatpush1.msra.mxu0 %v5955_v56  ;;  %6232 = vmatprep.mubr.f32.mxu1 %v5763_v8  ;;  %v6000_v56 = vld [vmem:[#allocation13 + $0x658] sm:$0xff]  ;;  %v5933_v8 = vld [vmem:[#allocation13 + $0x440] sm:$0xff] }
 0x5ac   :  { %6241 = vmatprep.subr.mxu0 %v5954_v58  ;;  %v6922_v5 = vpop.f32.mrf.mxu1  ;;  %6233 = vmatmul.mubr.f32.vlgmr.msra.gmra.mxu1 %v5761_v6  ;;  %v5935_v6 = vld [vmem:[#allocation13 + $0x450] sm:$0xff]  ;;  %v5932_v38 = vld [vmem:[#allocation13 + $0x438] sm:$0xff] }
 0x5ad   :  { %6242 = vmatpush1.msra.mxu0 %v5953_v52  ;;  %6311 = vmatpush1.msra.mxu1 %v6019_v21  ;;  %v5999_v58 = vld [vmem:[#allocation13 + $0x650] sm:$0xff]  ;;  %v5998_v52 = vld [vmem:[#allocation13 + $0x648] sm:$0xff] }
 0x5ae   :  { %6243 = vmatprep.subr.mxu0 %v5952_v48  ;;  %6312 = vmatprep.subr.mxu1 %v6018_v18  ;;  %v6923_v3 = vpop.f32.mrf.mxu1  ;;  %v5931_v21 = vld [vmem:[#allocation13 + $0x430] sm:$0xff]  ;;  %v5930_v48 = vld [vmem:[#allocation13 + $0x428] sm:$0xff]  ;;  %v5996_v18 = vld [vmem:[#allocation13 + $0x638] sm:$0xff] }
 0x5af   :  { %v6924_v7 = vadd.f32 %v6923_v3, %v6922_v5  ;;  %6244 = vmatpush1.msra.mxu0 %v5951_v39  ;;  %6313 = vmatpush1.msra.mxu1 %v6017_v40  ;;  %v5929_v5 = vld [vmem:[#allocation13 + $0x420] sm:$0xff]  ;;  %v5995_v39 = vld [vmem:[#allocation13 + $0x630] sm:$0xff]  ;;  %v5928_v40 = vld [vmem:[#allocation13 + $0x418] sm:$0xff] }
 0x5b0   :  { %6245 = vmatprep.subr.mxu0 %v5950_v53  ;;  %6314 = vmatprep.subr.mxu1 %v6016_v15  ;;  %v6925_v11 = vpop.f32.mrf.mxu1  ;;  %v5994_v53 = vld [vmem:[#allocation13 + $0x628] sm:$0xff]  ;;  %v5927_v15 = vld [vmem:[#allocation13 + $0x410] sm:$0xff]  ;;  %v5993_v3 = vld [vmem:[#allocation13 + $0x620] sm:$0xff] }
 0x5b1   :  { %v5653_v23 = vadd.f32 %v6924_v7, %v5573_v19  ;;  %6246 = vmatpush1.msra.mxu0 %v5949_v30  ;;  %6315 = vmatpush1.msra.mxu1 %v6015_v13  ;;  %v5926_v30 = vld [vmem:[#allocation13 + $0x408] sm:$0xff]  ;;  %v5992_v13 = vld [vmem:[#allocation13 + $0x618] sm:$0xff]  ;;  %v5925_v19 = vld [vmem:[#allocation13 + $0x400] sm:$0xff] }
 0x5b2   :  { %6247 = vmatprep.subr.mxu0 %v5948_v36  ;;  %6316 = vmatprep.subr.mxu1 %v6014_v1  ;;  %v6926_v26 = vpop.f32.mrf.mxu1  ;;  %v5991_v7 = vld [vmem:[#allocation13 + $0x610] sm:$0xff]  ;;  %v5988_v36 = vld [vmem:[#allocation13 + $0x5f8] sm:$0xff]  ;;  %v5990_v1 = vld [vmem:[#allocation13 + $0x608] sm:$0xff] }
 0x5b3   :  { %v5733_v24 = vadd.f32 %v5732_v47, %v5653_v23  ;;  %v6927_v63 = vadd.f32 %v6926_v26, %v6925_v11  ;;  %6248 = vmatpush1.msra.mxu0 %v5947_v33  ;;  %6317 = vmatpush1.msra.mxu1 %v6013_v42  ;;  %v6003_v47 = vld [vmem:[#allocation13 + $0x670] sm:$0xff]  ;;  %v5989_v33 = vld [vmem:[#allocation13 + $0x600] sm:$0xff]  ;;  %v5986_v42 = vld [vmem:[#allocation13 + $0x5e8] sm:$0xff] }
 0x5b4   :  { %6249 = vmatprep.subr.mxu0 %v5946_v17  ;;  %6318 = vmatprep.subr.mxu1 %v6012_v22  ;;  %v5987_v11 = vld [vmem:[#allocation13 + $0x5f0] sm:$0xff]  ;;  %v6052_v23 = vld [vmem:[#allocation13 + $0x7f8] sm:$0xff]  ;;  %v5985_v17 = vld [vmem:[#allocation13 + $0x5e0] sm:$0xff] }
 0x5b5   :  { %v5742_v43 = vmax.f32 %v5733_v24, 0.0  ;;  %v5658_v55 = vadd.f32 %v6927_v63, %v9547_v51  ;;  %6250 = vmatpush1.msra.mxu0 %v5945_v32  ;;  %6319 = vmatpush1.msra.mxu1 %v6011_v59  ;;  %v6051_v22 = vld [vmem:[#allocation13 + $0x7f0] sm:$0xff]  ;;  %v5984_v26 = vld [vmem:[#allocation13 + $0x5d8] sm:$0xff]  ;;  %v6050_v32 = vld [vmem:[#allocation13 + $0x7e8] sm:$0xff] }
 0x5b6   :  { %6251 = vmatprep.subr.mxu0 %v5944_v9  ;;  %6320 = vmatprep.subr.mxu1 %v6010_v54  ;;  %v5983_v59 = vld [vmem:[#allocation13 + $0x5d0] sm:$0xff]  ;;  %v6049_v24 = vld [vmem:[#allocation13 + $0x7e0] sm:$0xff]  ;;  %v5982_v63 = vld [vmem:[#allocation13 + $0x5c8] sm:$0xff] }
 0x5b7   :  { %v5764_v20 = vcombine.high %v5742_v43, %v5742_v43  ;;  %v9555_v29 = vadd.f32 %v9551_v46, %v5658_v55  ;;  %6252 = vmatpush1.msra.mxu0 %v5943_v10  ;;  %6321 = vmatpush1.msra.mxu1 %v6009_v16  ;;  %v9558_v44 = vrot.slane %v5742_v43, %v8043_v2  ;;  %v5934_v46 = vld [vmem:[#allocation13 + $0x448] sm:$0xff]  ;;  %v6048_v9 = vld [vmem:[#allocation13 + $0x7d8] sm:$0xff]  ;;  %v5981_v54 = vld [vmem:[#allocation13 + $0x5c0] sm:$0xff] }
 0x5b8   :  { %6253 = vmatprep.subr.mxu0 %v5942_v12  ;;  %6322 = vmatprep.subr.mxu1 %v6008_v31  ;;  %v6047_v10 = vld [vmem:[#allocation13 + $0x7d0] sm:$0xff]  ;;  %v5980_v16 = vld [vmem:[#allocation13 + $0x5b8] sm:$0xff]  ;;  %v6046_v43 = vld [vmem:[#allocation13 + $0x7c8] sm:$0xff] }
 0x5b9   :  { %6254 = vmatpush1.msra.mxu0 %v5941_v25  ;;  %6323 = vmatpush1.msra.mxu1 %v6007_v50  ;;  %v5779_v51 = vcombine.high %v9558_v44, %v9558_v44  ;;  %v9563_v34 = vrot.slane %v5764_v20, %v8043_v2  ;;  %v5979_v55 = vld [vmem:[#allocation13 + $0x5b0] sm:$0xff]  ;;  %v6045_v12 = vld [vmem:[#allocation13 + $0x7c0] sm:$0xff]  ;;  %v5978_v31 = vld [vmem:[#allocation13 + $0x5a8] sm:$0xff] }
 0x5ba   :  { %6255 = vmatprep.subr.mxu0 %v5940_v4  ;;  %6324 = vmatprep.subr.mxu1 %v6006_v45  ;;  %v6044_v25 = vld [vmem:[#allocation13 + $0x7b8] sm:$0xff]  ;;  %v5977_v50 = vld [vmem:[#allocation13 + $0x5a0] sm:$0xff]  ;;  %v6043_v20 = vld [vmem:[#allocation13 + $0x7b0] sm:$0xff] }
 0x5bb   :  { %6256 = vmatpush1.msra.mxu0 %v5939_v62  ;;  %6325 = vmatpush1.msra.mxu1 %v6005_v41  ;;  %v5780_v27 = vcombine.high %v9563_v34, %v9563_v34  ;;  %v5976_v4 = vld [vmem:[#allocation13 + $0x598] sm:$0xff]  ;;  %v6042_v45 = vld [vmem:[#allocation13 + $0x7a8] sm:$0xff]  ;;  %v5975_v62 = vld [vmem:[#allocation13 + $0x590] sm:$0xff] }
 0x5bc   :  { %6257 = vmatprep.subr.mxu0 %v5938_v14  ;;  %6303 = vmatprep.mubr.f32.mxu0 %v5779_v51  ;;  %v6041_v41 = vld [vmem:[#allocation13 + $0x7a0] sm:$0xff]  ;;  %v5974_v14 = vld [vmem:[#allocation13 + $0x588] sm:$0xff]  ;;  %v6040_v51 = vld [vmem:[#allocation13 + $0x798] sm:$0xff] }
 0x5bd   :  { %6326 = vmatprep.subr.mxu1 %v6004_v35  ;;  %6258 = vmatpush1.msra.mxu0 %v5937_v37  ;;  %v5973_v35 = vld [vmem:[#allocation13 + $0x580] sm:$0xff]  ;;  %v6039_v37 = vld [vmem:[#allocation13 + $0x790] sm:$0xff] }
 0x5be   :  { %6327 = vmatpush1.msra.mxu1 %v6003_v47  ;;  %6259 = vmatprep.subr.mxu0 %v5936_v60  ;;  %v5972_v47 = vld [vmem:[#allocation13 + $0x578] sm:$0xff]  ;;  %v6038_v60 = vld [vmem:[#allocation13 + $0x788] sm:$0xff] }
 0x5bf   :  { %6328 = vmatprep.subr.mxu1 %v6002_v49  ;;  %6374 = vmatprep.mubr.f32.mxu1 %v5780_v27  ;;  %v5971_v27 = vld [vmem:[#allocation13 + $0x570] sm:$0xff]  ;;  %v6037_v49 = vld [vmem:[#allocation13 + $0x780] sm:$0xff] }
 0x5c0   :  { %6260 = vmatpush1.msra.mxu0 %v5935_v6  ;;  %6329 = vmatpush1.msra.mxu1 %v6001_v57  ;;  %v5970_v6 = vld [vmem:[#allocation13 + $0x568] sm:$0xff]  ;;  %v6036_v57 = vld [vmem:[#allocation13 + $0x778] sm:$0xff] }
 0x5c1   :  { %6261 = vmatprep.subr.mxu0 %v5934_v46  ;;  %6330 = vmatprep.subr.mxu1 %v6000_v56  ;;  %v5969_v46 = vld [vmem:[#allocation13 + $0x560] sm:$0xff]  ;;  %v6035_v56 = vld [vmem:[#allocation13 + $0x770] sm:$0xff] }
 0x5c2   :  { %6262 = vmatpush1.msra.mxu0 %v5933_v8  ;;  %6331 = vmatpush1.msra.mxu1 %v5999_v58  ;;  %v5968_v8 = vld [vmem:[#allocation13 + $0x558] sm:$0xff]  ;;  %v6034_v58 = vld [vmem:[#allocation13 + $0x768] sm:$0xff] }
 0x5c3   :  { %6263 = vmatprep.subr.mxu0 %v5932_v38  ;;  %6332 = vmatprep.subr.mxu1 %v5998_v52  ;;  %v5967_v38 = vld [vmem:[#allocation13 + $0x550] sm:$0xff]  ;;  %v6033_v52 = vld [vmem:[#allocation13 + $0x760] sm:$0xff] }
 0x5c4   :  { %6264 = vmatpush1.msra.mxu0 %v5931_v21  ;;  %6333 = vmatpush1.msra.mxu1 %v5997_v28  ;;  %v5966_v21 = vld [vmem:[#allocation13 + $0x548] sm:$0xff]  ;;  %v6032_v28 = vld [vmem:[#allocation13 + $0x758] sm:$0xff] }
 0x5c5   :  { %6265 = vmatprep.subr.mxu0 %v5930_v48  ;;  %6334 = vmatprep.subr.mxu1 %v5996_v18  ;;  %v5965_v48 = vld [vmem:[#allocation13 + $0x540] sm:$0xff]  ;;  %v6031_v18 = vld [vmem:[#allocation13 + $0x750] sm:$0xff] }
 0x5c6   :  { %6266 = vmatpush1.msra.mxu0 %v5929_v5  ;;  %6335 = vmatpush1.msra.mxu1 %v5995_v39  ;;  %v5964_v5 = vld [vmem:[#allocation13 + $0x538] sm:$0xff]  ;;  %v6030_v39 = vld [vmem:[#allocation13 + $0x748] sm:$0xff] }
 0x5c7   :  { %6267 = vmatprep.subr.mxu0 %v5928_v40  ;;  %6336 = vmatprep.subr.mxu1 %v5994_v53  ;;  %v5963_v40 = vld [vmem:[#allocation13 + $0x530] sm:$0xff]  ;;  %v6029_v53 = vld [vmem:[#allocation13 + $0x740] sm:$0xff] }
 0x5c8   :  { %6268 = vmatpush1.msra.mxu0 %v5927_v15  ;;  %6337 = vmatpush1.msra.mxu1 %v5993_v3  ;;  %v5962_v15 = vld [vmem:[#allocation13 + $0x528] sm:$0xff]  ;;  %v6028_v3 = vld [vmem:[#allocation13 + $0x738] sm:$0xff] }
 0x5c9   :  { %6269 = vmatprep.subr.mxu0 %v5926_v30  ;;  %6338 = vmatprep.subr.mxu1 %v5992_v13  ;;  %v5961_v30 = vld [vmem:[#allocation13 + $0x520] sm:$0xff]  ;;  %v6027_v13 = vld [vmem:[#allocation13 + $0x730] sm:$0xff] }
 0x5ca   :  { %6270 = vmatpush1.msra.mxu0 %v5925_v19  ;;  %6339 = vmatpush1.msra.mxu1 %v5991_v7  ;;  %v5960_v19 = vld [vmem:[#allocation13 + $0x518] sm:$0xff]  ;;  %v6026_v7 = vld [vmem:[#allocation13 + $0x728] sm:$0xff] }
 0x5cb   :  { %6271 = vmatprep.subr.mxu0 %v5988_v36  ;;  %6340 = vmatprep.subr.mxu1 %v5990_v1  ;;  %v5959_v36 = vld [vmem:[#allocation13 + $0x510] sm:$0xff]  ;;  %v6025_v1 = vld [vmem:[#allocation13 + $0x720] sm:$0xff] }
 0x5cc   :  { %6272 = vmatpush2.msra.mxu0 %v5987_v11  ;;  %6341 = vmatpush1.msra.mxu1 %v5989_v33  ;;  %v5958_v11 = vld [vmem:[#allocation13 + $0x508] sm:$0xff]  ;;  %v6024_v33 = vld [vmem:[#allocation13 + $0x718] sm:$0xff] }
 0x5cd   :  { %6273 = vmatprep.subr.mxu0 %v5986_v42  ;;  %6342 = vmatprep.subr.mxu1 %v6052_v23  ;;  %v5957_v42 = vld [vmem:[#allocation13 + $0x500] sm:$0xff]  ;;  %v6023_v23 = vld [vmem:[#allocation13 + $0x710] sm:$0xff] }
 0x5ce   :  { %6274 = vmatpush2.msra.mxu0 %v5985_v17  ;;  %6343 = vmatpush2.msra.mxu1 %v6051_v22  ;;  %v6022_v17 = vld [vmem:[#allocation13 + $0x708] sm:$0xff]  ;;  %v6084_v22 = vld [vmem:[#allocation13 + $0x8f8] sm:$0xff] }
 0x5cf   :  { %6275 = vmatprep.subr.mxu0 %v5984_v26  ;;  %6344 = vmatprep.subr.mxu1 %v6050_v32  ;;  %v6021_v26 = vld [vmem:[#allocation13 + $0x700] sm:$0xff]  ;;  %v6083_v32 = vld [vmem:[#allocation13 + $0x8f0] sm:$0xff] }
 0x5d0   :  { %6276 = vmatpush2.msra.mxu0 %v5983_v59  ;;  %6345 = vmatpush2.msra.mxu1 %v6049_v24  ;;  %v6082_v59 = vld [vmem:[#allocation13 + $0x8e8] sm:$0xff]  ;;  %v6081_v24 = vld [vmem:[#allocation13 + $0x8e0] sm:$0xff] }
 0x5d1   :  { %6277 = vmatprep.subr.mxu0 %v5982_v63  ;;  %6346 = vmatprep.subr.mxu1 %v6048_v9  ;;  %v6080_v63 = vld [vmem:[#allocation13 + $0x8d8] sm:$0xff]  ;;  %v6079_v9 = vld [vmem:[#allocation13 + $0x8d0] sm:$0xff] }
 0x5d2   :  { %6278 = vmatpush2.msra.mxu0 %v5981_v54  ;;  %6347 = vmatpush2.msra.mxu1 %v6047_v10  ;;  %v6078_v54 = vld [vmem:[#allocation13 + $0x8c8] sm:$0xff]  ;;  %v6077_v10 = vld [vmem:[#allocation13 + $0x8c0] sm:$0xff] }
 0x5d3   :  { %6279 = vmatprep.subr.mxu0 %v5980_v16  ;;  %6348 = vmatprep.subr.mxu1 %v6046_v43  ;;  %v6076_v16 = vld [vmem:[#allocation13 + $0x8b8] sm:$0xff]  ;;  %v6074_v43 = vld [vmem:[#allocation13 + $0x8a8] sm:$0xff] }
 0x5d4   :  { %6280 = vmatpush2.msra.mxu0 %v5979_v55  ;;  %6349 = vmatpush2.msra.mxu1 %v6045_v12  ;;  %v6073_v55 = vld [vmem:[#allocation13 + $0x8a0] sm:$0xff]  ;;  %v6072_v12 = vld [vmem:[#allocation13 + $0x898] sm:$0xff] }
 0x5d5   :  { %6281 = vmatprep.subr.mxu0 %v5978_v31  ;;  %6350 = vmatprep.subr.mxu1 %v6044_v25  ;;  %v6070_v31 = vld [vmem:[#allocation13 + $0x888] sm:$0xff]  ;;  %v6068_v25 = vld [vmem:[#allocation13 + $0x878] sm:$0xff] }
 0x5d6   :  { %6282 = vmatpush2.msra.mxu0 %v5977_v50  ;;  %6351 = vmatpush2.msra.mxu1 %v6043_v20  ;;  %v6067_v50 = vld [vmem:[#allocation13 + $0x870] sm:$0xff]  ;;  %v6066_v20 = vld [vmem:[#allocation13 + $0x868] sm:$0xff] }
 0x5d7   :  { %6283 = vmatprep.subr.mxu0 %v5976_v4  ;;  %6352 = vmatprep.subr.mxu1 %v6042_v45  ;;  %v6065_v4 = vld [vmem:[#allocation13 + $0x860] sm:$0xff]  ;;  %v6064_v45 = vld [vmem:[#allocation13 + $0x858] sm:$0xff] }
 0x5d8   :  { %6284 = vmatpush2.msra.mxu0 %v5975_v62  ;;  %6353 = vmatpush2.msra.mxu1 %v6041_v41  ;;  %v6063_v62 = vld [vmem:[#allocation13 + $0x850] sm:$0xff]  ;;  %v6062_v41 = vld [vmem:[#allocation13 + $0x848] sm:$0xff] }
 0x5d9   :  { %6285 = vmatprep.subr.mxu0 %v5974_v14  ;;  %6354 = vmatprep.subr.mxu1 %v6040_v51  ;;  %v6061_v14 = vld [vmem:[#allocation13 + $0x840] sm:$0xff]  ;;  %v6060_v51 = vld [vmem:[#allocation13 + $0x838] sm:$0xff] }
 0x5da   :  { %6286 = vmatpush2.msra.mxu0 %v5973_v35  ;;  %6355 = vmatpush2.msra.mxu1 %v6039_v37  ;;  %v6059_v35 = vld [vmem:[#allocation13 + $0x830] sm:$0xff]  ;;  %v6058_v37 = vld [vmem:[#allocation13 + $0x828] sm:$0xff] }
 0x5db   :  { %6287 = vmatprep.subr.mxu0 %v5972_v47  ;;  %6356 = vmatprep.subr.mxu1 %v6038_v60  ;;  %v6057_v47 = vld [vmem:[#allocation13 + $0x820] sm:$0xff]  ;;  %v6056_v60 = vld [vmem:[#allocation13 + $0x818] sm:$0xff] }
 0x5dc   :  { %6288 = vmatpush2.msra.mxu0 %v5971_v27  ;;  %6357 = vmatpush2.msra.mxu1 %v6037_v49  ;;  %v5743_v27 = vmax.f32 %v9555_v29, 0.0  ;;  %v6055_v49 = vld [vmem:[#allocation13 + $0x810] sm:$0xff] }
 0x5dd   :  { %6289 = vmatprep.subr.mxu0 %v5970_v6  ;;  %6358 = vmatprep.subr.mxu1 %v6036_v57  ;;  %v6054_v6 = vld [vmem:[#allocation13 + $0x808] sm:$0xff]  ;;  %v6053_v57 = vld [vmem:[#allocation13 + $0x800] sm:$0xff] }
 0x5de   :  { %6290 = vmatpush2.msra.mxu0 %v5969_v46  ;;  %6359 = vmatpush2.msra.mxu1 %v6035_v56  ;;  %v5787_v46 = vrot.slane %v5743_v27, %v8043_v2  ;;  %v6485_v56 = vld [vmem:[#allocation16 + $0xf8] sm:$0xff]  ;;  %v6467_v29 = vld [vmem:[#allocation16 + $0x68] sm:$0xff] }
 0x5df   :  { %6291 = vmatprep.subr.mxu0 %v5968_v8  ;;  %6360 = vmatprep.subr.mxu1 %v6034_v58  ;;  %v6469_v8 = vld [vmem:[#allocation16 + $0x78] sm:$0xff]  ;;  %v6484_v58 = vld [vmem:[#allocation16 + $0xf0] sm:$0xff] }
 0x5e0   :  { %6292 = vmatpush2.msra.mxu0 %v5967_v38  ;;  %6361 = vmatpush2.msra.mxu1 %v6033_v52  ;;  %v6468_v38 = vld [vmem:[#allocation16 + $0x70] sm:$0xff]  ;;  %v6483_v52 = vld [vmem:[#allocation16 + $0xe8] sm:$0xff]  ;;  %v6465_v2 = vld [vmem:[#allocation16 + $0x58] sm:$0xff] }
 0x5e1   :  { %6293 = vmatprep.subr.mxu0 %v5966_v21  ;;  %6362 = vmatprep.subr.mxu1 %v6032_v28  ;;  %v6482_v21 = vld [vmem:[#allocation16 + $0xe0] sm:$0xff] }
 0x5e2   :  { %6294 = vmatpush2.msra.mxu0 %v5965_v48  ;;  %6363 = vmatpush2.msra.mxu1 %v6031_v18  ;;  %v6466_v28 = vld [vmem:[#allocation16 + $0x60] sm:$0xff]  ;;  %v6481_v48 = vld [vmem:[#allocation16 + $0xd8] sm:$0xff]  ;;  %v6480_v18 = vld [vmem:[#allocation16 + $0xd0] sm:$0xff] }
 0x5e3   :  { %6295 = vmatprep.subr.mxu0 %v5964_v5  ;;  %6364 = vmatprep.subr.mxu1 %v6030_v39  ;;  %v6464_v5 = vld [vmem:[#allocation16 + $0x50] sm:$0xff]  ;;  %v6479_v39 = vld [vmem:[#allocation16 + $0xc8] sm:$0xff] }
 0x5e4   :  { %6296 = vmatpush2.msra.mxu0 %v5963_v40  ;;  %6365 = vmatpush2.msra.mxu1 %v6029_v53  ;;  %v6463_v40 = vld [vmem:[#allocation16 + $0x48] sm:$0xff]  ;;  %v6478_v53 = vld [vmem:[#allocation16 + $0xc0] sm:$0xff] }
 0x5e5   :  { %6297 = vmatprep.subr.mxu0 %v5962_v15  ;;  %6366 = vmatprep.subr.mxu1 %v6028_v3  ;;  %v6462_v15 = vld [vmem:[#allocation16 + $0x40] sm:$0xff]  ;;  %v6477_v3 = vld [vmem:[#allocation16 + $0xb8] sm:$0xff] }
 0x5e6   :  { %6298 = vmatpush2.msra.mxu0 %v5961_v30  ;;  %6367 = vmatpush2.msra.mxu1 %v6027_v13  ;;  %v6461_v30 = vld [vmem:[#allocation16 + $0x38] sm:$0xff]  ;;  %v6476_v13 = vld [vmem:[#allocation16 + $0xb0] sm:$0xff] }
 0x5e7   :  { %6299 = vmatprep.subr.mxu0 %v5960_v19  ;;  %6368 = vmatprep.subr.mxu1 %v6026_v7  ;;  %v6460_v19 = vld [vmem:[#allocation16 + $0x30] sm:$0xff]  ;;  %v6475_v7 = vld [vmem:[#allocation16 + $0xa8] sm:$0xff] }
 0x5e8   :  { %6300 = vmatpush2.msra.mxu0 %v5959_v36  ;;  %6369 = vmatpush2.msra.mxu1 %v6025_v1  ;;  %v6459_v36 = vld [vmem:[#allocation16 + $0x28] sm:$0xff]  ;;  %v6474_v1 = vld [vmem:[#allocation16 + $0xa0] sm:$0xff] }
 0x5e9   :  { %6301 = vmatprep.subr.mxu0 %v5958_v11  ;;  %6370 = vmatprep.subr.mxu1 %v6024_v33  ;;  %v6458_v11 = vld [vmem:[#allocation16 + $0x20] sm:$0xff]  ;;  %v6473_v33 = vld [vmem:[#allocation16 + $0x98] sm:$0xff] }
 0x5ea   :  { %6302 = vmatpush2.msra.mxu0 %v5957_v42  ;;  %6371 = vmatpush2.msra.mxu1 %v6023_v23  ;;  %v6457_v42 = vld [vmem:[#allocation16 + $0x18] sm:$0xff]  ;;  %v6472_v23 = vld [vmem:[#allocation16 + $0x90] sm:$0xff] }
 0x5eb   :  { %6304 = vmatmul.mubr.f32.vlgmr.msra.gmra.mxu0 %v9558_v44  ;;  %6372 = vmatprep.subr.mxu1 %v6022_v17  ;;  %v6075_v44 = vld [vmem:[#allocation13 + $0x8b0] sm:$0xff] }
 0x5ec   :  { %6381 = vmatprep.subr.mxu0 %v6084_v22  ;;  %6373 = vmatpush2.msra.mxu1 %v6021_v26  ;;  %v6456_v17 = vld [vmem:[#allocation16 + $0x10] sm:$0xff]  ;;  %v6471_v22 = vld [vmem:[#allocation16 + $0x88] sm:$0xff] }
 0x5ed   :  { %6382 = vmatpush1.msra.mxu0 %v6083_v32  ;;  %6375 = vmatmul.mubr.f32.vlgmr.msra.gmra.mxu1 %v9563_v34  ;;  %v6071_v34 = vld [vmem:[#allocation13 + $0x890] sm:$0xff]  ;;  %v6470_v32 = vld [vmem:[#allocation16 + $0x80] sm:$0xff] }
 0x5ee   :  { %6383 = vmatprep.subr.mxu0 %v6082_v59  ;;  %6445 = vmatprep.mubr.f32.mxu0 %v7342_v0  ;;  %v6069_v0 = vld [vmem:[#allocation13 + $0x880] sm:$0xff]  ;;  %v6455_v26 = vld [vmem:[#allocation16 + $0x8] sm:$0xff] }
 0x5ef   :  { %6384 = vmatpush1.msra.mxu0 %v6081_v24  ;;  %6939 = vmatprep.subr.mxu1 %v6485_v56  ;;  %v6454_v59 = vld [vmem:[#allocation16] sm:$0xff]  ;;  %v6089_v24 = vsub.s32 0, %v8037_v61 }
 0x5f0   :  { %6385 = vmatprep.subr.mxu0 %v6080_v63  ;;  %6940 = vmatpush3.msra.mxu1 %v6469_v8  ;;  %v6085_v63 = vld [vmem:[#allocation15] sm:$0x3] }
 0x5f1   :  { %6386 = vmatpush1.msra.mxu0 %v6079_v9  ;;  %6941 = vmatprep.subr.mxu1 %v6484_v58  ;;  %v6093_v9 = vsub.s32 1, %v8037_v61 }
 0x5f2   :  { %6387 = vmatprep.subr.mxu0 %v6078_v54  ;;  %6942 = vmatpush3.msra.mxu1 %v6468_v38 }
 0x5f3   :  { %6388 = vmatpush1.msra.mxu0 %v6077_v10  ;;  %6943 = vmatprep.subr.mxu1 %v6483_v52  ;;  %v6090_v10 = vrot.slane %v6085_v63, %v6089_v24 }
 0x5f4   :  { %6389 = vmatprep.subr.mxu0 %v6076_v16  ;;  %6944 = vmatpush3.msra.mxu1 %v6467_v29  ;;  %v6094_v16 = vrot.slane %v6085_v63, %v6093_v9 }
 0x5f5   :  { %6390 = vmatpush1.msra.mxu0 %v6075_v44  ;;  %6945 = vmatprep.subr.mxu1 %v6482_v21 }
 0x5f6   :  { %6391 = vmatprep.subr.mxu0 %v6074_v43  ;;  %6946 = vmatpush3.msra.mxu1 %v6466_v28 }
 0x5f7   :  { %6392 = vmatpush1.msra.mxu0 %v6073_v55  ;;  %6947 = vmatprep.subr.mxu1 %v6481_v48 }
 0x5f8   :  { %6393 = vmatprep.subr.mxu0 %v6072_v12  ;;  %6948 = vmatpush3.msra.mxu1 %v6465_v2 }
 0x5f9   :  { %6394 = vmatpush1.msra.mxu0 %v6071_v34  ;;  %6949 = vmatprep.subr.mxu1 %v6480_v18 }
 0x5fa   :  { %6395 = vmatprep.subr.mxu0 %v6070_v31  ;;  %6950 = vmatpush3.msra.mxu1 %v6464_v5 }
 0x5fb   :  { %6396 = vmatpush1.msra.mxu0 %v6069_v0  ;;  %6951 = vmatprep.subr.mxu1 %v6479_v39 }
 0x5fc   :  { %6397 = vmatprep.subr.mxu0 %v6068_v25  ;;  %6952 = vmatpush3.msra.mxu1 %v6463_v40 }
 0x5fd   :  { %6398 = vmatpush1.msra.mxu0 %v6067_v50  ;;  %6953 = vmatprep.subr.mxu1 %v6478_v53 }
 0x5fe   :  { %6399 = vmatprep.subr.mxu0 %v6066_v20  ;;  %6954 = vmatpush3.msra.mxu1 %v6462_v15 }
 0x5ff   :  { %6400 = vmatpush1.msra.mxu0 %v6065_v4  ;;  %6955 = vmatprep.subr.mxu1 %v6477_v3 }
 0x600   :  { %6401 = vmatprep.subr.mxu0 %v6064_v45  ;;  %6956 = vmatpush3.msra.mxu1 %v6461_v30 }
 0x601   :  { %6402 = vmatpush1.msra.mxu0 %v6063_v62  ;;  %6957 = vmatprep.subr.mxu1 %v6476_v13 }
 0x602   :  { %6403 = vmatprep.subr.mxu0 %v6062_v41  ;;  %6958 = vmatpush3.msra.mxu1 %v6460_v19 }
 0x603   :  { %6404 = vmatpush1.msra.mxu0 %v6061_v14  ;;  %6959 = vmatprep.subr.mxu1 %v6475_v7 }
 0x604   :  { %6405 = vmatprep.subr.mxu0 %v6060_v51  ;;  %6960 = vmatpush3.msra.mxu1 %v6459_v36 }
 0x605   :  { %6406 = vmatpush1.msra.mxu0 %v6059_v35  ;;  %6961 = vmatprep.subr.mxu1 %v6474_v1 }
 0x606   :  { %6407 = vmatprep.subr.mxu0 %v6058_v37  ;;  %6962 = vmatpush3.msra.mxu1 %v6458_v11 }
 0x607   :  { %6408 = vmatpush1.msra.mxu0 %v6057_v47  ;;  %6963 = vmatprep.subr.mxu1 %v6473_v33 }
 0x608   :  { %6409 = vmatprep.subr.mxu0 %v6056_v60  ;;  %6964 = vmatpush3.msra.mxu1 %v6457_v42 }
 0x609   :  { %6410 = vmatpush1.msra.mxu0 %v6055_v49  ;;  %6965 = vmatprep.subr.mxu1 %v6472_v23  ;;  %v6735_v49 = vld [vmem:[#allocation18] ss:$0 sm:$0xff] }
 0x60a   :  { %6411 = vmatprep.subr.mxu0 %v6054_v6  ;;  %6966 = vmatpush3.msra.mxu1 %v6456_v17 }
 0x60b   :  { %6412 = vmatpush1.msra.mxu0 %v6053_v57  ;;  %6967 = vmatprep.subr.mxu1 %v6471_v22 }
 0x60c   :  { %6446 = vmatmul.mubr.f32.vlgmr.msra.gmra.mxu0 %v5787_v46  ;;  %6968 = vmatpush3.msra.mxu1 %v6455_v26 }
 0x60d   :  { %6969 = vmatprep.subr.mxu1 %v6470_v32 }
 0x60e   :  { %6970 = vmatpush3.msra.mxu1 %v6454_v59 }
 0x66a   :  { %v6163_v54 = vpop.f32.mrf.mxu0 }
 0x66b   :  { %v6164_v55 = vadd.f32 %v6163_v54, %v6090_v10 }
 0x66c   :  { %v6165_v44 = vpop.f32.mrf.mxu0  ;;  %v6234_v43 = vpop.f32.mrf.mxu1 }
 0x66d   :  { %v6166_v34 = vadd.f32 %v6165_v44, %v6094_v16  ;;  %v6235_v0 = vadd.f32 %v6234_v43, %v6164_v55 }
 0x66e   :  { %v6236_v31 = vpop.f32.mrf.mxu1 }
 0x66f   :  { %v6237_v20 = vadd.f32 %v6236_v31, %v6166_v34 }
 0x6ab   :  { %v6305_v12 = vpop.f32.mrf.mxu0 }
 0x6ac   :  { %v6306_v4 = vadd.f32 %v6305_v12, %v6235_v0 }
 0x6ad   :  { %v6307_v25 = vpop.f32.mrf.mxu0  ;;  %v6376_v50 = vpop.f32.mrf.mxu1 }
 0x6ae   :  { %v6308_v45 = vadd.f32 %v6307_v25, %v6237_v20  ;;  %v6377_v41 = vadd.f32 %v6376_v50, %v6306_v4 }
 0x6af   :  { %v6378_v62 = vpop.f32.mrf.mxu1 }
 0x6b0   :  { %v6379_v51 = vadd.f32 %v6378_v62, %v6308_v45 }
 0x6cc   :  { %v6447_v14 = vpop.f32.mrf.mxu0 }
 0x6cd   :  { %v6448_v61 = vadd.f32 %v6447_v14, %v6377_v41 }
 0x6ce   :  { %v6449_v35 = vpop.f32.mrf.mxu0 }
 0x6cf   :  { %v6450_v37 = vadd.f32 %v6449_v35, %v6379_v51  ;;  %v6452_v60 = vmax.f32 %v6448_v61, 0.0 }
 0x6d1   :  { %v6453_v47 = vmax.f32 %v6450_v37, 0.0 }
 0x6d3   :  { %6557 = vmatprep.mubr.f32.mxu1 %v6453_v47 }
 0x6d4   :  { %6558 = vmatmul.mubr.f32.vlgmr.msra.gmra.mxu1 %v6452_v60 }
 0x794   :  { %v6971_v27 = vpop.f32.mrf.mxu1 }
 0x796   :  { %v6972_v6 = vpop.f32.mrf.mxu1 }
 0x797   :  { %v6973_v57 = vadd.f32 %v6972_v6, %v6971_v27 }
 0x799   :  { %v6560_v46 = vadd.f32 %v6973_v57, %v6735_v49 }
 0x79b   :  { %v6563_v56 = vand.u32 2147483647, %v6560_v46  ;;  %vm6567_vm8 = vcmp.ge.f32.partialorder %v6560_v46, 0.0 }
 0x79d   :  { %v6564_v8 = vsub.f32 0.0, %v6563_v56 }
 0x79f   :  { %v6565_v58 = vmul.f32 1.442695, %v6564_v8 }
 0x7a1   :  { %7112 = vpow2.f32 %v6565_v58 }
 0x7ae   :  { %v7113_v38 = vpop.eup %7112 }
 0x7af   :  { %v6568_v52 = vadd.f32 1.0, %v7113_v38 }
 0x7b1   :  { %7114 = vrcp.f32 %v6568_v52 }
 0x7be   :  { %v7115_v29 = vpop.eup %7114 }
 0x7bf   :  { %v6571_v21 = vmul.f32 %v7115_v29, %v7113_v38 }
 0x7c1   :  { %v6572_v28 = vsel %vm6567_vm8, %v7115_v29, %v6571_v21 }
 0x7c2   :  { %6573 = vst [vmem:[#allocation19] sm:$0x3] %v6572_v28 }
 0x7c3   :  { %7308 = shalt.err (!%p7305_p7)
}
 0x7c4   :  { %6583 = dma.vmem_to_hbm [thread:$0]  %s6581_s17, 32, %s9588_s11, [#allocation6]  }
 0x7c5   :  { %7327 = dma.done.wait [#allocation6], 32  }
 0x7c6   :  { %7328 = vsyncadd [#allocation6], 4294967264 }
 0x7c7   :  { %6587 = vsyncpa [#allocation5], 1 }
 0x7c8   :  { %6588 = vsyncpa [#allocation8], 1 }
 0x7c9   :  { %6589 = vsyncpa [#allocation11], 1 }
 0x7ca   :  { %6590 = vsyncpa [#allocation14], 1 }
 0x7cb   :  { %6591 = vsyncpa [#allocation17], 1 }
 0x7cc   :  { %6592 = vsyncpa [#allocation6], 1 }

</bundles_post_ra>
